<compile_context>
chip_gen: v6e
topology: v6e:2x2x1
jax: 0.10.0
libtpu: 0.0.40
codegen_flags: <defaults>
</compile_context>

<pallas_src>
import functools
import math

import jax
import jax.numpy as jnp
from jax import lax
from jax.experimental import pallas as pl

F32 = jnp.float32
BF16 = jnp.bfloat16
LN_EPS = 1e-5           # PyTorch nn.LayerNorm default
NEG_INF = -1e10         # matches masked_fill(mask == 0, -10000000000.0)
PAD_IDX = 1             # Seq2Seq.pad_idx


# ---------------------------------------------------------------------------
# In-kernel helpers (pure value functions)
# ---------------------------------------------------------------------------

def _mm(x, w, b):
    """x @ W + b with bf16 MXU operands and f32 accumulation (w bf16, b f32)."""
    return jnp.dot(x.astype(BF16), w, preferred_element_type=F32) + b


def _layernorm(z, g, b):
    mu = jnp.mean(z, axis=-1, keepdims=True)
    var = jnp.mean(jnp.square(z - mu), axis=-1, keepdims=True)
    return (z - mu) * lax.rsqrt(var + LN_EPS) * g + b


def _make_seq2seq_kernel(B, Ls, Lt, H, n_heads):
    hd = H // n_heads
    inv_scale = 1.0 / math.sqrt(float(hd))
    emb_scale = math.sqrt(float(H))

    def mha(q2d, k2d, v2d, keep, Lq, Lk, exact):
        """Multi-head attention.  Score tiles of every (batch, head) pair are stacked
        on the sublane axis so masking / softmax / normalization run in ONE vector
        pass; per-head context tiles stay in registers and are concatenated once
        (no VMEM scratch, no masked sub-lane stores).

        q2d (B*Lq, H), k2d/v2d (B*Lk, H), keep (B*n_heads*Lq, Lk) f32 {0,1}.
        Returns ctx (B*Lq, H) f32 and probs (B*n_heads*Lq, Lk) f32."""
        q16, k16, v16 = q2d.astype(BF16), k2d.astype(BF16), v2d.astype(BF16)
        parts = []
        for b in range(B):
            qb = q16[b * Lq:(b + 1) * Lq, :]
            kb = k16[b * Lk:(b + 1) * Lk, :]
            for h in range(n_heads):
                c = slice(h * hd, (h + 1) * hd)
                # QK^T contracting the head dims — no explicit transpose op.
                parts.append(lax.dot_general(qb[:, c], kb[:, c],
                                             (((1,), (1,)), ((), ())),
                                             preferred_element_type=F32))
        s = jnp.concatenate(parts, axis=0) * inv_scale          # (B*nh*Lq, Lk)
        s = jnp.where(keep == 0.0, jnp.float32(NEG_INF), s)     # one masked_fill
        s = s - jnp.max(s, axis=-1, keepdims=True)
        p = jnp.exp(s)
        den = jnp.sum(p, axis=-1, keepdims=True)
        # Exact division for probabilities that are returned to the caller;
        # EUP approximate reciprocal is fine for internal-only softmaxes.
        p = (p / den) if exact else (p * pl.reciprocal(den, approx=True))
        p16 = p.astype(BF16)
        rows = []
        for b in range(B):
            vb = v16[b * Lk:(b + 1) * Lk, :]
            cols = []
            for h in range(n_heads):
                r = slice((b * n_heads + h) * Lq, (b * n_heads + h + 1) * Lq)
                c = slice(h * hd, (h + 1) * hd)
                cols.append(jnp.dot(p16[r, :], vb[:, c],
                                    preferred_element_type=F32))
            rows.append(jnp.concatenate(cols, axis=1))           # (Lq, H)
        return jnp.concatenate(rows, axis=0), p                  # (B*Lq, H), probs

    def kernel(src_col_ref, src_row_ref, tgt_col_ref, tgt_row_ref,
               enc_tok_ref, enc_pos_ref, dec_tok_ref, dec_pos_ref,
               e_wqkv, e_bqkv, e_wo, e_bo, e_g1, e_be1,
               e_w1, e_b1, e_w2, e_b2, e_g2, e_be2,
               d_wqkv, d_bqkv, d_wo, d_bo, d_g1, d_be1,
               d_cwq, d_cbq, d_cwkv, d_cbkv, d_cwo, d_cbo, d_g2, d_be2,
               d_w1, d_b1, d_w2, d_b2, d_g3, d_be3,
               fo_w, fo_b,
               logits_ref, attn_ref):
        n_layers = e_wqkv.shape[0]
        in_vocab = enc_tok_ref.shape[0]
        out_vocab = dec_tok_ref.shape[0]

        # ---- pad / causal masks built once in-kernel (f32 keep flags, 0 = masked),
        #      laid out to match the stacked (B*n_heads*Lq, Lk) score blocks --------
        src_keep = (src_row_ref[...] != PAD_IDX).astype(F32)          # (B, Ls)
        tgt_keep = (tgt_row_ref[...] != PAD_IDX).astype(F32)          # (B, Lt)
        causal = (lax.broadcasted_iota(jnp.int32, (Lt, Lt), 1)
                  <= lax.broadcasted_iota(jnp.int32, (Lt, Lt), 0)).astype(F32)
        keep_enc = jnp.concatenate(
            [jnp.broadcast_to(src_keep[b:b + 1, :], (n_heads * Ls, Ls))
             for b in range(B)], axis=0)                              # (B*nh*Ls, Ls)
        keep_cross = jnp.concatenate(
            [jnp.broadcast_to(src_keep[b:b + 1, :], (n_heads * Lt, Ls))
             for b in range(B)], axis=0)                              # (B*nh*Lt, Ls)
        self_parts = []
        for b in range(B):
            kb = tgt_keep[b:b + 1, :] * causal                        # (Lt, Lt)
            self_parts.extend([kb] * n_heads)
        keep_self = jnp.concatenate(self_parts, axis=0)               # (B*nh*Lt, Lt)

        # ---- encoder embedding: exact one-hot token gather + tiled positional rows -
        src_oh = (lax.broadcasted_iota(jnp.int32, (B * Ls, in_vocab), 1)
                  == src_col_ref[...]).astype(F32)                    # (B*Ls, V_in)
        x = jnp.dot(src_oh, enc_tok_ref[...], preferred_element_type=F32) * emb_scale
        x = x + jnp.concatenate([enc_pos_ref[...][:Ls, :]] * B, axis=0)
        # TODO(synk): nn.Dropout layers are identity (eval mode) — not modelled.

        # ---- encoder layers: weights stacked on a leading layer axis; x stays in
        #      registers/VMEM between layers (no HBM round trips) -------------------
        for l in range(n_layers):
            qkv = _mm(x, e_wqkv[l], e_bqkv[l])                        # fused QKV
            ctx, _ = mha(qkv[:, 0:H], qkv[:, H:2 * H], qkv[:, 2 * H:3 * H],
                         keep_enc, Ls, Ls, exact=False)
            y = _layernorm(x + _mm(ctx, e_wo[l], e_bo[l]), e_g1[l], e_be1[l])
            hidden = jnp.maximum(_mm(y, e_w1[l], e_b1[l]), 0.0)
            x = _layernorm(y + _mm(hidden, e_w2[l], e_b2[l]), e_g2[l], e_be2[l])

        # ---- decoder embedding ------------------------------------------------------
        tgt_oh = (lax.broadcasted_iota(jnp.int32, (B * Lt, out_vocab), 1)
                  == tgt_col_ref[...]).astype(F32)
        t = jnp.dot(tgt_oh, dec_tok_ref[...], preferred_element_type=F32) * emb_scale
        t = t + jnp.concatenate([dec_pos_ref[...][:Lt, :]] * B, axis=0)

        # Cross-attention K/V depend only on the encoder output: hoisted above the
        # self-attention so its MXU work can overlap the softmax below.
        kvc = _mm(x, d_cwkv[...], d_cbkv[...])                        # (B*Ls, 2H)

        # ---- decoder (last layer only) + fc_out ------------------------------------
        # Reference quirk (verified): Decoder.forward passes the *embedding* to every
        # DecoderLayer, so only the last layer's output/attention reaches fc_out.
        qkv = _mm(t, d_wqkv[...], d_bqkv[...])
        ctx, _ = mha(qkv[:, 0:H], qkv[:, H:2 * H], qkv[:, 2 * H:3 * H],
                     keep_self, Lt, Lt, exact=False)
        y = _layernorm(t + _mm(ctx, d_wo[...], d_bo[...]), d_g1[...], d_be1[...])

        qc = _mm(y, d_cwq[...], d_cbq[...])
        ctx2, p_cross = mha(qc, kvc[:, 0:H], kvc[:, H:2 * H],
                            keep_cross, Lt, Ls, exact=True)
        attn_ref[...] = p_cross          # single (B*nh*Lt, Ls) store, reshaped outside
        z = _layernorm(y + _mm(ctx2, d_cwo[...], d_cbo[...]), d_g2[...], d_be2[...])

        hidden = jnp.maximum(_mm(z, d_w1[...], d_b1[...]), 0.0)
        out = _layernorm(z + _mm(hidden, d_w2[...], d_b2[...]), d_g3[...], d_be3[...])
        logits_ref[...] = _mm(out, fo_w[...], fo_b[...])

    return kernel


# ---------------------------------------------------------------------------
# Wrapper: ONE pallas_call for the whole forward pass.
# ---------------------------------------------------------------------------

def seq2seq_forward(params, src, tgt, *, hid_dim, n_heads):
    B, Ls = src.shape
    _, Lt = tgt.shape
    H = hid_dim
    O = params["fc_out"]["w"].shape[1]
    e = params["enc_layers"]                 # dict of arrays stacked over layers
    d = params["dec_layers"][-1]             # only the last decoder layer is live
    kernel = _make_seq2seq_kernel(B, Ls, Lt, H, n_heads)
    logits, attn = pl.pallas_call(
        kernel,
        out_shape=(jax.ShapeDtypeStruct((B * Lt, O), F32),
                   jax.ShapeDtypeStruct((B * n_heads * Lt, Ls), F32)),
    )(src.reshape(B * Ls, 1), src, tgt.reshape(B * Lt, 1), tgt,
      params["enc_tok"], params["enc_pos"], params["dec_tok"], params["dec_pos"],
      e["wqkv"], e["bqkv"], e["wo"], e["bo"], e["ln1_g"], e["ln1_b"],
      e["w1"], e["b1"], e["w2"], e["b2"], e["ln2_g"], e["ln2_b"],
      d["self_wqkv"], d["self_bqkv"], d["self_wo"], d["self_bo"],
      d["ln1_g"], d["ln1_b"],
      d["cross_wq"], d["cross_bq"], d["cross_wkv"], d["cross_bkv"],
      d["cross_wo"], d["cross_bo"], d["ln2_g"], d["ln2_b"],
      d["w1"], d["b1"], d["w2"], d["b2"], d["ln3_g"], d["ln3_b"],
      params["fc_out"]["w"], params["fc_out"]["b"])
    return logits.reshape(B, Lt, O), attn.reshape(B, n_heads, Lt, Ls)


# ---------------------------------------------------------------------------
# Parameter construction (deterministic, synthetic).  Matmul weights in bf16.
# ---------------------------------------------------------------------------

def _init_linear(key, fan_in, fan_out):
    kw, kb = jax.random.split(key)
    w = (jax.random.normal(kw, (fan_in, fan_out), F32) * 0.05).astype(BF16)
    b = (jax.random.normal(kb, (fan_out,), F32) * 0.05).reshape(1, fan_out)
    return w, b


def _init_ln(H):
    return jnp.ones((1, H), F32), jnp.zeros((1, H), F32)


def _init_enc_layer(key, H, P):
    k1, k2, k3, k4 = jax.random.split(key, 4)
    wqkv, bqkv = _init_linear(k1, H, 3 * H)
    wo, bo = _init_linear(k2, H, H)
    w1, b1 = _init_linear(k3, H, P)
    w2, b2 = _init_linear(k4, P, H)
    g1, be1 = _init_ln(H)
    g2, be2 = _init_ln(H)
    return dict(wqkv=wqkv, bqkv=bqkv, wo=wo, bo=bo, ln1_g=g1, ln1_b=be1,
                w1=w1, b1=b1, w2=w2, b2=b2, ln2_g=g2, ln2_b=be2)


def _init_dec_layer(key, H, P):
    ks = jax.random.split(key, 7)
    s_wqkv, s_bqkv = _init_linear(ks[0], H, 3 * H)
    s_wo, s_bo = _init_linear(ks[1], H, H)
    c_wq, c_bq = _init_linear(ks[2], H, H)
    c_wkv, c_bkv = _init_linear(ks[3], H, 2 * H)
    c_wo, c_bo = _init_linear(ks[4], H, H)
    w1, b1 = _init_linear(ks[5], H, P)
    w2, b2 = _init_linear(ks[6], P, H)
    g1, be1 = _init_ln(H)
    g2, be2 = _init_ln(H)
    g3, be3 = _init_ln(H)
    return dict(self_wqkv=s_wqkv, self_bqkv=s_bqkv, self_wo=s_wo, self_bo=s_bo,
                ln1_g=g1, ln1_b=be1,
                cross_wq=c_wq, cross_bq=c_bq, cross_wkv=c_wkv, cross_bkv=c_bkv,
                cross_wo=c_wo, cross_bo=c_bo, ln2_g=g2, ln2_b=be2,
                w1=w1, b1=b1, w2=w2, b2=b2, ln3_g=g3, ln3_b=be3)


def init_seq2seq(key, input_dim, output_dim, hid_dim, n_layers, pf_dim, max_len):
    keys = jax.random.split(key, 5 + 2 * n_layers)
    fo_w, fo_b = _init_linear(keys[4], hid_dim, output_dim)
    enc_list = [_init_enc_layer(keys[5 + i], hid_dim, pf_dim) for i in range(n_layers)]
    enc_stacked = {k: jnp.stack([lay[k] for lay in enc_list]) for k in enc_list[0]}
    dec_list = [_init_dec_layer(keys[5 + n_layers + i], hid_dim, pf_dim)
                for i in range(n_layers)]
    return {
        "enc_tok": jax.random.normal(keys[0], (input_dim, hid_dim), F32) * 0.05,
        "enc_pos": jax.random.normal(keys[1], (max_len, hid_dim), F32) * 0.05,
        "dec_tok": jax.random.normal(keys[2], (output_dim, hid_dim), F32) * 0.05,
        "dec_pos": jax.random.normal(keys[3], (max_len, hid_dim), F32) * 0.05,
        "fc_out": {"w": fo_w, "b": fo_b},
        "enc_layers": enc_stacked,
        "dec_layers": dec_list,
    }


# ---------------------------------------------------------------------------
# Main
# ---------------------------------------------------------------------------

if __name__ == "__main__":
    input_dim = 50
    output_dim = 60
    hid_dim = 32
    n_heads = 4
    n_layers = 2
    pf_dim = 64
    max_len = 16
    batch = 2
    src_len = 8
    trg_len = 8

    root = jax.random.PRNGKey(0)
    kp, ks, kt = jax.random.split(root, 3)

    params = init_seq2seq(kp, input_dim, output_dim, hid_dim, n_layers, pf_dim, max_len)
    src = jax.random.randint(ks, (batch, src_len), 0, input_dim, dtype=jnp.int32)
    tgt = jax.random.randint(kt, (batch, trg_len), 0, output_dim, dtype=jnp.int32)

    fwd = jax.jit(functools.partial(seq2seq_forward, hid_dim=hid_dim, n_heads=n_heads))
    output, attention = fwd(params, src, tgt)
    output = jax.block_until_ready(output)
    attention = jax.block_until_ready(attention)

    assert output.shape == (batch, trg_len, output_dim)
    assert attention.shape == (batch, n_heads, trg_len, src_len)
    assert bool(jnp.all(jnp.isfinite(output))) and bool(jnp.all(jnp.isfinite(attention)))
    print("KERNEL_OK")
</pallas_src>

<mosaic_0001>
module attributes {stable_mosaic.version = 11 : i64} {
  func.func @kernel(%arg0: memref<16x1xi32, #tpu.memory_space<vmem>>, %arg1: memref<2x8xi32, #tpu.memory_space<vmem>>, %arg2: memref<16x1xi32, #tpu.memory_space<vmem>>, %arg3: memref<2x8xi32, #tpu.memory_space<vmem>>, %arg4: memref<50x32xf32, #tpu.memory_space<vmem>>, %arg5: memref<16x32xf32, #tpu.memory_space<vmem>>, %arg6: memref<60x32xf32, #tpu.memory_space<vmem>>, %arg7: memref<16x32xf32, #tpu.memory_space<vmem>>, %arg8: memref<2x32x96xbf16, #tpu.memory_space<vmem>>, %arg9: memref<2x1x96xf32, #tpu.memory_space<vmem>>, %arg10: memref<2x32x32xbf16, #tpu.memory_space<vmem>>, %arg11: memref<2x1x32xf32, #tpu.memory_space<vmem>>, %arg12: memref<2x1x32xf32, #tpu.memory_space<vmem>>, %arg13: memref<2x1x32xf32, #tpu.memory_space<vmem>>, %arg14: memref<2x32x64xbf16, #tpu.memory_space<vmem>>, %arg15: memref<2x1x64xf32, #tpu.memory_space<vmem>>, %arg16: memref<2x64x32xbf16, #tpu.memory_space<vmem>>, %arg17: memref<2x1x32xf32, #tpu.memory_space<vmem>>, %arg18: memref<2x1x32xf32, #tpu.memory_space<vmem>>, %arg19: memref<2x1x32xf32, #tpu.memory_space<vmem>>, %arg20: memref<32x96xbf16, #tpu.memory_space<vmem>>, %arg21: memref<1x96xf32, #tpu.memory_space<vmem>>, %arg22: memref<32x32xbf16, #tpu.memory_space<vmem>>, %arg23: memref<1x32xf32, #tpu.memory_space<vmem>>, %arg24: memref<1x32xf32, #tpu.memory_space<vmem>>, %arg25: memref<1x32xf32, #tpu.memory_space<vmem>>, %arg26: memref<32x32xbf16, #tpu.memory_space<vmem>>, %arg27: memref<1x32xf32, #tpu.memory_space<vmem>>, %arg28: memref<32x64xbf16, #tpu.memory_space<vmem>>, %arg29: memref<1x64xf32, #tpu.memory_space<vmem>>, %arg30: memref<32x32xbf16, #tpu.memory_space<vmem>>, %arg31: memref<1x32xf32, #tpu.memory_space<vmem>>, %arg32: memref<1x32xf32, #tpu.memory_space<vmem>>, %arg33: memref<1x32xf32, #tpu.memory_space<vmem>>, %arg34: memref<32x64xbf16, #tpu.memory_space<vmem>>, %arg35: memref<1x64xf32, #tpu.memory_space<vmem>>, %arg36: memref<64x32xbf16, #tpu.memory_space<vmem>>, %arg37: memref<1x32xf32, #tpu.memory_space<vmem>>, %arg38: memref<1x32xf32, #tpu.memory_space<vmem>>, %arg39: memref<1x32xf32, #tpu.memory_space<vmem>>, %arg40: memref<32x60xbf16, #tpu.memory_space<vmem>>, %arg41: memref<1x60xf32, #tpu.memory_space<vmem>>, %arg42: memref<16x60xf32, #tpu.memory_space<vmem>>, %arg43: memref<64x8xf32, #tpu.memory_space<vmem>>) attributes {dimension_semantics = [], scalar_prefetch = 0 : i64, scratch_operands = 0 : i64, tpu.core_type = #tpu.core_type<tc>} {
    %c0 = arith.constant 0 : index
    %c0_0 = arith.constant 0 : index
    %0 = vector.load %arg1[%c0, %c0_0] : memref<2x8xi32, #tpu.memory_space<vmem>>, vector<2x8xi32>
    %c1_i32 = arith.constant 1 : i32
    %1 = vector.broadcast %c1_i32 : i32 to vector<2x8xi32>
    %2 = arith.cmpi ne, %0, %1 : vector<2x8xi32>
    %3 = arith.extui %2 : vector<2x8xi1> to vector<2x8xi32>
    %4 = arith.sitofp %3 : vector<2x8xi32> to vector<2x8xf32>
    %c0_1 = arith.constant 0 : index
    %c0_2 = arith.constant 0 : index
    %5 = vector.load %arg3[%c0_1, %c0_2] : memref<2x8xi32, #tpu.memory_space<vmem>>, vector<2x8xi32>
    %c1_i32_3 = arith.constant 1 : i32
    %6 = vector.broadcast %c1_i32_3 : i32 to vector<2x8xi32>
    %7 = arith.cmpi ne, %5, %6 : vector<2x8xi32>
    %8 = arith.extui %7 : vector<2x8xi1> to vector<2x8xi32>
    %9 = arith.sitofp %8 : vector<2x8xi32> to vector<2x8xf32>
    %10 = tpu.iota {dimensions = array<i32: 1>} : vector<8x8xi32>
    %11 = tpu.iota {dimensions = array<i32: 0>} : vector<8x8xi32>
    %12 = arith.cmpi sle, %10, %11 : vector<8x8xi32>
    %13 = arith.extui %12 : vector<8x8xi1> to vector<8x8xi32>
    %14 = arith.sitofp %13 : vector<8x8xi32> to vector<8x8xf32>
    %15 = vector.extract_strided_slice %4 {offsets = [0, 0], sizes = [1, 8], strides = [1, 1]} : vector<2x8xf32> to vector<1x8xf32>
    %16 = vector.shape_cast %15 : vector<1x8xf32> to vector<1x8xf32>
    %17 = vector.broadcast %16 : vector<1x8xf32> to vector<32x8xf32>
    %18 = vector.extract_strided_slice %4 {offsets = [1, 0], sizes = [1, 8], strides = [1, 1]} : vector<2x8xf32> to vector<1x8xf32>
    %19 = vector.shape_cast %18 : vector<1x8xf32> to vector<1x8xf32>
    %20 = vector.broadcast %19 : vector<1x8xf32> to vector<32x8xf32>
    %21 = tpu.concatenate %17, %20 in 0 : vector<32x8xf32>, vector<32x8xf32> -> vector<64x8xf32>
    %22 = vector.extract_strided_slice %4 {offsets = [0, 0], sizes = [1, 8], strides = [1, 1]} : vector<2x8xf32> to vector<1x8xf32>
    %23 = vector.shape_cast %22 : vector<1x8xf32> to vector<1x8xf32>
    %24 = vector.broadcast %23 : vector<1x8xf32> to vector<32x8xf32>
    %25 = vector.extract_strided_slice %4 {offsets = [1, 0], sizes = [1, 8], strides = [1, 1]} : vector<2x8xf32> to vector<1x8xf32>
    %26 = vector.shape_cast %25 : vector<1x8xf32> to vector<1x8xf32>
    %27 = vector.broadcast %26 : vector<1x8xf32> to vector<32x8xf32>
    %28 = tpu.concatenate %24, %27 in 0 : vector<32x8xf32>, vector<32x8xf32> -> vector<64x8xf32>
    %29 = vector.extract_strided_slice %9 {offsets = [0, 0], sizes = [1, 8], strides = [1, 1]} : vector<2x8xf32> to vector<1x8xf32>
    %30 = vector.broadcast %29 : vector<1x8xf32> to vector<8x8xf32>
    %31 = arith.mulf %30, %14 : vector<8x8xf32>
    %32 = vector.extract_strided_slice %9 {offsets = [1, 0], sizes = [1, 8], strides = [1, 1]} : vector<2x8xf32> to vector<1x8xf32>
    %33 = vector.broadcast %32 : vector<1x8xf32> to vector<8x8xf32>
    %34 = arith.mulf %33, %14 : vector<8x8xf32>
    %35 = tpu.concatenate %31, %31, %31, %31, %34, %34, %34, %34 in 0 : vector<8x8xf32>, vector<8x8xf32>, vector<8x8xf32>, vector<8x8xf32>, vector<8x8xf32>, vector<8x8xf32>, vector<8x8xf32>, vector<8x8xf32> -> vector<64x8xf32>
    %36 = tpu.iota {dimensions = array<i32: 1>} : vector<16x50xi32>
    %c0_4 = arith.constant 0 : index
    %c0_5 = arith.constant 0 : index
    %37 = vector.load %arg0[%c0_4, %c0_5] : memref<16x1xi32, #tpu.memory_space<vmem>>, vector<16x1xi32>
    %38 = vector.broadcast %37 : vector<16x1xi32> to vector<16x50xi32>
    %39 = arith.cmpi eq, %36, %38 : vector<16x50xi32>
    %40 = arith.extui %39 : vector<16x50xi1> to vector<16x50xi32>
    %41 = arith.sitofp %40 : vector<16x50xi32> to vector<16x50xf32>
    %c0_6 = arith.constant 0 : index
    %c0_7 = arith.constant 0 : index
    %42 = vector.load %arg4[%c0_6, %c0_7] : memref<50x32xf32, #tpu.memory_space<vmem>>, vector<50x32xf32>
    %cst = arith.constant dense<0.000000e+00> : vector<16x32xf32>
    %43 = tpu.matmul %41, %42, %cst {dimension_numbers = #tpu.dot_dimension_numbers<[1], [0], [0], [1], [0, 0, 1, 1], [], []>} : vector<16x50xf32>, vector<50x32xf32>, vector<16x32xf32> -> vector<16x32xf32>
    %cst_8 = arith.constant 5.65685415 : f32
    %44 = vector.broadcast %cst_8 : f32 to vector<16x32xf32>
    %45 = arith.mulf %43, %44 : vector<16x32xf32>
    %c0_9 = arith.constant 0 : index
    %c0_10 = arith.constant 0 : index
    %46 = vector.load %arg5[%c0_9, %c0_10] : memref<16x32xf32, #tpu.memory_space<vmem>>, vector<16x32xf32>
    %47 = vector.extract_strided_slice %46 {offsets = [0, 0], sizes = [8, 32], strides = [1, 1]} : vector<16x32xf32> to vector<8x32xf32>
    %48 = tpu.concatenate %47, %47 in 0 : vector<8x32xf32>, vector<8x32xf32> -> vector<16x32xf32>
    %49 = arith.addf %45, %48 : vector<16x32xf32>
    %c0_11 = arith.constant 0 : index
    %c0_12 = arith.constant 0 : index
    %c0_13 = arith.constant 0 : index
    %50 = vector.load %arg8[%c0_11, %c0_12, %c0_13] : memref<2x32x96xbf16, #tpu.memory_space<vmem>>, vector<1x32x96xbf16>
    %51 = vector.shape_cast %50 : vector<1x32x96xbf16> to vector<32x96xbf16>
    %c0_14 = arith.constant 0 : index
    %c0_15 = arith.constant 0 : index
    %c0_16 = arith.constant 0 : index
    %52 = vector.load %arg9[%c0_14, %c0_15, %c0_16] : memref<2x1x96xf32, #tpu.memory_space<vmem>>, vector<1x1x96xf32>
    %53 = vector.shape_cast %52 : vector<1x1x96xf32> to vector<1x96xf32>
    %54 = arith.truncf %49 : vector<16x32xf32> to vector<16x32xbf16>
    %cst_17 = arith.constant dense<0.000000e+00> : vector<16x96xf32>
    %55 = tpu.matmul %54, %51, %cst_17 {dimension_numbers = #tpu.dot_dimension_numbers<[1], [0], [0], [1], [0, 0, 1, 1], [], []>} : vector<16x32xbf16>, vector<32x96xbf16>, vector<16x96xf32> -> vector<16x96xf32>
    %56 = vector.broadcast %53 : vector<1x96xf32> to vector<16x96xf32>
    %57 = arith.addf %55, %56 : vector<16x96xf32>
    %58 = vector.extract_strided_slice %57 {offsets = [0, 0], sizes = [16, 32], strides = [1, 1]} : vector<16x96xf32> to vector<16x32xf32>
    %59 = vector.extract_strided_slice %57 {offsets = [0, 32], sizes = [16, 32], strides = [1, 1]} : vector<16x96xf32> to vector<16x32xf32>
    %60 = vector.extract_strided_slice %57 {offsets = [0, 64], sizes = [16, 32], strides = [1, 1]} : vector<16x96xf32> to vector<16x32xf32>
    %61 = arith.truncf %58 : vector<16x32xf32> to vector<16x32xbf16>
    %62 = arith.truncf %59 : vector<16x32xf32> to vector<16x32xbf16>
    %63 = arith.truncf %60 : vector<16x32xf32> to vector<16x32xbf16>
    %64 = vector.extract_strided_slice %61 {offsets = [0, 0], sizes = [8, 32], strides = [1, 1]} : vector<16x32xbf16> to vector<8x32xbf16>
    %65 = vector.extract_strided_slice %62 {offsets = [0, 0], sizes = [8, 32], strides = [1, 1]} : vector<16x32xbf16> to vector<8x32xbf16>
    %66 = vector.extract_strided_slice %64 {offsets = [0, 0], sizes = [8, 8], strides = [1, 1]} : vector<8x32xbf16> to vector<8x8xbf16>
    %67 = vector.extract_strided_slice %65 {offsets = [0, 0], sizes = [8, 8], strides = [1, 1]} : vector<8x32xbf16> to vector<8x8xbf16>
    %cst_18 = arith.constant dense<0.000000e+00> : vector<8x8xf32>
    %68 = tpu.matmul %66, %67, %cst_18 {dimension_numbers = #tpu.dot_dimension_numbers<[1], [1], [0], [0], [0, 0, 1, 0], [], []>} : vector<8x8xbf16>, vector<8x8xbf16>, vector<8x8xf32> -> vector<8x8xf32>
    %69 = vector.extract_strided_slice %64 {offsets = [0, 8], sizes = [8, 8], strides = [1, 1]} : vector<8x32xbf16> to vector<8x8xbf16>
    %70 = vector.extract_strided_slice %65 {offsets = [0, 8], sizes = [8, 8], strides = [1, 1]} : vector<8x32xbf16> to vector<8x8xbf16>
    %cst_19 = arith.constant dense<0.000000e+00> : vector<8x8xf32>
    %71 = tpu.matmul %69, %70, %cst_19 {dimension_numbers = #tpu.dot_dimension_numbers<[1], [1], [0], [0], [0, 0, 1, 0], [], []>} : vector<8x8xbf16>, vector<8x8xbf16>, vector<8x8xf32> -> vector<8x8xf32>
    %72 = vector.extract_strided_slice %64 {offsets = [0, 16], sizes = [8, 8], strides = [1, 1]} : vector<8x32xbf16> to vector<8x8xbf16>
    %73 = vector.extract_strided_slice %65 {offsets = [0, 16], sizes = [8, 8], strides = [1, 1]} : vector<8x32xbf16> to vector<8x8xbf16>
    %cst_20 = arith.constant dense<0.000000e+00> : vector<8x8xf32>
    %74 = tpu.matmul %72, %73, %cst_20 {dimension_numbers = #tpu.dot_dimension_numbers<[1], [1], [0], [0], [0, 0, 1, 0], [], []>} : vector<8x8xbf16>, vector<8x8xbf16>, vector<8x8xf32> -> vector<8x8xf32>
    %75 = vector.extract_strided_slice %64 {offsets = [0, 24], sizes = [8, 8], strides = [1, 1]} : vector<8x32xbf16> to vector<8x8xbf16>
    %76 = vector.extract_strided_slice %65 {offsets = [0, 24], sizes = [8, 8], strides = [1, 1]} : vector<8x32xbf16> to vector<8x8xbf16>
    %cst_21 = arith.constant dense<0.000000e+00> : vector<8x8xf32>
    %77 = tpu.matmul %75, %76, %cst_21 {dimension_numbers = #tpu.dot_dimension_numbers<[1], [1], [0], [0], [0, 0, 1, 0], [], []>} : vector<8x8xbf16>, vector<8x8xbf16>, vector<8x8xf32> -> vector<8x8xf32>
    %78 = vector.extract_strided_slice %61 {offsets = [8, 0], sizes = [8, 32], strides = [1, 1]} : vector<16x32xbf16> to vector<8x32xbf16>
    %79 = vector.extract_strided_slice %62 {offsets = [8, 0], sizes = [8, 32], strides = [1, 1]} : vector<16x32xbf16> to vector<8x32xbf16>
    %80 = vector.extract_strided_slice %78 {offsets = [0, 0], sizes = [8, 8], strides = [1, 1]} : vector<8x32xbf16> to vector<8x8xbf16>
    %81 = vector.extract_strided_slice %79 {offsets = [0, 0], sizes = [8, 8], strides = [1, 1]} : vector<8x32xbf16> to vector<8x8xbf16>
    %cst_22 = arith.constant dense<0.000000e+00> : vector<8x8xf32>
    %82 = tpu.matmul %80, %81, %cst_22 {dimension_numbers = #tpu.dot_dimension_numbers<[1], [1], [0], [0], [0, 0, 1, 0], [], []>} : vector<8x8xbf16>, vector<8x8xbf16>, vector<8x8xf32> -> vector<8x8xf32>
    %83 = vector.extract_strided_slice %78 {offsets = [0, 8], sizes = [8, 8], strides = [1, 1]} : vector<8x32xbf16> to vector<8x8xbf16>
    %84 = vector.extract_strided_slice %79 {offsets = [0, 8], sizes = [8, 8], strides = [1, 1]} : vector<8x32xbf16> to vector<8x8xbf16>
    %cst_23 = arith.constant dense<0.000000e+00> : vector<8x8xf32>
    %85 = tpu.matmul %83, %84, %cst_23 {dimension_numbers = #tpu.dot_dimension_numbers<[1], [1], [0], [0], [0, 0, 1, 0], [], []>} : vector<8x8xbf16>, vector<8x8xbf16>, vector<8x8xf32> -> vector<8x8xf32>
    %86 = vector.extract_strided_slice %78 {offsets = [0, 16], sizes = [8, 8], strides = [1, 1]} : vector<8x32xbf16> to vector<8x8xbf16>
    %87 = vector.extract_strided_slice %79 {offsets = [0, 16], sizes = [8, 8], strides = [1, 1]} : vector<8x32xbf16> to vector<8x8xbf16>
    %cst_24 = arith.constant dense<0.000000e+00> : vector<8x8xf32>
    %88 = tpu.matmul %86, %87, %cst_24 {dimension_numbers = #tpu.dot_dimension_numbers<[1], [1], [0], [0], [0, 0, 1, 0], [], []>} : vector<8x8xbf16>, vector<8x8xbf16>, vector<8x8xf32> -> vector<8x8xf32>
    %89 = vector.extract_strided_slice %78 {offsets = [0, 24], sizes = [8, 8], strides = [1, 1]} : vector<8x32xbf16> to vector<8x8xbf16>
    %90 = vector.extract_strided_slice %79 {offsets = [0, 24], sizes = [8, 8], strides = [1, 1]} : vector<8x32xbf16> to vector<8x8xbf16>
    %cst_25 = arith.constant dense<0.000000e+00> : vector<8x8xf32>
    %91 = tpu.matmul %89, %90, %cst_25 {dimension_numbers = #tpu.dot_dimension_numbers<[1], [1], [0], [0], [0, 0, 1, 0], [], []>} : vector<8x8xbf16>, vector<8x8xbf16>, vector<8x8xf32> -> vector<8x8xf32>
    %92 = tpu.concatenate %68, %71, %74, %77, %82, %85, %88, %91 in 0 : vector<8x8xf32>, vector<8x8xf32>, vector<8x8xf32>, vector<8x8xf32>, vector<8x8xf32>, vector<8x8xf32>, vector<8x8xf32>, vector<8x8xf32> -> vector<64x8xf32>
    %cst_26 = arith.constant 0.353553385 : f32
    %93 = vector.broadcast %cst_26 : f32 to vector<64x8xf32>
    %94 = arith.mulf %92, %93 : vector<64x8xf32>
    %cst_27 = arith.constant 0.000000e+00 : f32
    %95 = vector.broadcast %cst_27 : f32 to vector<64x8xf32>
    %96 = arith.cmpf oeq, %21, %95 : vector<64x8xf32>
    %cst_28 = arith.constant -1.000000e+10 : f32
    %97 = vector.broadcast %cst_28 : f32 to vector<64x8xf32>
    %98 = arith.select %96, %97, %94 : vector<64x8xi1>, vector<64x8xf32>
    %cst_29 = arith.constant dense<0xFF800000> : vector<64xf32>
    %99 = vector.multi_reduction <maximumf>, %98, %cst_29 [1] : vector<64x8xf32> to vector<64xf32>
    %100 = vector.shape_cast %99 : vector<64xf32> to vector<64x1xf32>
    %101 = vector.broadcast %100 : vector<64x1xf32> to vector<64x8xf32>
    %102 = arith.subf %98, %101 : vector<64x8xf32>
    %103 = math.exp %102 : vector<64x8xf32>
    %cst_30 = arith.constant dense<0.000000e+00> : vector<64xf32>
    %104 = vector.multi_reduction <add>, %103, %cst_30 [1] : vector<64x8xf32> to vector<64xf32>
    %105 = vector.shape_cast %104 : vector<64xf32> to vector<64x1xf32>
    %106 = tpu.reciprocal %105 {approx = true} : vector<64x1xf32> -> vector<64x1xf32>
    %107 = vector.broadcast %106 : vector<64x1xf32> to vector<64x8xf32>
    %108 = arith.mulf %103, %107 : vector<64x8xf32>
    %109 = arith.truncf %108 : vector<64x8xf32> to vector<64x8xbf16>
    %110 = vector.extract_strided_slice %63 {offsets = [0, 0], sizes = [8, 32], strides = [1, 1]} : vector<16x32xbf16> to vector<8x32xbf16>
    %111 = vector.extract_strided_slice %109 {offsets = [0, 0], sizes = [8, 8], strides = [1, 1]} : vector<64x8xbf16> to vector<8x8xbf16>
    %112 = vector.extract_strided_slice %110 {offsets = [0, 0], sizes = [8, 8], strides = [1, 1]} : vector<8x32xbf16> to vector<8x8xbf16>
    %cst_31 = arith.constant dense<0.000000e+00> : vector<8x8xf32>
    %113 = tpu.matmul %111, %112, %cst_31 {dimension_numbers = #tpu.dot_dimension_numbers<[1], [0], [0], [1], [0, 0, 1, 1], [], []>} : vector<8x8xbf16>, vector<8x8xbf16>, vector<8x8xf32> -> vector<8x8xf32>
    %114 = vector.extract_strided_slice %109 {offsets = [8, 0], sizes = [8, 8], strides = [1, 1]} : vector<64x8xbf16> to vector<8x8xbf16>
    %115 = vector.extract_strided_slice %110 {offsets = [0, 8], sizes = [8, 8], strides = [1, 1]} : vector<8x32xbf16> to vector<8x8xbf16>
    %cst_32 = arith.constant dense<0.000000e+00> : vector<8x8xf32>
    %116 = tpu.matmul %114, %115, %cst_32 {dimension_numbers = #tpu.dot_dimension_numbers<[1], [0], [0], [1], [0, 0, 1, 1], [], []>} : vector<8x8xbf16>, vector<8x8xbf16>, vector<8x8xf32> -> vector<8x8xf32>
    %117 = vector.extract_strided_slice %109 {offsets = [16, 0], sizes = [8, 8], strides = [1, 1]} : vector<64x8xbf16> to vector<8x8xbf16>
    %118 = vector.extract_strided_slice %110 {offsets = [0, 16], sizes = [8, 8], strides = [1, 1]} : vector<8x32xbf16> to vector<8x8xbf16>
    %cst_33 = arith.constant dense<0.000000e+00> : vector<8x8xf32>
    %119 = tpu.matmul %117, %118, %cst_33 {dimension_numbers = #tpu.dot_dimension_numbers<[1], [0], [0], [1], [0, 0, 1, 1], [], []>} : vector<8x8xbf16>, vector<8x8xbf16>, vector<8x8xf32> -> vector<8x8xf32>
    %120 = vector.extract_strided_slice %109 {offsets = [24, 0], sizes = [8, 8], strides = [1, 1]} : vector<64x8xbf16> to vector<8x8xbf16>
    %121 = vector.extract_strided_slice %110 {offsets = [0, 24], sizes = [8, 8], strides = [1, 1]} : vector<8x32xbf16> to vector<8x8xbf16>
    %cst_34 = arith.constant dense<0.000000e+00> : vector<8x8xf32>
    %122 = tpu.matmul %120, %121, %cst_34 {dimension_numbers = #tpu.dot_dimension_numbers<[1], [0], [0], [1], [0, 0, 1, 1], [], []>} : vector<8x8xbf16>, vector<8x8xbf16>, vector<8x8xf32> -> vector<8x8xf32>
    %123 = tpu.concatenate %113, %116, %119, %122 in 1 : vector<8x8xf32>, vector<8x8xf32>, vector<8x8xf32>, vector<8x8xf32> -> vector<8x32xf32>
    %124 = vector.extract_strided_slice %63 {offsets = [8, 0], sizes = [8, 32], strides = [1, 1]} : vector<16x32xbf16> to vector<8x32xbf16>
    %125 = vector.extract_strided_slice %109 {offsets = [32, 0], sizes = [8, 8], strides = [1, 1]} : vector<64x8xbf16> to vector<8x8xbf16>
    %126 = vector.extract_strided_slice %124 {offsets = [0, 0], sizes = [8, 8], strides = [1, 1]} : vector<8x32xbf16> to vector<8x8xbf16>
    %cst_35 = arith.constant dense<0.000000e+00> : vector<8x8xf32>
    %127 = tpu.matmul %125, %126, %cst_35 {dimension_numbers = #tpu.dot_dimension_numbers<[1], [0], [0], [1], [0, 0, 1, 1], [], []>} : vector<8x8xbf16>, vector<8x8xbf16>, vector<8x8xf32> -> vector<8x8xf32>
    %128 = vector.extract_strided_slice %109 {offsets = [40, 0], sizes = [8, 8], strides = [1, 1]} : vector<64x8xbf16> to vector<8x8xbf16>
    %129 = vector.extract_strided_slice %124 {offsets = [0, 8], sizes = [8, 8], strides = [1, 1]} : vector<8x32xbf16> to vector<8x8xbf16>
    %cst_36 = arith.constant dense<0.000000e+00> : vector<8x8xf32>
    %130 = tpu.matmul %128, %129, %cst_36 {dimension_numbers = #tpu.dot_dimension_numbers<[1], [0], [0], [1], [0, 0, 1, 1], [], []>} : vector<8x8xbf16>, vector<8x8xbf16>, vector<8x8xf32> -> vector<8x8xf32>
    %131 = vector.extract_strided_slice %109 {offsets = [48, 0], sizes = [8, 8], strides = [1, 1]} : vector<64x8xbf16> to vector<8x8xbf16>
    %132 = vector.extract_strided_slice %124 {offsets = [0, 16], sizes = [8, 8], strides = [1, 1]} : vector<8x32xbf16> to vector<8x8xbf16>
    %cst_37 = arith.constant dense<0.000000e+00> : vector<8x8xf32>
    %133 = tpu.matmul %131, %132, %cst_37 {dimension_numbers = #tpu.dot_dimension_numbers<[1], [0], [0], [1], [0, 0, 1, 1], [], []>} : vector<8x8xbf16>, vector<8x8xbf16>, vector<8x8xf32> -> vector<8x8xf32>
    %134 = vector.extract_strided_slice %109 {offsets = [56, 0], sizes = [8, 8], strides = [1, 1]} : vector<64x8xbf16> to vector<8x8xbf16>
    %135 = vector.extract_strided_slice %124 {offsets = [0, 24], sizes = [8, 8], strides = [1, 1]} : vector<8x32xbf16> to vector<8x8xbf16>
    %cst_38 = arith.constant dense<0.000000e+00> : vector<8x8xf32>
    %136 = tpu.matmul %134, %135, %cst_38 {dimension_numbers = #tpu.dot_dimension_numbers<[1], [0], [0], [1], [0, 0, 1, 1], [], []>} : vector<8x8xbf16>, vector<8x8xbf16>, vector<8x8xf32> -> vector<8x8xf32>
    %137 = tpu.concatenate %127, %130, %133, %136 in 1 : vector<8x8xf32>, vector<8x8xf32>, vector<8x8xf32>, vector<8x8xf32> -> vector<8x32xf32>
    %138 = tpu.concatenate %123, %137 in 0 : vector<8x32xf32>, vector<8x32xf32> -> vector<16x32xf32>
    %c0_39 = arith.constant 0 : index
    %c0_40 = arith.constant 0 : index
    %c0_41 = arith.constant 0 : index
    %139 = vector.load %arg10[%c0_39, %c0_40, %c0_41] : memref<2x32x32xbf16, #tpu.memory_space<vmem>>, vector<1x32x32xbf16>
    %140 = vector.shape_cast %139 : vector<1x32x32xbf16> to vector<32x32xbf16>
    %c0_42 = arith.constant 0 : index
    %c0_43 = arith.constant 0 : index
    %c0_44 = arith.constant 0 : index
    %141 = vector.load %arg11[%c0_42, %c0_43, %c0_44] : memref<2x1x32xf32, #tpu.memory_space<vmem>>, vector<1x1x32xf32>
    %142 = vector.shape_cast %141 : vector<1x1x32xf32> to vector<1x32xf32>
    %143 = arith.truncf %138 : vector<16x32xf32> to vector<16x32xbf16>
    %cst_45 = arith.constant dense<0.000000e+00> : vector<16x32xf32>
    %144 = tpu.matmul %143, %140, %cst_45 {dimension_numbers = #tpu.dot_dimension_numbers<[1], [0], [0], [1], [0, 0, 1, 1], [], []>} : vector<16x32xbf16>, vector<32x32xbf16>, vector<16x32xf32> -> vector<16x32xf32>
    %145 = vector.broadcast %142 : vector<1x32xf32> to vector<16x32xf32>
    %146 = arith.addf %144, %145 : vector<16x32xf32>
    %147 = arith.addf %49, %146 : vector<16x32xf32>
    %c0_46 = arith.constant 0 : index
    %c0_47 = arith.constant 0 : index
    %c0_48 = arith.constant 0 : index
    %148 = vector.load %arg12[%c0_46, %c0_47, %c0_48] : memref<2x1x32xf32, #tpu.memory_space<vmem>>, vector<1x1x32xf32>
    %149 = vector.shape_cast %148 : vector<1x1x32xf32> to vector<1x32xf32>
    %c0_49 = arith.constant 0 : index
    %c0_50 = arith.constant 0 : index
    %c0_51 = arith.constant 0 : index
    %150 = vector.load %arg13[%c0_49, %c0_50, %c0_51] : memref<2x1x32xf32, #tpu.memory_space<vmem>>, vector<1x1x32xf32>
    %151 = vector.shape_cast %150 : vector<1x1x32xf32> to vector<1x32xf32>
    %cst_52 = arith.constant dense<0.000000e+00> : vector<16xf32>
    %152 = vector.multi_reduction <add>, %147, %cst_52 [1] : vector<16x32xf32> to vector<16xf32>
    %153 = vector.shape_cast %152 : vector<16xf32> to vector<16x1xf32>
    %cst_53 = arith.constant 3.200000e+01 : f32
    %154 = vector.broadcast %cst_53 : f32 to vector<16x1xf32>
    %155 = arith.divf %153, %154 : vector<16x1xf32>
    %156 = vector.broadcast %155 : vector<16x1xf32> to vector<16x32xf32>
    %157 = arith.subf %147, %156 : vector<16x32xf32>
    %158 = arith.mulf %157, %157 : vector<16x32xf32>
    %cst_54 = arith.constant dense<0.000000e+00> : vector<16xf32>
    %159 = vector.multi_reduction <add>, %158, %cst_54 [1] : vector<16x32xf32> to vector<16xf32>
    %160 = vector.shape_cast %159 : vector<16xf32> to vector<16x1xf32>
    %cst_55 = arith.constant 3.200000e+01 : f32
    %161 = vector.broadcast %cst_55 : f32 to vector<16x1xf32>
    %162 = arith.divf %160, %161 : vector<16x1xf32>
    %163 = vector.broadcast %155 : vector<16x1xf32> to vector<16x32xf32>
    %164 = arith.subf %147, %163 : vector<16x32xf32>
    %cst_56 = arith.constant 9.99999974E-6 : f32
    %165 = vector.broadcast %cst_56 : f32 to vector<16x1xf32>
    %166 = arith.addf %162, %165 : vector<16x1xf32>
    %167 = math.rsqrt %166 : vector<16x1xf32>
    %168 = vector.broadcast %167 : vector<16x1xf32> to vector<16x32xf32>
    %169 = arith.mulf %164, %168 : vector<16x32xf32>
    %170 = vector.broadcast %149 : vector<1x32xf32> to vector<16x32xf32>
    %171 = arith.mulf %169, %170 : vector<16x32xf32>
    %172 = vector.broadcast %151 : vector<1x32xf32> to vector<16x32xf32>
    %173 = arith.addf %171, %172 : vector<16x32xf32>
    %c0_57 = arith.constant 0 : index
    %c0_58 = arith.constant 0 : index
    %c0_59 = arith.constant 0 : index
    %174 = vector.load %arg14[%c0_57, %c0_58, %c0_59] : memref<2x32x64xbf16, #tpu.memory_space<vmem>>, vector<1x32x64xbf16>
    %175 = vector.shape_cast %174 : vector<1x32x64xbf16> to vector<32x64xbf16>
    %c0_60 = arith.constant 0 : index
    %c0_61 = arith.constant 0 : index
    %c0_62 = arith.constant 0 : index
    %176 = vector.load %arg15[%c0_60, %c0_61, %c0_62] : memref<2x1x64xf32, #tpu.memory_space<vmem>>, vector<1x1x64xf32>
    %177 = vector.shape_cast %176 : vector<1x1x64xf32> to vector<1x64xf32>
    %178 = arith.truncf %173 : vector<16x32xf32> to vector<16x32xbf16>
    %cst_63 = arith.constant dense<0.000000e+00> : vector<16x64xf32>
    %179 = tpu.matmul %178, %175, %cst_63 {dimension_numbers = #tpu.dot_dimension_numbers<[1], [0], [0], [1], [0, 0, 1, 1], [], []>} : vector<16x32xbf16>, vector<32x64xbf16>, vector<16x64xf32> -> vector<16x64xf32>
    %180 = vector.broadcast %177 : vector<1x64xf32> to vector<16x64xf32>
    %181 = arith.addf %179, %180 : vector<16x64xf32>
    %cst_64 = arith.constant 0.000000e+00 : f32
    %182 = vector.broadcast %cst_64 : f32 to vector<16x64xf32>
    %183 = arith.maximumf %181, %182 : vector<16x64xf32>
    %c0_65 = arith.constant 0 : index
    %c0_66 = arith.constant 0 : index
    %c0_67 = arith.constant 0 : index
    %184 = vector.load %arg16[%c0_65, %c0_66, %c0_67] : memref<2x64x32xbf16, #tpu.memory_space<vmem>>, vector<1x64x32xbf16>
    %185 = vector.shape_cast %184 : vector<1x64x32xbf16> to vector<64x32xbf16>
    %c0_68 = arith.constant 0 : index
    %c0_69 = arith.constant 0 : index
    %c0_70 = arith.constant 0 : index
    %186 = vector.load %arg17[%c0_68, %c0_69, %c0_70] : memref<2x1x32xf32, #tpu.memory_space<vmem>>, vector<1x1x32xf32>
    %187 = vector.shape_cast %186 : vector<1x1x32xf32> to vector<1x32xf32>
    %188 = arith.truncf %183 : vector<16x64xf32> to vector<16x64xbf16>
    %cst_71 = arith.constant dense<0.000000e+00> : vector<16x32xf32>
    %189 = tpu.matmul %188, %185, %cst_71 {dimension_numbers = #tpu.dot_dimension_numbers<[1], [0], [0], [1], [0, 0, 1, 1], [], []>} : vector<16x64xbf16>, vector<64x32xbf16>, vector<16x32xf32> -> vector<16x32xf32>
    %190 = vector.broadcast %187 : vector<1x32xf32> to vector<16x32xf32>
    %191 = arith.addf %189, %190 : vector<16x32xf32>
    %192 = arith.addf %173, %191 : vector<16x32xf32>
    %c0_72 = arith.constant 0 : index
    %c0_73 = arith.constant 0 : index
    %c0_74 = arith.constant 0 : index
    %193 = vector.load %arg18[%c0_72, %c0_73, %c0_74] : memref<2x1x32xf32, #tpu.memory_space<vmem>>, vector<1x1x32xf32>
    %194 = vector.shape_cast %193 : vector<1x1x32xf32> to vector<1x32xf32>
    %c0_75 = arith.constant 0 : index
    %c0_76 = arith.constant 0 : index
    %c0_77 = arith.constant 0 : index
    %195 = vector.load %arg19[%c0_75, %c0_76, %c0_77] : memref<2x1x32xf32, #tpu.memory_space<vmem>>, vector<1x1x32xf32>
    %196 = vector.shape_cast %195 : vector<1x1x32xf32> to vector<1x32xf32>
    %cst_78 = arith.constant dense<0.000000e+00> : vector<16xf32>
    %197 = vector.multi_reduction <add>, %192, %cst_78 [1] : vector<16x32xf32> to vector<16xf32>
    %198 = vector.shape_cast %197 : vector<16xf32> to vector<16x1xf32>
    %cst_79 = arith.constant 3.200000e+01 : f32
    %199 = vector.broadcast %cst_79 : f32 to vector<16x1xf32>
    %200 = arith.divf %198, %199 : vector<16x1xf32>
    %201 = vector.broadcast %200 : vector<16x1xf32> to vector<16x32xf32>
    %202 = arith.subf %192, %201 : vector<16x32xf32>
    %203 = arith.mulf %202, %202 : vector<16x32xf32>
    %cst_80 = arith.constant dense<0.000000e+00> : vector<16xf32>
    %204 = vector.multi_reduction <add>, %203, %cst_80 [1] : vector<16x32xf32> to vector<16xf32>
    %205 = vector.shape_cast %204 : vector<16xf32> to vector<16x1xf32>
    %cst_81 = arith.constant 3.200000e+01 : f32
    %206 = vector.broadcast %cst_81 : f32 to vector<16x1xf32>
    %207 = arith.divf %205, %206 : vector<16x1xf32>
    %208 = vector.broadcast %200 : vector<16x1xf32> to vector<16x32xf32>
    %209 = arith.subf %192, %208 : vector<16x32xf32>
    %cst_82 = arith.constant 9.99999974E-6 : f32
    %210 = vector.broadcast %cst_82 : f32 to vector<16x1xf32>
    %211 = arith.addf %207, %210 : vector<16x1xf32>
    %212 = math.rsqrt %211 : vector<16x1xf32>
    %213 = vector.broadcast %212 : vector<16x1xf32> to vector<16x32xf32>
    %214 = arith.mulf %209, %213 : vector<16x32xf32>
    %215 = vector.broadcast %194 : vector<1x32xf32> to vector<16x32xf32>
    %216 = arith.mulf %214, %215 : vector<16x32xf32>
    %217 = vector.broadcast %196 : vector<1x32xf32> to vector<16x32xf32>
    %218 = arith.addf %216, %217 : vector<16x32xf32>
    %c1 = arith.constant 1 : index
    %c0_83 = arith.constant 0 : index
    %c0_84 = arith.constant 0 : index
    %219 = vector.load %arg8[%c1, %c0_83, %c0_84] : memref<2x32x96xbf16, #tpu.memory_space<vmem>>, vector<1x32x96xbf16>
    %220 = vector.shape_cast %219 : vector<1x32x96xbf16> to vector<32x96xbf16>
    %c1_85 = arith.constant 1 : index
    %c0_86 = arith.constant 0 : index
    %c0_87 = arith.constant 0 : index
    %221 = vector.load %arg9[%c1_85, %c0_86, %c0_87] : memref<2x1x96xf32, #tpu.memory_space<vmem>>, vector<1x1x96xf32>
    %222 = vector.shape_cast %221 : vector<1x1x96xf32> to vector<1x96xf32>
    %223 = arith.truncf %218 : vector<16x32xf32> to vector<16x32xbf16>
    %cst_88 = arith.constant dense<0.000000e+00> : vector<16x96xf32>
    %224 = tpu.matmul %223, %220, %cst_88 {dimension_numbers = #tpu.dot_dimension_numbers<[1], [0], [0], [1], [0, 0, 1, 1], [], []>} : vector<16x32xbf16>, vector<32x96xbf16>, vector<16x96xf32> -> vector<16x96xf32>
    %225 = vector.broadcast %222 : vector<1x96xf32> to vector<16x96xf32>
    %226 = arith.addf %224, %225 : vector<16x96xf32>
    %227 = vector.extract_strided_slice %226 {offsets = [0, 0], sizes = [16, 32], strides = [1, 1]} : vector<16x96xf32> to vector<16x32xf32>
    %228 = vector.extract_strided_slice %226 {offsets = [0, 32], sizes = [16, 32], strides = [1, 1]} : vector<16x96xf32> to vector<16x32xf32>
    %229 = vector.extract_strided_slice %226 {offsets = [0, 64], sizes = [16, 32], strides = [1, 1]} : vector<16x96xf32> to vector<16x32xf32>
    %230 = arith.truncf %227 : vector<16x32xf32> to vector<16x32xbf16>
    %231 = arith.truncf %228 : vector<16x32xf32> to vector<16x32xbf16>
    %232 = arith.truncf %229 : vector<16x32xf32> to vector<16x32xbf16>
    %233 = vector.extract_strided_slice %230 {offsets = [0, 0], sizes = [8, 32], strides = [1, 1]} : vector<16x32xbf16> to vector<8x32xbf16>
    %234 = vector.extract_strided_slice %231 {offsets = [0, 0], sizes = [8, 32], strides = [1, 1]} : vector<16x32xbf16> to vector<8x32xbf16>
    %235 = vector.extract_strided_slice %233 {offsets = [0, 0], sizes = [8, 8], strides = [1, 1]} : vector<8x32xbf16> to vector<8x8xbf16>
    %236 = vector.extract_strided_slice %234 {offsets = [0, 0], sizes = [8, 8], strides = [1, 1]} : vector<8x32xbf16> to vector<8x8xbf16>
    %cst_89 = arith.constant dense<0.000000e+00> : vector<8x8xf32>
    %237 = tpu.matmul %235, %236, %cst_89 {dimension_numbers = #tpu.dot_dimension_numbers<[1], [1], [0], [0], [0, 0, 1, 0], [], []>} : vector<8x8xbf16>, vector<8x8xbf16>, vector<8x8xf32> -> vector<8x8xf32>
    %238 = vector.extract_strided_slice %233 {offsets = [0, 8], sizes = [8, 8], strides = [1, 1]} : vector<8x32xbf16> to vector<8x8xbf16>
    %239 = vector.extract_strided_slice %234 {offsets = [0, 8], sizes = [8, 8], strides = [1, 1]} : vector<8x32xbf16> to vector<8x8xbf16>
    %cst_90 = arith.constant dense<0.000000e+00> : vector<8x8xf32>
    %240 = tpu.matmul %238, %239, %cst_90 {dimension_numbers = #tpu.dot_dimension_numbers<[1], [1], [0], [0], [0, 0, 1, 0], [], []>} : vector<8x8xbf16>, vector<8x8xbf16>, vector<8x8xf32> -> vector<8x8xf32>
    %241 = vector.extract_strided_slice %233 {offsets = [0, 16], sizes = [8, 8], strides = [1, 1]} : vector<8x32xbf16> to vector<8x8xbf16>
    %242 = vector.extract_strided_slice %234 {offsets = [0, 16], sizes = [8, 8], strides = [1, 1]} : vector<8x32xbf16> to vector<8x8xbf16>
    %cst_91 = arith.constant dense<0.000000e+00> : vector<8x8xf32>
    %243 = tpu.matmul %241, %242, %cst_91 {dimension_numbers = #tpu.dot_dimension_numbers<[1], [1], [0], [0], [0, 0, 1, 0], [], []>} : vector<8x8xbf16>, vector<8x8xbf16>, vector<8x8xf32> -> vector<8x8xf32>
    %244 = vector.extract_strided_slice %233 {offsets = [0, 24], sizes = [8, 8], strides = [1, 1]} : vector<8x32xbf16> to vector<8x8xbf16>
    %245 = vector.extract_strided_slice %234 {offsets = [0, 24], sizes = [8, 8], strides = [1, 1]} : vector<8x32xbf16> to vector<8x8xbf16>
    %cst_92 = arith.constant dense<0.000000e+00> : vector<8x8xf32>
    %246 = tpu.matmul %244, %245, %cst_92 {dimension_numbers = #tpu.dot_dimension_numbers<[1], [1], [0], [0], [0, 0, 1, 0], [], []>} : vector<8x8xbf16>, vector<8x8xbf16>, vector<8x8xf32> -> vector<8x8xf32>
    %247 = vector.extract_strided_slice %230 {offsets = [8, 0], sizes = [8, 32], strides = [1, 1]} : vector<16x32xbf16> to vector<8x32xbf16>
    %248 = vector.extract_strided_slice %231 {offsets = [8, 0], sizes = [8, 32], strides = [1, 1]} : vector<16x32xbf16> to vector<8x32xbf16>
    %249 = vector.extract_strided_slice %247 {offsets = [0, 0], sizes = [8, 8], strides = [1, 1]} : vector<8x32xbf16> to vector<8x8xbf16>
    %250 = vector.extract_strided_slice %248 {offsets = [0, 0], sizes = [8, 8], strides = [1, 1]} : vector<8x32xbf16> to vector<8x8xbf16>
    %cst_93 = arith.constant dense<0.000000e+00> : vector<8x8xf32>
    %251 = tpu.matmul %249, %250, %cst_93 {dimension_numbers = #tpu.dot_dimension_numbers<[1], [1], [0], [0], [0, 0, 1, 0], [], []>} : vector<8x8xbf16>, vector<8x8xbf16>, vector<8x8xf32> -> vector<8x8xf32>
    %252 = vector.extract_strided_slice %247 {offsets = [0, 8], sizes = [8, 8], strides = [1, 1]} : vector<8x32xbf16> to vector<8x8xbf16>
    %253 = vector.extract_strided_slice %248 {offsets = [0, 8], sizes = [8, 8], strides = [1, 1]} : vector<8x32xbf16> to vector<8x8xbf16>
    %cst_94 = arith.constant dense<0.000000e+00> : vector<8x8xf32>
    %254 = tpu.matmul %252, %253, %cst_94 {dimension_numbers = #tpu.dot_dimension_numbers<[1], [1], [0], [0], [0, 0, 1, 0], [], []>} : vector<8x8xbf16>, vector<8x8xbf16>, vector<8x8xf32> -> vector<8x8xf32>
    %255 = vector.extract_strided_slice %247 {offsets = [0, 16], sizes = [8, 8], strides = [1, 1]} : vector<8x32xbf16> to vector<8x8xbf16>
    %256 = vector.extract_strided_slice %248 {offsets = [0, 16], sizes = [8, 8], strides = [1, 1]} : vector<8x32xbf16> to vector<8x8xbf16>
    %cst_95 = arith.constant dense<0.000000e+00> : vector<8x8xf32>
    %257 = tpu.matmul %255, %256, %cst_95 {dimension_numbers = #tpu.dot_dimension_numbers<[1], [1], [0], [0], [0, 0, 1, 0], [], []>} : vector<8x8xbf16>, vector<8x8xbf16>, vector<8x8xf32> -> vector<8x8xf32>
    %258 = vector.extract_strided_slice %247 {offsets = [0, 24], sizes = [8, 8], strides = [1, 1]} : vector<8x32xbf16> to vector<8x8xbf16>
    %259 = vector.extract_strided_slice %248 {offsets = [0, 24], sizes = [8, 8], strides = [1, 1]} : vector<8x32xbf16> to vector<8x8xbf16>
    %cst_96 = arith.constant dense<0.000000e+00> : vector<8x8xf32>
    %260 = tpu.matmul %258, %259, %cst_96 {dimension_numbers = #tpu.dot_dimension_numbers<[1], [1], [0], [0], [0, 0, 1, 0], [], []>} : vector<8x8xbf16>, vector<8x8xbf16>, vector<8x8xf32> -> vector<8x8xf32>
    %261 = tpu.concatenate %237, %240, %243, %246, %251, %254, %257, %260 in 0 : vector<8x8xf32>, vector<8x8xf32>, vector<8x8xf32>, vector<8x8xf32>, vector<8x8xf32>, vector<8x8xf32>, vector<8x8xf32>, vector<8x8xf32> -> vector<64x8xf32>
    %cst_97 = arith.constant 0.353553385 : f32
    %262 = vector.broadcast %cst_97 : f32 to vector<64x8xf32>
    %263 = arith.mulf %261, %262 : vector<64x8xf32>
    %cst_98 = arith.constant 0.000000e+00 : f32
    %264 = vector.broadcast %cst_98 : f32 to vector<64x8xf32>
    %265 = arith.cmpf oeq, %21, %264 : vector<64x8xf32>
    %cst_99 = arith.constant -1.000000e+10 : f32
    %266 = vector.broadcast %cst_99 : f32 to vector<64x8xf32>
    %267 = arith.select %265, %266, %263 : vector<64x8xi1>, vector<64x8xf32>
    %cst_100 = arith.constant dense<0xFF800000> : vector<64xf32>
    %268 = vector.multi_reduction <maximumf>, %267, %cst_100 [1] : vector<64x8xf32> to vector<64xf32>
    %269 = vector.shape_cast %268 : vector<64xf32> to vector<64x1xf32>
    %270 = vector.broadcast %269 : vector<64x1xf32> to vector<64x8xf32>
    %271 = arith.subf %267, %270 : vector<64x8xf32>
    %272 = math.exp %271 : vector<64x8xf32>
    %cst_101 = arith.constant dense<0.000000e+00> : vector<64xf32>
    %273 = vector.multi_reduction <add>, %272, %cst_101 [1] : vector<64x8xf32> to vector<64xf32>
    %274 = vector.shape_cast %273 : vector<64xf32> to vector<64x1xf32>
    %275 = tpu.reciprocal %274 {approx = true} : vector<64x1xf32> -> vector<64x1xf32>
    %276 = vector.broadcast %275 : vector<64x1xf32> to vector<64x8xf32>
    %277 = arith.mulf %272, %276 : vector<64x8xf32>
    %278 = arith.truncf %277 : vector<64x8xf32> to vector<64x8xbf16>
    %279 = vector.extract_strided_slice %232 {offsets = [0, 0], sizes = [8, 32], strides = [1, 1]} : vector<16x32xbf16> to vector<8x32xbf16>
    %280 = vector.extract_strided_slice %278 {offsets = [0, 0], sizes = [8, 8], strides = [1, 1]} : vector<64x8xbf16> to vector<8x8xbf16>
    %281 = vector.extract_strided_slice %279 {offsets = [0, 0], sizes = [8, 8], strides = [1, 1]} : vector<8x32xbf16> to vector<8x8xbf16>
    %cst_102 = arith.constant dense<0.000000e+00> : vector<8x8xf32>
    %282 = tpu.matmul %280, %281, %cst_102 {dimension_numbers = #tpu.dot_dimension_numbers<[1], [0], [0], [1], [0, 0, 1, 1], [], []>} : vector<8x8xbf16>, vector<8x8xbf16>, vector<8x8xf32> -> vector<8x8xf32>
    %283 = vector.extract_strided_slice %278 {offsets = [8, 0], sizes = [8, 8], strides = [1, 1]} : vector<64x8xbf16> to vector<8x8xbf16>
    %284 = vector.extract_strided_slice %279 {offsets = [0, 8], sizes = [8, 8], strides = [1, 1]} : vector<8x32xbf16> to vector<8x8xbf16>
    %cst_103 = arith.constant dense<0.000000e+00> : vector<8x8xf32>
    %285 = tpu.matmul %283, %284, %cst_103 {dimension_numbers = #tpu.dot_dimension_numbers<[1], [0], [0], [1], [0, 0, 1, 1], [], []>} : vector<8x8xbf16>, vector<8x8xbf16>, vector<8x8xf32> -> vector<8x8xf32>
    %286 = vector.extract_strided_slice %278 {offsets = [16, 0], sizes = [8, 8], strides = [1, 1]} : vector<64x8xbf16> to vector<8x8xbf16>
    %287 = vector.extract_strided_slice %279 {offsets = [0, 16], sizes = [8, 8], strides = [1, 1]} : vector<8x32xbf16> to vector<8x8xbf16>
    %cst_104 = arith.constant dense<0.000000e+00> : vector<8x8xf32>
    %288 = tpu.matmul %286, %287, %cst_104 {dimension_numbers = #tpu.dot_dimension_numbers<[1], [0], [0], [1], [0, 0, 1, 1], [], []>} : vector<8x8xbf16>, vector<8x8xbf16>, vector<8x8xf32> -> vector<8x8xf32>
    %289 = vector.extract_strided_slice %278 {offsets = [24, 0], sizes = [8, 8], strides = [1, 1]} : vector<64x8xbf16> to vector<8x8xbf16>
    %290 = vector.extract_strided_slice %279 {offsets = [0, 24], sizes = [8, 8], strides = [1, 1]} : vector<8x32xbf16> to vector<8x8xbf16>
    %cst_105 = arith.constant dense<0.000000e+00> : vector<8x8xf32>
    %291 = tpu.matmul %289, %290, %cst_105 {dimension_numbers = #tpu.dot_dimension_numbers<[1], [0], [0], [1], [0, 0, 1, 1], [], []>} : vector<8x8xbf16>, vector<8x8xbf16>, vector<8x8xf32> -> vector<8x8xf32>
    %292 = tpu.concatenate %282, %285, %288, %291 in 1 : vector<8x8xf32>, vector<8x8xf32>, vector<8x8xf32>, vector<8x8xf32> -> vector<8x32xf32>
    %293 = vector.extract_strided_slice %232 {offsets = [8, 0], sizes = [8, 32], strides = [1, 1]} : vector<16x32xbf16> to vector<8x32xbf16>
    %294 = vector.extract_strided_slice %278 {offsets = [32, 0], sizes = [8, 8], strides = [1, 1]} : vector<64x8xbf16> to vector<8x8xbf16>
    %295 = vector.extract_strided_slice %293 {offsets = [0, 0], sizes = [8, 8], strides = [1, 1]} : vector<8x32xbf16> to vector<8x8xbf16>
    %cst_106 = arith.constant dense<0.000000e+00> : vector<8x8xf32>
    %296 = tpu.matmul %294, %295, %cst_106 {dimension_numbers = #tpu.dot_dimension_numbers<[1], [0], [0], [1], [0, 0, 1, 1], [], []>} : vector<8x8xbf16>, vector<8x8xbf16>, vector<8x8xf32> -> vector<8x8xf32>
    %297 = vector.extract_strided_slice %278 {offsets = [40, 0], sizes = [8, 8], strides = [1, 1]} : vector<64x8xbf16> to vector<8x8xbf16>
    %298 = vector.extract_strided_slice %293 {offsets = [0, 8], sizes = [8, 8], strides = [1, 1]} : vector<8x32xbf16> to vector<8x8xbf16>
    %cst_107 = arith.constant dense<0.000000e+00> : vector<8x8xf32>
    %299 = tpu.matmul %297, %298, %cst_107 {dimension_numbers = #tpu.dot_dimension_numbers<[1], [0], [0], [1], [0, 0, 1, 1], [], []>} : vector<8x8xbf16>, vector<8x8xbf16>, vector<8x8xf32> -> vector<8x8xf32>
    %300 = vector.extract_strided_slice %278 {offsets = [48, 0], sizes = [8, 8], strides = [1, 1]} : vector<64x8xbf16> to vector<8x8xbf16>
    %301 = vector.extract_strided_slice %293 {offsets = [0, 16], sizes = [8, 8], strides = [1, 1]} : vector<8x32xbf16> to vector<8x8xbf16>
    %cst_108 = arith.constant dense<0.000000e+00> : vector<8x8xf32>
    %302 = tpu.matmul %300, %301, %cst_108 {dimension_numbers = #tpu.dot_dimension_numbers<[1], [0], [0], [1], [0, 0, 1, 1], [], []>} : vector<8x8xbf16>, vector<8x8xbf16>, vector<8x8xf32> -> vector<8x8xf32>
    %303 = vector.extract_strided_slice %278 {offsets = [56, 0], sizes = [8, 8], strides = [1, 1]} : vector<64x8xbf16> to vector<8x8xbf16>
    %304 = vector.extract_strided_slice %293 {offsets = [0, 24], sizes = [8, 8], strides = [1, 1]} : vector<8x32xbf16> to vector<8x8xbf16>
    %cst_109 = arith.constant dense<0.000000e+00> : vector<8x8xf32>
    %305 = tpu.matmul %303, %304, %cst_109 {dimension_numbers = #tpu.dot_dimension_numbers<[1], [0], [0], [1], [0, 0, 1, 1], [], []>} : vector<8x8xbf16>, vector<8x8xbf16>, vector<8x8xf32> -> vector<8x8xf32>
    %306 = tpu.concatenate %296, %299, %302, %305 in 1 : vector<8x8xf32>, vector<8x8xf32>, vector<8x8xf32>, vector<8x8xf32> -> vector<8x32xf32>
    %307 = tpu.concatenate %292, %306 in 0 : vector<8x32xf32>, vector<8x32xf32> -> vector<16x32xf32>
    %c1_110 = arith.constant 1 : index
    %c0_111 = arith.constant 0 : index
    %c0_112 = arith.constant 0 : index
    %308 = vector.load %arg10[%c1_110, %c0_111, %c0_112] : memref<2x32x32xbf16, #tpu.memory_space<vmem>>, vector<1x32x32xbf16>
    %309 = vector.shape_cast %308 : vector<1x32x32xbf16> to vector<32x32xbf16>
    %c1_113 = arith.constant 1 : index
    %c0_114 = arith.constant 0 : index
    %c0_115 = arith.constant 0 : index
    %310 = vector.load %arg11[%c1_113, %c0_114, %c0_115] : memref<2x1x32xf32, #tpu.memory_space<vmem>>, vector<1x1x32xf32>
    %311 = vector.shape_cast %310 : vector<1x1x32xf32> to vector<1x32xf32>
    %312 = arith.truncf %307 : vector<16x32xf32> to vector<16x32xbf16>
    %cst_116 = arith.constant dense<0.000000e+00> : vector<16x32xf32>
    %313 = tpu.matmul %312, %309, %cst_116 {dimension_numbers = #tpu.dot_dimension_numbers<[1], [0], [0], [1], [0, 0, 1, 1], [], []>} : vector<16x32xbf16>, vector<32x32xbf16>, vector<16x32xf32> -> vector<16x32xf32>
    %314 = vector.broadcast %311 : vector<1x32xf32> to vector<16x32xf32>
    %315 = arith.addf %313, %314 : vector<16x32xf32>
    %316 = arith.addf %218, %315 : vector<16x32xf32>
    %c1_117 = arith.constant 1 : index
    %c0_118 = arith.constant 0 : index
    %c0_119 = arith.constant 0 : index
    %317 = vector.load %arg12[%c1_117, %c0_118, %c0_119] : memref<2x1x32xf32, #tpu.memory_space<vmem>>, vector<1x1x32xf32>
    %318 = vector.shape_cast %317 : vector<1x1x32xf32> to vector<1x32xf32>
    %c1_120 = arith.constant 1 : index
    %c0_121 = arith.constant 0 : index
    %c0_122 = arith.constant 0 : index
    %319 = vector.load %arg13[%c1_120, %c0_121, %c0_122] : memref<2x1x32xf32, #tpu.memory_space<vmem>>, vector<1x1x32xf32>
    %320 = vector.shape_cast %319 : vector<1x1x32xf32> to vector<1x32xf32>
    %cst_123 = arith.constant dense<0.000000e+00> : vector<16xf32>
    %321 = vector.multi_reduction <add>, %316, %cst_123 [1] : vector<16x32xf32> to vector<16xf32>
    %322 = vector.shape_cast %321 : vector<16xf32> to vector<16x1xf32>
    %cst_124 = arith.constant 3.200000e+01 : f32
    %323 = vector.broadcast %cst_124 : f32 to vector<16x1xf32>
    %324 = arith.divf %322, %323 : vector<16x1xf32>
    %325 = vector.broadcast %324 : vector<16x1xf32> to vector<16x32xf32>
    %326 = arith.subf %316, %325 : vector<16x32xf32>
    %327 = arith.mulf %326, %326 : vector<16x32xf32>
    %cst_125 = arith.constant dense<0.000000e+00> : vector<16xf32>
    %328 = vector.multi_reduction <add>, %327, %cst_125 [1] : vector<16x32xf32> to vector<16xf32>
    %329 = vector.shape_cast %328 : vector<16xf32> to vector<16x1xf32>
    %cst_126 = arith.constant 3.200000e+01 : f32
    %330 = vector.broadcast %cst_126 : f32 to vector<16x1xf32>
    %331 = arith.divf %329, %330 : vector<16x1xf32>
    %332 = vector.broadcast %324 : vector<16x1xf32> to vector<16x32xf32>
    %333 = arith.subf %316, %332 : vector<16x32xf32>
    %cst_127 = arith.constant 9.99999974E-6 : f32
    %334 = vector.broadcast %cst_127 : f32 to vector<16x1xf32>
    %335 = arith.addf %331, %334 : vector<16x1xf32>
    %336 = math.rsqrt %335 : vector<16x1xf32>
    %337 = vector.broadcast %336 : vector<16x1xf32> to vector<16x32xf32>
    %338 = arith.mulf %333, %337 : vector<16x32xf32>
    %339 = vector.broadcast %318 : vector<1x32xf32> to vector<16x32xf32>
    %340 = arith.mulf %338, %339 : vector<16x32xf32>
    %341 = vector.broadcast %320 : vector<1x32xf32> to vector<16x32xf32>
    %342 = arith.addf %340, %341 : vector<16x32xf32>
    %c1_128 = arith.constant 1 : index
    %c0_129 = arith.constant 0 : index
    %c0_130 = arith.constant 0 : index
    %343 = vector.load %arg14[%c1_128, %c0_129, %c0_130] : memref<2x32x64xbf16, #tpu.memory_space<vmem>>, vector<1x32x64xbf16>
    %344 = vector.shape_cast %343 : vector<1x32x64xbf16> to vector<32x64xbf16>
    %c1_131 = arith.constant 1 : index
    %c0_132 = arith.constant 0 : index
    %c0_133 = arith.constant 0 : index
    %345 = vector.load %arg15[%c1_131, %c0_132, %c0_133] : memref<2x1x64xf32, #tpu.memory_space<vmem>>, vector<1x1x64xf32>
    %346 = vector.shape_cast %345 : vector<1x1x64xf32> to vector<1x64xf32>
    %347 = arith.truncf %342 : vector<16x32xf32> to vector<16x32xbf16>
    %cst_134 = arith.constant dense<0.000000e+00> : vector<16x64xf32>
    %348 = tpu.matmul %347, %344, %cst_134 {dimension_numbers = #tpu.dot_dimension_numbers<[1], [0], [0], [1], [0, 0, 1, 1], [], []>} : vector<16x32xbf16>, vector<32x64xbf16>, vector<16x64xf32> -> vector<16x64xf32>
    %349 = vector.broadcast %346 : vector<1x64xf32> to vector<16x64xf32>
    %350 = arith.addf %348, %349 : vector<16x64xf32>
    %cst_135 = arith.constant 0.000000e+00 : f32
    %351 = vector.broadcast %cst_135 : f32 to vector<16x64xf32>
    %352 = arith.maximumf %350, %351 : vector<16x64xf32>
    %c1_136 = arith.constant 1 : index
    %c0_137 = arith.constant 0 : index
    %c0_138 = arith.constant 0 : index
    %353 = vector.load %arg16[%c1_136, %c0_137, %c0_138] : memref<2x64x32xbf16, #tpu.memory_space<vmem>>, vector<1x64x32xbf16>
    %354 = vector.shape_cast %353 : vector<1x64x32xbf16> to vector<64x32xbf16>
    %c1_139 = arith.constant 1 : index
    %c0_140 = arith.constant 0 : index
    %c0_141 = arith.constant 0 : index
    %355 = vector.load %arg17[%c1_139, %c0_140, %c0_141] : memref<2x1x32xf32, #tpu.memory_space<vmem>>, vector<1x1x32xf32>
    %356 = vector.shape_cast %355 : vector<1x1x32xf32> to vector<1x32xf32>
    %357 = arith.truncf %352 : vector<16x64xf32> to vector<16x64xbf16>
    %cst_142 = arith.constant dense<0.000000e+00> : vector<16x32xf32>
    %358 = tpu.matmul %357, %354, %cst_142 {dimension_numbers = #tpu.dot_dimension_numbers<[1], [0], [0], [1], [0, 0, 1, 1], [], []>} : vector<16x64xbf16>, vector<64x32xbf16>, vector<16x32xf32> -> vector<16x32xf32>
    %359 = vector.broadcast %356 : vector<1x32xf32> to vector<16x32xf32>
    %360 = arith.addf %358, %359 : vector<16x32xf32>
    %361 = arith.addf %342, %360 : vector<16x32xf32>
    %c1_143 = arith.constant 1 : index
    %c0_144 = arith.constant 0 : index
    %c0_145 = arith.constant 0 : index
    %362 = vector.load %arg18[%c1_143, %c0_144, %c0_145] : memref<2x1x32xf32, #tpu.memory_space<vmem>>, vector<1x1x32xf32>
    %363 = vector.shape_cast %362 : vector<1x1x32xf32> to vector<1x32xf32>
    %c1_146 = arith.constant 1 : index
    %c0_147 = arith.constant 0 : index
    %c0_148 = arith.constant 0 : index
    %364 = vector.load %arg19[%c1_146, %c0_147, %c0_148] : memref<2x1x32xf32, #tpu.memory_space<vmem>>, vector<1x1x32xf32>
    %365 = vector.shape_cast %364 : vector<1x1x32xf32> to vector<1x32xf32>
    %cst_149 = arith.constant dense<0.000000e+00> : vector<16xf32>
    %366 = vector.multi_reduction <add>, %361, %cst_149 [1] : vector<16x32xf32> to vector<16xf32>
    %367 = vector.shape_cast %366 : vector<16xf32> to vector<16x1xf32>
    %cst_150 = arith.constant 3.200000e+01 : f32
    %368 = vector.broadcast %cst_150 : f32 to vector<16x1xf32>
    %369 = arith.divf %367, %368 : vector<16x1xf32>
    %370 = vector.broadcast %369 : vector<16x1xf32> to vector<16x32xf32>
    %371 = arith.subf %361, %370 : vector<16x32xf32>
    %372 = arith.mulf %371, %371 : vector<16x32xf32>
    %cst_151 = arith.constant dense<0.000000e+00> : vector<16xf32>
    %373 = vector.multi_reduction <add>, %372, %cst_151 [1] : vector<16x32xf32> to vector<16xf32>
    %374 = vector.shape_cast %373 : vector<16xf32> to vector<16x1xf32>
    %cst_152 = arith.constant 3.200000e+01 : f32
    %375 = vector.broadcast %cst_152 : f32 to vector<16x1xf32>
    %376 = arith.divf %374, %375 : vector<16x1xf32>
    %377 = vector.broadcast %369 : vector<16x1xf32> to vector<16x32xf32>
    %378 = arith.subf %361, %377 : vector<16x32xf32>
    %cst_153 = arith.constant 9.99999974E-6 : f32
    %379 = vector.broadcast %cst_153 : f32 to vector<16x1xf32>
    %380 = arith.addf %376, %379 : vector<16x1xf32>
    %381 = math.rsqrt %380 : vector<16x1xf32>
    %382 = vector.broadcast %381 : vector<16x1xf32> to vector<16x32xf32>
    %383 = arith.mulf %378, %382 : vector<16x32xf32>
    %384 = vector.broadcast %363 : vector<1x32xf32> to vector<16x32xf32>
    %385 = arith.mulf %383, %384 : vector<16x32xf32>
    %386 = vector.broadcast %365 : vector<1x32xf32> to vector<16x32xf32>
    %387 = arith.addf %385, %386 : vector<16x32xf32>
    %388 = tpu.iota {dimensions = array<i32: 1>} : vector<16x60xi32>
    %c0_154 = arith.constant 0 : index
    %c0_155 = arith.constant 0 : index
    %389 = vector.load %arg2[%c0_154, %c0_155] : memref<16x1xi32, #tpu.memory_space<vmem>>, vector<16x1xi32>
    %390 = vector.broadcast %389 : vector<16x1xi32> to vector<16x60xi32>
    %391 = arith.cmpi eq, %388, %390 : vector<16x60xi32>
    %392 = arith.extui %391 : vector<16x60xi1> to vector<16x60xi32>
    %393 = arith.sitofp %392 : vector<16x60xi32> to vector<16x60xf32>
    %c0_156 = arith.constant 0 : index
    %c0_157 = arith.constant 0 : index
    %394 = vector.load %arg6[%c0_156, %c0_157] : memref<60x32xf32, #tpu.memory_space<vmem>>, vector<60x32xf32>
    %cst_158 = arith.constant dense<0.000000e+00> : vector<16x32xf32>
    %395 = tpu.matmul %393, %394, %cst_158 {dimension_numbers = #tpu.dot_dimension_numbers<[1], [0], [0], [1], [0, 0, 1, 1], [], []>} : vector<16x60xf32>, vector<60x32xf32>, vector<16x32xf32> -> vector<16x32xf32>
    %cst_159 = arith.constant 5.65685415 : f32
    %396 = vector.broadcast %cst_159 : f32 to vector<16x32xf32>
    %397 = arith.mulf %395, %396 : vector<16x32xf32>
    %c0_160 = arith.constant 0 : index
    %c0_161 = arith.constant 0 : index
    %398 = vector.load %arg7[%c0_160, %c0_161] : memref<16x32xf32, #tpu.memory_space<vmem>>, vector<16x32xf32>
    %399 = vector.extract_strided_slice %398 {offsets = [0, 0], sizes = [8, 32], strides = [1, 1]} : vector<16x32xf32> to vector<8x32xf32>
    %400 = tpu.concatenate %399, %399 in 0 : vector<8x32xf32>, vector<8x32xf32> -> vector<16x32xf32>
    %401 = arith.addf %397, %400 : vector<16x32xf32>
    %c0_162 = arith.constant 0 : index
    %c0_163 = arith.constant 0 : index
    %402 = vector.load %arg28[%c0_162, %c0_163] : memref<32x64xbf16, #tpu.memory_space<vmem>>, vector<32x64xbf16>
    %c0_164 = arith.constant 0 : index
    %c0_165 = arith.constant 0 : index
    %403 = vector.load %arg29[%c0_164, %c0_165] : memref<1x64xf32, #tpu.memory_space<vmem>>, vector<1x64xf32>
    %404 = arith.truncf %387 : vector<16x32xf32> to vector<16x32xbf16>
    %cst_166 = arith.constant dense<0.000000e+00> : vector<16x64xf32>
    %405 = tpu.matmul %404, %402, %cst_166 {dimension_numbers = #tpu.dot_dimension_numbers<[1], [0], [0], [1], [0, 0, 1, 1], [], []>} : vector<16x32xbf16>, vector<32x64xbf16>, vector<16x64xf32> -> vector<16x64xf32>
    %406 = vector.broadcast %403 : vector<1x64xf32> to vector<16x64xf32>
    %407 = arith.addf %405, %406 : vector<16x64xf32>
    %c0_167 = arith.constant 0 : index
    %c0_168 = arith.constant 0 : index
    %408 = vector.load %arg20[%c0_167, %c0_168] : memref<32x96xbf16, #tpu.memory_space<vmem>>, vector<32x96xbf16>
    %c0_169 = arith.constant 0 : index
    %c0_170 = arith.constant 0 : index
    %409 = vector.load %arg21[%c0_169, %c0_170] : memref<1x96xf32, #tpu.memory_space<vmem>>, vector<1x96xf32>
    %410 = arith.truncf %401 : vector<16x32xf32> to vector<16x32xbf16>
    %cst_171 = arith.constant dense<0.000000e+00> : vector<16x96xf32>
    %411 = tpu.matmul %410, %408, %cst_171 {dimension_numbers = #tpu.dot_dimension_numbers<[1], [0], [0], [1], [0, 0, 1, 1], [], []>} : vector<16x32xbf16>, vector<32x96xbf16>, vector<16x96xf32> -> vector<16x96xf32>
    %412 = vector.broadcast %409 : vector<1x96xf32> to vector<16x96xf32>
    %413 = arith.addf %411, %412 : vector<16x96xf32>
    %414 = vector.extract_strided_slice %413 {offsets = [0, 0], sizes = [16, 32], strides = [1, 1]} : vector<16x96xf32> to vector<16x32xf32>
    %415 = vector.extract_strided_slice %413 {offsets = [0, 32], sizes = [16, 32], strides = [1, 1]} : vector<16x96xf32> to vector<16x32xf32>
    %416 = vector.extract_strided_slice %413 {offsets = [0, 64], sizes = [16, 32], strides = [1, 1]} : vector<16x96xf32> to vector<16x32xf32>
    %417 = arith.truncf %414 : vector<16x32xf32> to vector<16x32xbf16>
    %418 = arith.truncf %415 : vector<16x32xf32> to vector<16x32xbf16>
    %419 = arith.truncf %416 : vector<16x32xf32> to vector<16x32xbf16>
    %420 = vector.extract_strided_slice %417 {offsets = [0, 0], sizes = [8, 32], strides = [1, 1]} : vector<16x32xbf16> to vector<8x32xbf16>
    %421 = vector.extract_strided_slice %418 {offsets = [0, 0], sizes = [8, 32], strides = [1, 1]} : vector<16x32xbf16> to vector<8x32xbf16>
    %422 = vector.extract_strided_slice %420 {offsets = [0, 0], sizes = [8, 8], strides = [1, 1]} : vector<8x32xbf16> to vector<8x8xbf16>
    %423 = vector.extract_strided_slice %421 {offsets = [0, 0], sizes = [8, 8], strides = [1, 1]} : vector<8x32xbf16> to vector<8x8xbf16>
    %cst_172 = arith.constant dense<0.000000e+00> : vector<8x8xf32>
    %424 = tpu.matmul %422, %423, %cst_172 {dimension_numbers = #tpu.dot_dimension_numbers<[1], [1], [0], [0], [0, 0, 1, 0], [], []>} : vector<8x8xbf16>, vector<8x8xbf16>, vector<8x8xf32> -> vector<8x8xf32>
    %425 = vector.extract_strided_slice %420 {offsets = [0, 8], sizes = [8, 8], strides = [1, 1]} : vector<8x32xbf16> to vector<8x8xbf16>
    %426 = vector.extract_strided_slice %421 {offsets = [0, 8], sizes = [8, 8], strides = [1, 1]} : vector<8x32xbf16> to vector<8x8xbf16>
    %cst_173 = arith.constant dense<0.000000e+00> : vector<8x8xf32>
    %427 = tpu.matmul %425, %426, %cst_173 {dimension_numbers = #tpu.dot_dimension_numbers<[1], [1], [0], [0], [0, 0, 1, 0], [], []>} : vector<8x8xbf16>, vector<8x8xbf16>, vector<8x8xf32> -> vector<8x8xf32>
    %428 = vector.extract_strided_slice %420 {offsets = [0, 16], sizes = [8, 8], strides = [1, 1]} : vector<8x32xbf16> to vector<8x8xbf16>
    %429 = vector.extract_strided_slice %421 {offsets = [0, 16], sizes = [8, 8], strides = [1, 1]} : vector<8x32xbf16> to vector<8x8xbf16>
    %cst_174 = arith.constant dense<0.000000e+00> : vector<8x8xf32>
    %430 = tpu.matmul %428, %429, %cst_174 {dimension_numbers = #tpu.dot_dimension_numbers<[1], [1], [0], [0], [0, 0, 1, 0], [], []>} : vector<8x8xbf16>, vector<8x8xbf16>, vector<8x8xf32> -> vector<8x8xf32>
    %431 = vector.extract_strided_slice %420 {offsets = [0, 24], sizes = [8, 8], strides = [1, 1]} : vector<8x32xbf16> to vector<8x8xbf16>
    %432 = vector.extract_strided_slice %421 {offsets = [0, 24], sizes = [8, 8], strides = [1, 1]} : vector<8x32xbf16> to vector<8x8xbf16>
    %cst_175 = arith.constant dense<0.000000e+00> : vector<8x8xf32>
    %433 = tpu.matmul %431, %432, %cst_175 {dimension_numbers = #tpu.dot_dimension_numbers<[1], [1], [0], [0], [0, 0, 1, 0], [], []>} : vector<8x8xbf16>, vector<8x8xbf16>, vector<8x8xf32> -> vector<8x8xf32>
    %434 = vector.extract_strided_slice %417 {offsets = [8, 0], sizes = [8, 32], strides = [1, 1]} : vector<16x32xbf16> to vector<8x32xbf16>
    %435 = vector.extract_strided_slice %418 {offsets = [8, 0], sizes = [8, 32], strides = [1, 1]} : vector<16x32xbf16> to vector<8x32xbf16>
    %436 = vector.extract_strided_slice %434 {offsets = [0, 0], sizes = [8, 8], strides = [1, 1]} : vector<8x32xbf16> to vector<8x8xbf16>
    %437 = vector.extract_strided_slice %435 {offsets = [0, 0], sizes = [8, 8], strides = [1, 1]} : vector<8x32xbf16> to vector<8x8xbf16>
    %cst_176 = arith.constant dense<0.000000e+00> : vector<8x8xf32>
    %438 = tpu.matmul %436, %437, %cst_176 {dimension_numbers = #tpu.dot_dimension_numbers<[1], [1], [0], [0], [0, 0, 1, 0], [], []>} : vector<8x8xbf16>, vector<8x8xbf16>, vector<8x8xf32> -> vector<8x8xf32>
    %439 = vector.extract_strided_slice %434 {offsets = [0, 8], sizes = [8, 8], strides = [1, 1]} : vector<8x32xbf16> to vector<8x8xbf16>
    %440 = vector.extract_strided_slice %435 {offsets = [0, 8], sizes = [8, 8], strides = [1, 1]} : vector<8x32xbf16> to vector<8x8xbf16>
    %cst_177 = arith.constant dense<0.000000e+00> : vector<8x8xf32>
    %441 = tpu.matmul %439, %440, %cst_177 {dimension_numbers = #tpu.dot_dimension_numbers<[1], [1], [0], [0], [0, 0, 1, 0], [], []>} : vector<8x8xbf16>, vector<8x8xbf16>, vector<8x8xf32> -> vector<8x8xf32>
    %442 = vector.extract_strided_slice %434 {offsets = [0, 16], sizes = [8, 8], strides = [1, 1]} : vector<8x32xbf16> to vector<8x8xbf16>
    %443 = vector.extract_strided_slice %435 {offsets = [0, 16], sizes = [8, 8], strides = [1, 1]} : vector<8x32xbf16> to vector<8x8xbf16>
    %cst_178 = arith.constant dense<0.000000e+00> : vector<8x8xf32>
    %444 = tpu.matmul %442, %443, %cst_178 {dimension_numbers = #tpu.dot_dimension_numbers<[1], [1], [0], [0], [0, 0, 1, 0], [], []>} : vector<8x8xbf16>, vector<8x8xbf16>, vector<8x8xf32> -> vector<8x8xf32>
    %445 = vector.extract_strided_slice %434 {offsets = [0, 24], sizes = [8, 8], strides = [1, 1]} : vector<8x32xbf16> to vector<8x8xbf16>
    %446 = vector.extract_strided_slice %435 {offsets = [0, 24], sizes = [8, 8], strides = [1, 1]} : vector<8x32xbf16> to vector<8x8xbf16>
    %cst_179 = arith.constant dense<0.000000e+00> : vector<8x8xf32>
    %447 = tpu.matmul %445, %446, %cst_179 {dimension_numbers = #tpu.dot_dimension_numbers<[1], [1], [0], [0], [0, 0, 1, 0], [], []>} : vector<8x8xbf16>, vector<8x8xbf16>, vector<8x8xf32> -> vector<8x8xf32>
    %448 = tpu.concatenate %424, %427, %430, %433, %438, %441, %444, %447 in 0 : vector<8x8xf32>, vector<8x8xf32>, vector<8x8xf32>, vector<8x8xf32>, vector<8x8xf32>, vector<8x8xf32>, vector<8x8xf32>, vector<8x8xf32> -> vector<64x8xf32>
    %cst_180 = arith.constant 0.353553385 : f32
    %449 = vector.broadcast %cst_180 : f32 to vector<64x8xf32>
    %450 = arith.mulf %448, %449 : vector<64x8xf32>
    %cst_181 = arith.constant 0.000000e+00 : f32
    %451 = vector.broadcast %cst_181 : f32 to vector<64x8xf32>
    %452 = arith.cmpf oeq, %35, %451 : vector<64x8xf32>
    %cst_182 = arith.constant -1.000000e+10 : f32
    %453 = vector.broadcast %cst_182 : f32 to vector<64x8xf32>
    %454 = arith.select %452, %453, %450 : vector<64x8xi1>, vector<64x8xf32>
    %cst_183 = arith.constant dense<0xFF800000> : vector<64xf32>
    %455 = vector.multi_reduction <maximumf>, %454, %cst_183 [1] : vector<64x8xf32> to vector<64xf32>
    %456 = vector.shape_cast %455 : vector<64xf32> to vector<64x1xf32>
    %457 = vector.broadcast %456 : vector<64x1xf32> to vector<64x8xf32>
    %458 = arith.subf %454, %457 : vector<64x8xf32>
    %459 = math.exp %458 : vector<64x8xf32>
    %cst_184 = arith.constant dense<0.000000e+00> : vector<64xf32>
    %460 = vector.multi_reduction <add>, %459, %cst_184 [1] : vector<64x8xf32> to vector<64xf32>
    %461 = vector.shape_cast %460 : vector<64xf32> to vector<64x1xf32>
    %462 = tpu.reciprocal %461 {approx = true} : vector<64x1xf32> -> vector<64x1xf32>
    %463 = vector.broadcast %462 : vector<64x1xf32> to vector<64x8xf32>
    %464 = arith.mulf %459, %463 : vector<64x8xf32>
    %465 = arith.truncf %464 : vector<64x8xf32> to vector<64x8xbf16>
    %466 = vector.extract_strided_slice %419 {offsets = [0, 0], sizes = [8, 32], strides = [1, 1]} : vector<16x32xbf16> to vector<8x32xbf16>
    %467 = vector.extract_strided_slice %465 {offsets = [0, 0], sizes = [8, 8], strides = [1, 1]} : vector<64x8xbf16> to vector<8x8xbf16>
    %468 = vector.extract_strided_slice %466 {offsets = [0, 0], sizes = [8, 8], strides = [1, 1]} : vector<8x32xbf16> to vector<8x8xbf16>
    %cst_185 = arith.constant dense<0.000000e+00> : vector<8x8xf32>
    %469 = tpu.matmul %467, %468, %cst_185 {dimension_numbers = #tpu.dot_dimension_numbers<[1], [0], [0], [1], [0, 0, 1, 1], [], []>} : vector<8x8xbf16>, vector<8x8xbf16>, vector<8x8xf32> -> vector<8x8xf32>
    %470 = vector.extract_strided_slice %465 {offsets = [8, 0], sizes = [8, 8], strides = [1, 1]} : vector<64x8xbf16> to vector<8x8xbf16>
    %471 = vector.extract_strided_slice %466 {offsets = [0, 8], sizes = [8, 8], strides = [1, 1]} : vector<8x32xbf16> to vector<8x8xbf16>
    %cst_186 = arith.constant dense<0.000000e+00> : vector<8x8xf32>
    %472 = tpu.matmul %470, %471, %cst_186 {dimension_numbers = #tpu.dot_dimension_numbers<[1], [0], [0], [1], [0, 0, 1, 1], [], []>} : vector<8x8xbf16>, vector<8x8xbf16>, vector<8x8xf32> -> vector<8x8xf32>
    %473 = vector.extract_strided_slice %465 {offsets = [16, 0], sizes = [8, 8], strides = [1, 1]} : vector<64x8xbf16> to vector<8x8xbf16>
    %474 = vector.extract_strided_slice %466 {offsets = [0, 16], sizes = [8, 8], strides = [1, 1]} : vector<8x32xbf16> to vector<8x8xbf16>
    %cst_187 = arith.constant dense<0.000000e+00> : vector<8x8xf32>
    %475 = tpu.matmul %473, %474, %cst_187 {dimension_numbers = #tpu.dot_dimension_numbers<[1], [0], [0], [1], [0, 0, 1, 1], [], []>} : vector<8x8xbf16>, vector<8x8xbf16>, vector<8x8xf32> -> vector<8x8xf32>
    %476 = vector.extract_strided_slice %465 {offsets = [24, 0], sizes = [8, 8], strides = [1, 1]} : vector<64x8xbf16> to vector<8x8xbf16>
    %477 = vector.extract_strided_slice %466 {offsets = [0, 24], sizes = [8, 8], strides = [1, 1]} : vector<8x32xbf16> to vector<8x8xbf16>
    %cst_188 = arith.constant dense<0.000000e+00> : vector<8x8xf32>
    %478 = tpu.matmul %476, %477, %cst_188 {dimension_numbers = #tpu.dot_dimension_numbers<[1], [0], [0], [1], [0, 0, 1, 1], [], []>} : vector<8x8xbf16>, vector<8x8xbf16>, vector<8x8xf32> -> vector<8x8xf32>
    %479 = tpu.concatenate %469, %472, %475, %478 in 1 : vector<8x8xf32>, vector<8x8xf32>, vector<8x8xf32>, vector<8x8xf32> -> vector<8x32xf32>
    %480 = vector.extract_strided_slice %419 {offsets = [8, 0], sizes = [8, 32], strides = [1, 1]} : vector<16x32xbf16> to vector<8x32xbf16>
    %481 = vector.extract_strided_slice %465 {offsets = [32, 0], sizes = [8, 8], strides = [1, 1]} : vector<64x8xbf16> to vector<8x8xbf16>
    %482 = vector.extract_strided_slice %480 {offsets = [0, 0], sizes = [8, 8], strides = [1, 1]} : vector<8x32xbf16> to vector<8x8xbf16>
    %cst_189 = arith.constant dense<0.000000e+00> : vector<8x8xf32>
    %483 = tpu.matmul %481, %482, %cst_189 {dimension_numbers = #tpu.dot_dimension_numbers<[1], [0], [0], [1], [0, 0, 1, 1], [], []>} : vector<8x8xbf16>, vector<8x8xbf16>, vector<8x8xf32> -> vector<8x8xf32>
    %484 = vector.extract_strided_slice %465 {offsets = [40, 0], sizes = [8, 8], strides = [1, 1]} : vector<64x8xbf16> to vector<8x8xbf16>
    %485 = vector.extract_strided_slice %480 {offsets = [0, 8], sizes = [8, 8], strides = [1, 1]} : vector<8x32xbf16> to vector<8x8xbf16>
    %cst_190 = arith.constant dense<0.000000e+00> : vector<8x8xf32>
    %486 = tpu.matmul %484, %485, %cst_190 {dimension_numbers = #tpu.dot_dimension_numbers<[1], [0], [0], [1], [0, 0, 1, 1], [], []>} : vector<8x8xbf16>, vector<8x8xbf16>, vector<8x8xf32> -> vector<8x8xf32>
    %487 = vector.extract_strided_slice %465 {offsets = [48, 0], sizes = [8, 8], strides = [1, 1]} : vector<64x8xbf16> to vector<8x8xbf16>
    %488 = vector.extract_strided_slice %480 {offsets = [0, 16], sizes = [8, 8], strides = [1, 1]} : vector<8x32xbf16> to vector<8x8xbf16>
    %cst_191 = arith.constant dense<0.000000e+00> : vector<8x8xf32>
    %489 = tpu.matmul %487, %488, %cst_191 {dimension_numbers = #tpu.dot_dimension_numbers<[1], [0], [0], [1], [0, 0, 1, 1], [], []>} : vector<8x8xbf16>, vector<8x8xbf16>, vector<8x8xf32> -> vector<8x8xf32>
    %490 = vector.extract_strided_slice %465 {offsets = [56, 0], sizes = [8, 8], strides = [1, 1]} : vector<64x8xbf16> to vector<8x8xbf16>
    %491 = vector.extract_strided_slice %480 {offsets = [0, 24], sizes = [8, 8], strides = [1, 1]} : vector<8x32xbf16> to vector<8x8xbf16>
    %cst_192 = arith.constant dense<0.000000e+00> : vector<8x8xf32>
    %492 = tpu.matmul %490, %491, %cst_192 {dimension_numbers = #tpu.dot_dimension_numbers<[1], [0], [0], [1], [0, 0, 1, 1], [], []>} : vector<8x8xbf16>, vector<8x8xbf16>, vector<8x8xf32> -> vector<8x8xf32>
    %493 = tpu.concatenate %483, %486, %489, %492 in 1 : vector<8x8xf32>, vector<8x8xf32>, vector<8x8xf32>, vector<8x8xf32> -> vector<8x32xf32>
    %494 = tpu.concatenate %479, %493 in 0 : vector<8x32xf32>, vector<8x32xf32> -> vector<16x32xf32>
    %c0_193 = arith.constant 0 : index
    %c0_194 = arith.constant 0 : index
    %495 = vector.load %arg22[%c0_193, %c0_194] : memref<32x32xbf16, #tpu.memory_space<vmem>>, vector<32x32xbf16>
    %c0_195 = arith.constant 0 : index
    %c0_196 = arith.constant 0 : index
    %496 = vector.load %arg23[%c0_195, %c0_196] : memref<1x32xf32, #tpu.memory_space<vmem>>, vector<1x32xf32>
    %497 = arith.truncf %494 : vector<16x32xf32> to vector<16x32xbf16>
    %cst_197 = arith.constant dense<0.000000e+00> : vector<16x32xf32>
    %498 = tpu.matmul %497, %495, %cst_197 {dimension_numbers = #tpu.dot_dimension_numbers<[1], [0], [0], [1], [0, 0, 1, 1], [], []>} : vector<16x32xbf16>, vector<32x32xbf16>, vector<16x32xf32> -> vector<16x32xf32>
    %499 = vector.broadcast %496 : vector<1x32xf32> to vector<16x32xf32>
    %500 = arith.addf %498, %499 : vector<16x32xf32>
    %501 = arith.addf %401, %500 : vector<16x32xf32>
    %c0_198 = arith.constant 0 : index
    %c0_199 = arith.constant 0 : index
    %502 = vector.load %arg24[%c0_198, %c0_199] : memref<1x32xf32, #tpu.memory_space<vmem>>, vector<1x32xf32>
    %c0_200 = arith.constant 0 : index
    %c0_201 = arith.constant 0 : index
    %503 = vector.load %arg25[%c0_200, %c0_201] : memref<1x32xf32, #tpu.memory_space<vmem>>, vector<1x32xf32>
    %cst_202 = arith.constant dense<0.000000e+00> : vector<16xf32>
    %504 = vector.multi_reduction <add>, %501, %cst_202 [1] : vector<16x32xf32> to vector<16xf32>
    %505 = vector.shape_cast %504 : vector<16xf32> to vector<16x1xf32>
    %cst_203 = arith.constant 3.200000e+01 : f32
    %506 = vector.broadcast %cst_203 : f32 to vector<16x1xf32>
    %507 = arith.divf %505, %506 : vector<16x1xf32>
    %508 = vector.broadcast %507 : vector<16x1xf32> to vector<16x32xf32>
    %509 = arith.subf %501, %508 : vector<16x32xf32>
    %510 = arith.mulf %509, %509 : vector<16x32xf32>
    %cst_204 = arith.constant dense<0.000000e+00> : vector<16xf32>
    %511 = vector.multi_reduction <add>, %510, %cst_204 [1] : vector<16x32xf32> to vector<16xf32>
    %512 = vector.shape_cast %511 : vector<16xf32> to vector<16x1xf32>
    %cst_205 = arith.constant 3.200000e+01 : f32
    %513 = vector.broadcast %cst_205 : f32 to vector<16x1xf32>
    %514 = arith.divf %512, %513 : vector<16x1xf32>
    %515 = vector.broadcast %507 : vector<16x1xf32> to vector<16x32xf32>
    %516 = arith.subf %501, %515 : vector<16x32xf32>
    %cst_206 = arith.constant 9.99999974E-6 : f32
    %517 = vector.broadcast %cst_206 : f32 to vector<16x1xf32>
    %518 = arith.addf %514, %517 : vector<16x1xf32>
    %519 = math.rsqrt %518 : vector<16x1xf32>
    %520 = vector.broadcast %519 : vector<16x1xf32> to vector<16x32xf32>
    %521 = arith.mulf %516, %520 : vector<16x32xf32>
    %522 = vector.broadcast %502 : vector<1x32xf32> to vector<16x32xf32>
    %523 = arith.mulf %521, %522 : vector<16x32xf32>
    %524 = vector.broadcast %503 : vector<1x32xf32> to vector<16x32xf32>
    %525 = arith.addf %523, %524 : vector<16x32xf32>
    %c0_207 = arith.constant 0 : index
    %c0_208 = arith.constant 0 : index
    %526 = vector.load %arg26[%c0_207, %c0_208] : memref<32x32xbf16, #tpu.memory_space<vmem>>, vector<32x32xbf16>
    %c0_209 = arith.constant 0 : index
    %c0_210 = arith.constant 0 : index
    %527 = vector.load %arg27[%c0_209, %c0_210] : memref<1x32xf32, #tpu.memory_space<vmem>>, vector<1x32xf32>
    %528 = arith.truncf %525 : vector<16x32xf32> to vector<16x32xbf16>
    %cst_211 = arith.constant dense<0.000000e+00> : vector<16x32xf32>
    %529 = tpu.matmul %528, %526, %cst_211 {dimension_numbers = #tpu.dot_dimension_numbers<[1], [0], [0], [1], [0, 0, 1, 1], [], []>} : vector<16x32xbf16>, vector<32x32xbf16>, vector<16x32xf32> -> vector<16x32xf32>
    %530 = vector.broadcast %527 : vector<1x32xf32> to vector<16x32xf32>
    %531 = arith.addf %529, %530 : vector<16x32xf32>
    %532 = vector.extract_strided_slice %407 {offsets = [0, 0], sizes = [16, 32], strides = [1, 1]} : vector<16x64xf32> to vector<16x32xf32>
    %533 = vector.extract_strided_slice %407 {offsets = [0, 32], sizes = [16, 32], strides = [1, 1]} : vector<16x64xf32> to vector<16x32xf32>
    %534 = arith.truncf %531 : vector<16x32xf32> to vector<16x32xbf16>
    %535 = arith.truncf %532 : vector<16x32xf32> to vector<16x32xbf16>
    %536 = arith.truncf %533 : vector<16x32xf32> to vector<16x32xbf16>
    %537 = vector.extract_strided_slice %534 {offsets = [0, 0], sizes = [8, 32], strides = [1, 1]} : vector<16x32xbf16> to vector<8x32xbf16>
    %538 = vector.extract_strided_slice %535 {offsets = [0, 0], sizes = [8, 32], strides = [1, 1]} : vector<16x32xbf16> to vector<8x32xbf16>
    %539 = vector.extract_strided_slice %537 {offsets = [0, 0], sizes = [8, 8], strides = [1, 1]} : vector<8x32xbf16> to vector<8x8xbf16>
    %540 = vector.extract_strided_slice %538 {offsets = [0, 0], sizes = [8, 8], strides = [1, 1]} : vector<8x32xbf16> to vector<8x8xbf16>
    %cst_212 = arith.constant dense<0.000000e+00> : vector<8x8xf32>
    %541 = tpu.matmul %539, %540, %cst_212 {dimension_numbers = #tpu.dot_dimension_numbers<[1], [1], [0], [0], [0, 0, 1, 0], [], []>} : vector<8x8xbf16>, vector<8x8xbf16>, vector<8x8xf32> -> vector<8x8xf32>
    %542 = vector.extract_strided_slice %537 {offsets = [0, 8], sizes = [8, 8], strides = [1, 1]} : vector<8x32xbf16> to vector<8x8xbf16>
    %543 = vector.extract_strided_slice %538 {offsets = [0, 8], sizes = [8, 8], strides = [1, 1]} : vector<8x32xbf16> to vector<8x8xbf16>
    %cst_213 = arith.constant dense<0.000000e+00> : vector<8x8xf32>
    %544 = tpu.matmul %542, %543, %cst_213 {dimension_numbers = #tpu.dot_dimension_numbers<[1], [1], [0], [0], [0, 0, 1, 0], [], []>} : vector<8x8xbf16>, vector<8x8xbf16>, vector<8x8xf32> -> vector<8x8xf32>
    %545 = vector.extract_strided_slice %537 {offsets = [0, 16], sizes = [8, 8], strides = [1, 1]} : vector<8x32xbf16> to vector<8x8xbf16>
    %546 = vector.extract_strided_slice %538 {offsets = [0, 16], sizes = [8, 8], strides = [1, 1]} : vector<8x32xbf16> to vector<8x8xbf16>
    %cst_214 = arith.constant dense<0.000000e+00> : vector<8x8xf32>
    %547 = tpu.matmul %545, %546, %cst_214 {dimension_numbers = #tpu.dot_dimension_numbers<[1], [1], [0], [0], [0, 0, 1, 0], [], []>} : vector<8x8xbf16>, vector<8x8xbf16>, vector<8x8xf32> -> vector<8x8xf32>
    %548 = vector.extract_strided_slice %537 {offsets = [0, 24], sizes = [8, 8], strides = [1, 1]} : vector<8x32xbf16> to vector<8x8xbf16>
    %549 = vector.extract_strided_slice %538 {offsets = [0, 24], sizes = [8, 8], strides = [1, 1]} : vector<8x32xbf16> to vector<8x8xbf16>
    %cst_215 = arith.constant dense<0.000000e+00> : vector<8x8xf32>
    %550 = tpu.matmul %548, %549, %cst_215 {dimension_numbers = #tpu.dot_dimension_numbers<[1], [1], [0], [0], [0, 0, 1, 0], [], []>} : vector<8x8xbf16>, vector<8x8xbf16>, vector<8x8xf32> -> vector<8x8xf32>
    %551 = vector.extract_strided_slice %534 {offsets = [8, 0], sizes = [8, 32], strides = [1, 1]} : vector<16x32xbf16> to vector<8x32xbf16>
    %552 = vector.extract_strided_slice %535 {offsets = [8, 0], sizes = [8, 32], strides = [1, 1]} : vector<16x32xbf16> to vector<8x32xbf16>
    %553 = vector.extract_strided_slice %551 {offsets = [0, 0], sizes = [8, 8], strides = [1, 1]} : vector<8x32xbf16> to vector<8x8xbf16>
    %554 = vector.extract_strided_slice %552 {offsets = [0, 0], sizes = [8, 8], strides = [1, 1]} : vector<8x32xbf16> to vector<8x8xbf16>
    %cst_216 = arith.constant dense<0.000000e+00> : vector<8x8xf32>
    %555 = tpu.matmul %553, %554, %cst_216 {dimension_numbers = #tpu.dot_dimension_numbers<[1], [1], [0], [0], [0, 0, 1, 0], [], []>} : vector<8x8xbf16>, vector<8x8xbf16>, vector<8x8xf32> -> vector<8x8xf32>
    %556 = vector.extract_strided_slice %551 {offsets = [0, 8], sizes = [8, 8], strides = [1, 1]} : vector<8x32xbf16> to vector<8x8xbf16>
    %557 = vector.extract_strided_slice %552 {offsets = [0, 8], sizes = [8, 8], strides = [1, 1]} : vector<8x32xbf16> to vector<8x8xbf16>
    %cst_217 = arith.constant dense<0.000000e+00> : vector<8x8xf32>
    %558 = tpu.matmul %556, %557, %cst_217 {dimension_numbers = #tpu.dot_dimension_numbers<[1], [1], [0], [0], [0, 0, 1, 0], [], []>} : vector<8x8xbf16>, vector<8x8xbf16>, vector<8x8xf32> -> vector<8x8xf32>
    %559 = vector.extract_strided_slice %551 {offsets = [0, 16], sizes = [8, 8], strides = [1, 1]} : vector<8x32xbf16> to vector<8x8xbf16>
    %560 = vector.extract_strided_slice %552 {offsets = [0, 16], sizes = [8, 8], strides = [1, 1]} : vector<8x32xbf16> to vector<8x8xbf16>
    %cst_218 = arith.constant dense<0.000000e+00> : vector<8x8xf32>
    %561 = tpu.matmul %559, %560, %cst_218 {dimension_numbers = #tpu.dot_dimension_numbers<[1], [1], [0], [0], [0, 0, 1, 0], [], []>} : vector<8x8xbf16>, vector<8x8xbf16>, vector<8x8xf32> -> vector<8x8xf32>
    %562 = vector.extract_strided_slice %551 {offsets = [0, 24], sizes = [8, 8], strides = [1, 1]} : vector<8x32xbf16> to vector<8x8xbf16>
    %563 = vector.extract_strided_slice %552 {offsets = [0, 24], sizes = [8, 8], strides = [1, 1]} : vector<8x32xbf16> to vector<8x8xbf16>
    %cst_219 = arith.constant dense<0.000000e+00> : vector<8x8xf32>
    %564 = tpu.matmul %562, %563, %cst_219 {dimension_numbers = #tpu.dot_dimension_numbers<[1], [1], [0], [0], [0, 0, 1, 0], [], []>} : vector<8x8xbf16>, vector<8x8xbf16>, vector<8x8xf32> -> vector<8x8xf32>
    %565 = tpu.concatenate %541, %544, %547, %550, %555, %558, %561, %564 in 0 : vector<8x8xf32>, vector<8x8xf32>, vector<8x8xf32>, vector<8x8xf32>, vector<8x8xf32>, vector<8x8xf32>, vector<8x8xf32>, vector<8x8xf32> -> vector<64x8xf32>
    %cst_220 = arith.constant 0.353553385 : f32
    %566 = vector.broadcast %cst_220 : f32 to vector<64x8xf32>
    %567 = arith.mulf %565, %566 : vector<64x8xf32>
    %cst_221 = arith.constant 0.000000e+00 : f32
    %568 = vector.broadcast %cst_221 : f32 to vector<64x8xf32>
    %569 = arith.cmpf oeq, %28, %568 : vector<64x8xf32>
    %cst_222 = arith.constant -1.000000e+10 : f32
    %570 = vector.broadcast %cst_222 : f32 to vector<64x8xf32>
    %571 = arith.select %569, %570, %567 : vector<64x8xi1>, vector<64x8xf32>
    %cst_223 = arith.constant dense<0xFF800000> : vector<64xf32>
    %572 = vector.multi_reduction <maximumf>, %571, %cst_223 [1] : vector<64x8xf32> to vector<64xf32>
    %573 = vector.shape_cast %572 : vector<64xf32> to vector<64x1xf32>
    %574 = vector.broadcast %573 : vector<64x1xf32> to vector<64x8xf32>
    %575 = arith.subf %571, %574 : vector<64x8xf32>
    %576 = math.exp %575 : vector<64x8xf32>
    %cst_224 = arith.constant dense<0.000000e+00> : vector<64xf32>
    %577 = vector.multi_reduction <add>, %576, %cst_224 [1] : vector<64x8xf32> to vector<64xf32>
    %578 = vector.shape_cast %577 : vector<64xf32> to vector<64x1xf32>
    %579 = vector.broadcast %578 : vector<64x1xf32> to vector<64x8xf32>
    %580 = arith.divf %576, %579 : vector<64x8xf32>
    %581 = arith.truncf %580 : vector<64x8xf32> to vector<64x8xbf16>
    %582 = vector.extract_strided_slice %536 {offsets = [0, 0], sizes = [8, 32], strides = [1, 1]} : vector<16x32xbf16> to vector<8x32xbf16>
    %583 = vector.extract_strided_slice %581 {offsets = [0, 0], sizes = [8, 8], strides = [1, 1]} : vector<64x8xbf16> to vector<8x8xbf16>
    %584 = vector.extract_strided_slice %582 {offsets = [0, 0], sizes = [8, 8], strides = [1, 1]} : vector<8x32xbf16> to vector<8x8xbf16>
    %cst_225 = arith.constant dense<0.000000e+00> : vector<8x8xf32>
    %585 = tpu.matmul %583, %584, %cst_225 {dimension_numbers = #tpu.dot_dimension_numbers<[1], [0], [0], [1], [0, 0, 1, 1], [], []>} : vector<8x8xbf16>, vector<8x8xbf16>, vector<8x8xf32> -> vector<8x8xf32>
    %586 = vector.extract_strided_slice %581 {offsets = [8, 0], sizes = [8, 8], strides = [1, 1]} : vector<64x8xbf16> to vector<8x8xbf16>
    %587 = vector.extract_strided_slice %582 {offsets = [0, 8], sizes = [8, 8], strides = [1, 1]} : vector<8x32xbf16> to vector<8x8xbf16>
    %cst_226 = arith.constant dense<0.000000e+00> : vector<8x8xf32>
    %588 = tpu.matmul %586, %587, %cst_226 {dimension_numbers = #tpu.dot_dimension_numbers<[1], [0], [0], [1], [0, 0, 1, 1], [], []>} : vector<8x8xbf16>, vector<8x8xbf16>, vector<8x8xf32> -> vector<8x8xf32>
    %589 = vector.extract_strided_slice %581 {offsets = [16, 0], sizes = [8, 8], strides = [1, 1]} : vector<64x8xbf16> to vector<8x8xbf16>
    %590 = vector.extract_strided_slice %582 {offsets = [0, 16], sizes = [8, 8], strides = [1, 1]} : vector<8x32xbf16> to vector<8x8xbf16>
    %cst_227 = arith.constant dense<0.000000e+00> : vector<8x8xf32>
    %591 = tpu.matmul %589, %590, %cst_227 {dimension_numbers = #tpu.dot_dimension_numbers<[1], [0], [0], [1], [0, 0, 1, 1], [], []>} : vector<8x8xbf16>, vector<8x8xbf16>, vector<8x8xf32> -> vector<8x8xf32>
    %592 = vector.extract_strided_slice %581 {offsets = [24, 0], sizes = [8, 8], strides = [1, 1]} : vector<64x8xbf16> to vector<8x8xbf16>
    %593 = vector.extract_strided_slice %582 {offsets = [0, 24], sizes = [8, 8], strides = [1, 1]} : vector<8x32xbf16> to vector<8x8xbf16>
    %cst_228 = arith.constant dense<0.000000e+00> : vector<8x8xf32>
    %594 = tpu.matmul %592, %593, %cst_228 {dimension_numbers = #tpu.dot_dimension_numbers<[1], [0], [0], [1], [0, 0, 1, 1], [], []>} : vector<8x8xbf16>, vector<8x8xbf16>, vector<8x8xf32> -> vector<8x8xf32>
    %595 = tpu.concatenate %585, %588, %591, %594 in 1 : vector<8x8xf32>, vector<8x8xf32>, vector<8x8xf32>, vector<8x8xf32> -> vector<8x32xf32>
    %596 = vector.extract_strided_slice %536 {offsets = [8, 0], sizes = [8, 32], strides = [1, 1]} : vector<16x32xbf16> to vector<8x32xbf16>
    %597 = vector.extract_strided_slice %581 {offsets = [32, 0], sizes = [8, 8], strides = [1, 1]} : vector<64x8xbf16> to vector<8x8xbf16>
    %598 = vector.extract_strided_slice %596 {offsets = [0, 0], sizes = [8, 8], strides = [1, 1]} : vector<8x32xbf16> to vector<8x8xbf16>
    %cst_229 = arith.constant dense<0.000000e+00> : vector<8x8xf32>
    %599 = tpu.matmul %597, %598, %cst_229 {dimension_numbers = #tpu.dot_dimension_numbers<[1], [0], [0], [1], [0, 0, 1, 1], [], []>} : vector<8x8xbf16>, vector<8x8xbf16>, vector<8x8xf32> -> vector<8x8xf32>
    %600 = vector.extract_strided_slice %581 {offsets = [40, 0], sizes = [8, 8], strides = [1, 1]} : vector<64x8xbf16> to vector<8x8xbf16>
    %601 = vector.extract_strided_slice %596 {offsets = [0, 8], sizes = [8, 8], strides = [1, 1]} : vector<8x32xbf16> to vector<8x8xbf16>
    %cst_230 = arith.constant dense<0.000000e+00> : vector<8x8xf32>
    %602 = tpu.matmul %600, %601, %cst_230 {dimension_numbers = #tpu.dot_dimension_numbers<[1], [0], [0], [1], [0, 0, 1, 1], [], []>} : vector<8x8xbf16>, vector<8x8xbf16>, vector<8x8xf32> -> vector<8x8xf32>
    %603 = vector.extract_strided_slice %581 {offsets = [48, 0], sizes = [8, 8], strides = [1, 1]} : vector<64x8xbf16> to vector<8x8xbf16>
    %604 = vector.extract_strided_slice %596 {offsets = [0, 16], sizes = [8, 8], strides = [1, 1]} : vector<8x32xbf16> to vector<8x8xbf16>
    %cst_231 = arith.constant dense<0.000000e+00> : vector<8x8xf32>
    %605 = tpu.matmul %603, %604, %cst_231 {dimension_numbers = #tpu.dot_dimension_numbers<[1], [0], [0], [1], [0, 0, 1, 1], [], []>} : vector<8x8xbf16>, vector<8x8xbf16>, vector<8x8xf32> -> vector<8x8xf32>
    %606 = vector.extract_strided_slice %581 {offsets = [56, 0], sizes = [8, 8], strides = [1, 1]} : vector<64x8xbf16> to vector<8x8xbf16>
    %607 = vector.extract_strided_slice %596 {offsets = [0, 24], sizes = [8, 8], strides = [1, 1]} : vector<8x32xbf16> to vector<8x8xbf16>
    %cst_232 = arith.constant dense<0.000000e+00> : vector<8x8xf32>
    %608 = tpu.matmul %606, %607, %cst_232 {dimension_numbers = #tpu.dot_dimension_numbers<[1], [0], [0], [1], [0, 0, 1, 1], [], []>} : vector<8x8xbf16>, vector<8x8xbf16>, vector<8x8xf32> -> vector<8x8xf32>
    %609 = tpu.concatenate %599, %602, %605, %608 in 1 : vector<8x8xf32>, vector<8x8xf32>, vector<8x8xf32>, vector<8x8xf32> -> vector<8x32xf32>
    %610 = tpu.concatenate %595, %609 in 0 : vector<8x32xf32>, vector<8x32xf32> -> vector<16x32xf32>
    %c0_233 = arith.constant 0 : index
    %c0_234 = arith.constant 0 : index
    %611 = vector.load %arg43[%c0_233, %c0_234] : memref<64x8xf32, #tpu.memory_space<vmem>>, vector<64x8xf32>
    tpu.vector_store %arg43[%c0_233, %c0_234], %580 {strides = array<i32>} : memref<64x8xf32, #tpu.memory_space<vmem>>, vector<64x8xf32>,
    %c0_235 = arith.constant 0 : index
    %c0_236 = arith.constant 0 : index
    %612 = vector.load %arg30[%c0_235, %c0_236] : memref<32x32xbf16, #tpu.memory_space<vmem>>, vector<32x32xbf16>
    %c0_237 = arith.constant 0 : index
    %c0_238 = arith.constant 0 : index
    %613 = vector.load %arg31[%c0_237, %c0_238] : memref<1x32xf32, #tpu.memory_space<vmem>>, vector<1x32xf32>
    %614 = arith.truncf %610 : vector<16x32xf32> to vector<16x32xbf16>
    %cst_239 = arith.constant dense<0.000000e+00> : vector<16x32xf32>
    %615 = tpu.matmul %614, %612, %cst_239 {dimension_numbers = #tpu.dot_dimension_numbers<[1], [0], [0], [1], [0, 0, 1, 1], [], []>} : vector<16x32xbf16>, vector<32x32xbf16>, vector<16x32xf32> -> vector<16x32xf32>
    %616 = vector.broadcast %613 : vector<1x32xf32> to vector<16x32xf32>
    %617 = arith.addf %615, %616 : vector<16x32xf32>
    %618 = arith.addf %525, %617 : vector<16x32xf32>
    %c0_240 = arith.constant 0 : index
    %c0_241 = arith.constant 0 : index
    %619 = vector.load %arg32[%c0_240, %c0_241] : memref<1x32xf32, #tpu.memory_space<vmem>>, vector<1x32xf32>
    %c0_242 = arith.constant 0 : index
    %c0_243 = arith.constant 0 : index
    %620 = vector.load %arg33[%c0_242, %c0_243] : memref<1x32xf32, #tpu.memory_space<vmem>>, vector<1x32xf32>
    %cst_244 = arith.constant dense<0.000000e+00> : vector<16xf32>
    %621 = vector.multi_reduction <add>, %618, %cst_244 [1] : vector<16x32xf32> to vector<16xf32>
    %622 = vector.shape_cast %621 : vector<16xf32> to vector<16x1xf32>
    %cst_245 = arith.constant 3.200000e+01 : f32
    %623 = vector.broadcast %cst_245 : f32 to vector<16x1xf32>
    %624 = arith.divf %622, %623 : vector<16x1xf32>
    %625 = vector.broadcast %624 : vector<16x1xf32> to vector<16x32xf32>
    %626 = arith.subf %618, %625 : vector<16x32xf32>
    %627 = arith.mulf %626, %626 : vector<16x32xf32>
    %cst_246 = arith.constant dense<0.000000e+00> : vector<16xf32>
    %628 = vector.multi_reduction <add>, %627, %cst_246 [1] : vector<16x32xf32> to vector<16xf32>
    %629 = vector.shape_cast %628 : vector<16xf32> to vector<16x1xf32>
    %cst_247 = arith.constant 3.200000e+01 : f32
    %630 = vector.broadcast %cst_247 : f32 to vector<16x1xf32>
    %631 = arith.divf %629, %630 : vector<16x1xf32>
    %632 = vector.broadcast %624 : vector<16x1xf32> to vector<16x32xf32>
    %633 = arith.subf %618, %632 : vector<16x32xf32>
    %cst_248 = arith.constant 9.99999974E-6 : f32
    %634 = vector.broadcast %cst_248 : f32 to vector<16x1xf32>
    %635 = arith.addf %631, %634 : vector<16x1xf32>
    %636 = math.rsqrt %635 : vector<16x1xf32>
    %637 = vector.broadcast %636 : vector<16x1xf32> to vector<16x32xf32>
    %638 = arith.mulf %633, %637 : vector<16x32xf32>
    %639 = vector.broadcast %619 : vector<1x32xf32> to vector<16x32xf32>
    %640 = arith.mulf %638, %639 : vector<16x32xf32>
    %641 = vector.broadcast %620 : vector<1x32xf32> to vector<16x32xf32>
    %642 = arith.addf %640, %641 : vector<16x32xf32>
    %c0_249 = arith.constant 0 : index
    %c0_250 = arith.constant 0 : index
    %643 = vector.load %arg34[%c0_249, %c0_250] : memref<32x64xbf16, #tpu.memory_space<vmem>>, vector<32x64xbf16>
    %c0_251 = arith.constant 0 : index
    %c0_252 = arith.constant 0 : index
    %644 = vector.load %arg35[%c0_251, %c0_252] : memref<1x64xf32, #tpu.memory_space<vmem>>, vector<1x64xf32>
    %645 = arith.truncf %642 : vector<16x32xf32> to vector<16x32xbf16>
    %cst_253 = arith.constant dense<0.000000e+00> : vector<16x64xf32>
    %646 = tpu.matmul %645, %643, %cst_253 {dimension_numbers = #tpu.dot_dimension_numbers<[1], [0], [0], [1], [0, 0, 1, 1], [], []>} : vector<16x32xbf16>, vector<32x64xbf16>, vector<16x64xf32> -> vector<16x64xf32>
    %647 = vector.broadcast %644 : vector<1x64xf32> to vector<16x64xf32>
    %648 = arith.addf %646, %647 : vector<16x64xf32>
    %cst_254 = arith.constant 0.000000e+00 : f32
    %649 = vector.broadcast %cst_254 : f32 to vector<16x64xf32>
    %650 = arith.maximumf %648, %649 : vector<16x64xf32>
    %c0_255 = arith.constant 0 : index
    %c0_256 = arith.constant 0 : index
    %651 = vector.load %arg36[%c0_255, %c0_256] : memref<64x32xbf16, #tpu.memory_space<vmem>>, vector<64x32xbf16>
    %c0_257 = arith.constant 0 : index
    %c0_258 = arith.constant 0 : index
    %652 = vector.load %arg37[%c0_257, %c0_258] : memref<1x32xf32, #tpu.memory_space<vmem>>, vector<1x32xf32>
    %653 = arith.truncf %650 : vector<16x64xf32> to vector<16x64xbf16>
    %cst_259 = arith.constant dense<0.000000e+00> : vector<16x32xf32>
    %654 = tpu.matmul %653, %651, %cst_259 {dimension_numbers = #tpu.dot_dimension_numbers<[1], [0], [0], [1], [0, 0, 1, 1], [], []>} : vector<16x64xbf16>, vector<64x32xbf16>, vector<16x32xf32> -> vector<16x32xf32>
    %655 = vector.broadcast %652 : vector<1x32xf32> to vector<16x32xf32>
    %656 = arith.addf %654, %655 : vector<16x32xf32>
    %657 = arith.addf %642, %656 : vector<16x32xf32>
    %c0_260 = arith.constant 0 : index
    %c0_261 = arith.constant 0 : index
    %658 = vector.load %arg38[%c0_260, %c0_261] : memref<1x32xf32, #tpu.memory_space<vmem>>, vector<1x32xf32>
    %c0_262 = arith.constant 0 : index
    %c0_263 = arith.constant 0 : index
    %659 = vector.load %arg39[%c0_262, %c0_263] : memref<1x32xf32, #tpu.memory_space<vmem>>, vector<1x32xf32>
    %cst_264 = arith.constant dense<0.000000e+00> : vector<16xf32>
    %660 = vector.multi_reduction <add>, %657, %cst_264 [1] : vector<16x32xf32> to vector<16xf32>
    %661 = vector.shape_cast %660 : vector<16xf32> to vector<16x1xf32>
    %cst_265 = arith.constant 3.200000e+01 : f32
    %662 = vector.broadcast %cst_265 : f32 to vector<16x1xf32>
    %663 = arith.divf %661, %662 : vector<16x1xf32>
    %664 = vector.broadcast %663 : vector<16x1xf32> to vector<16x32xf32>
    %665 = arith.subf %657, %664 : vector<16x32xf32>
    %666 = arith.mulf %665, %665 : vector<16x32xf32>
    %cst_266 = arith.constant dense<0.000000e+00> : vector<16xf32>
    %667 = vector.multi_reduction <add>, %666, %cst_266 [1] : vector<16x32xf32> to vector<16xf32>
    %668 = vector.shape_cast %667 : vector<16xf32> to vector<16x1xf32>
    %cst_267 = arith.constant 3.200000e+01 : f32
    %669 = vector.broadcast %cst_267 : f32 to vector<16x1xf32>
    %670 = arith.divf %668, %669 : vector<16x1xf32>
    %671 = vector.broadcast %663 : vector<16x1xf32> to vector<16x32xf32>
    %672 = arith.subf %657, %671 : vector<16x32xf32>
    %cst_268 = arith.constant 9.99999974E-6 : f32
    %673 = vector.broadcast %cst_268 : f32 to vector<16x1xf32>
    %674 = arith.addf %670, %673 : vector<16x1xf32>
    %675 = math.rsqrt %674 : vector<16x1xf32>
    %676 = vector.broadcast %675 : vector<16x1xf32> to vector<16x32xf32>
    %677 = arith.mulf %672, %676 : vector<16x32xf32>
    %678 = vector.broadcast %658 : vector<1x32xf32> to vector<16x32xf32>
    %679 = arith.mulf %677, %678 : vector<16x32xf32>
    %680 = vector.broadcast %659 : vector<1x32xf32> to vector<16x32xf32>
    %681 = arith.addf %679, %680 : vector<16x32xf32>
    %c0_269 = arith.constant 0 : index
    %c0_270 = arith.constant 0 : index
    %682 = vector.load %arg40[%c0_269, %c0_270] : memref<32x60xbf16, #tpu.memory_space<vmem>>, vector<32x60xbf16>
    %c0_271 = arith.constant 0 : index
    %c0_272 = arith.constant 0 : index
    %683 = vector.load %arg41[%c0_271, %c0_272] : memref<1x60xf32, #tpu.memory_space<vmem>>, vector<1x60xf32>
    %684 = arith.truncf %681 : vector<16x32xf32> to vector<16x32xbf16>
    %cst_273 = arith.constant dense<0.000000e+00> : vector<16x60xf32>
    %685 = tpu.matmul %684, %682, %cst_273 {dimension_numbers = #tpu.dot_dimension_numbers<[1], [0], [0], [1], [0, 0, 1, 1], [], []>} : vector<16x32xbf16>, vector<32x60xbf16>, vector<16x60xf32> -> vector<16x60xf32>
    %686 = vector.broadcast %683 : vector<1x60xf32> to vector<16x60xf32>
    %687 = arith.addf %685, %686 : vector<16x60xf32>
    %c0_274 = arith.constant 0 : index
    %c0_275 = arith.constant 0 : index
    %688 = vector.load %arg42[%c0_274, %c0_275] : memref<16x60xf32, #tpu.memory_space<vmem>>, vector<16x60xf32>
    tpu.vector_store %arg42[%c0_274, %c0_275], %687 {strides = array<i32>} : memref<16x60xf32, #tpu.memory_space<vmem>>, vector<16x60xf32>,
    return
  }
}

</mosaic_0001>

<bundles_post_ra>
// kernel: seq2seq_forward.1
= control target key start
LH: loop header
LB: loop body
LE: loop exit
PB: predicated region body
PF: predicated region fallthrough
CT: control target
= control target key end

     0   :  { %s7245_s6 = smov 1   ;;  %s7246_s10 = smov 2   ;;  %s8639_s0 = inlined_call_operand.smem [shape: u32[44], index: -1, kind: input, shape index: {}] }
   0x1   :  { %s7322_s5 = sld [smem:[%s8639_s0]]   ;;  %s7247_s14 = smov 3  }
   0x2   :  { %s7327_s9 = sld [smem:[%s8639_s0 + %s7245_s6]]   ;;  %s7248_s18 = smov 4  }
   0x3   :  { %s7332_s13 = sld [smem:[%s8639_s0 + %s7246_s10]]   ;;  %s7249_s22 = smov 5  }
   0x4   :  { %s7337_s17 = sld [smem:[%s8639_s0 + %s7247_s14]]   ;;  %s7250_s26 = smov 6  }
   0x5   :  { %s7342_s21 = sld [smem:[%s8639_s0 + %s7248_s18]]   ;;  %s7251_s30 = smov 7  }
   0x6   :  { %s7347_s25 = sld [smem:[%s8639_s0 + %s7249_s22]]   ;;  %s7252_s4 = smov 8  }
   0x7   :  { %s7352_s29 = sld [smem:[%s8639_s0 + %s7250_s26]]   ;;  %s7253_s10 = smov 9  }
   0x8   :  { %s7357_s3 = sld [smem:[%s8639_s0 + %s7251_s30]]   ;;  %s7254_s15 = smov 10  }
   0x9   :  { %8657 = sst [smem:[#allocation22_spill]] %s7332_s13  ;;  %s7255_s20 = smov 11  }
   0xa   :  { %8658 = sst [smem:[#allocation23_spill]] %s7337_s17  ;;  %s7256_s26 = smov 12  }
   0xb   :  { %s7362_s8 = sld [smem:[%s8639_s0 + %s7252_s4]]   ;;  %s7257_s1 = smov 13  }
   0xc   :  { %s7367_s14 = sld [smem:[%s8639_s0 + %s7253_s10]]   ;;  %s7258_s7 = smov 14  }
   0xd   :  { %8659 = sst [smem:[#allocation24_spill]] %s7352_s29  ;;  %s7260_s22 = smov 16  }
   0xe   :  { %8660 = sst [smem:[#allocation25_spill]] %s7357_s3  ;;  %s7261_s28 = smov 17  }
   0xf   :  { %s7372_s19 = sld [smem:[%s8639_s0 + %s7254_s15]]   ;;  %s7259_s15 = smov 15  }
  0x10   :  { %s7377_s24 = sld [smem:[%s8639_s0 + %s7255_s20]]  }
  0x11   :  { %s7382_s30 = sld [smem:[%s8639_s0 + %s7256_s26]]  }
  0x12   :  { %s7387_s6 = sld [smem:[%s8639_s0 + %s7257_s1]]  }
  0x13   :  { %s7392_s12 = sld [smem:[%s8639_s0 + %s7258_s7]]   ;;  %s7262_s7 = smov 18  }
  0x14   :  { %s7397_s20 = sld [smem:[%s8639_s0 + %s7259_s15]]   ;;  %s7263_s15 = smov 19  }
  0x15   :  { %s7402_s27 = sld [smem:[%s8639_s0 + %s7260_s22]]   ;;  %s7264_s22 = smov 20  }
  0x16   :  { %s7407_s4 = sld [smem:[%s8639_s0 + %s7261_s28]]   ;;  %s7265_s28 = smov 21  }
  0x17   :  { %8661 = sst [smem:[#allocation26_spill]] %s7382_s30 }
  0x18   :  { %8662 = sst [smem:[#allocation27_spill]] %s7387_s6 }
  0x19   :  { %8663 = sst [smem:[#allocation28_spill]] %s7392_s12 }
  0x1a   :  { %8664 = sst [smem:[#allocation29_spill]] %s7397_s20 }
  0x1b   :  { %8665 = sst [smem:[#allocation30_spill]] %s7402_s27 }
  0x1c   :  { %8666 = sst [smem:[#allocation31_spill]] %s7407_s4 }
  0x1d   :  { %s7412_s17 = sld [smem:[%s8639_s0 + %s7262_s7]]   ;;  %s7266_s7 = smov 22  }
  0x1e   :  { %s7417_s3 = sld [smem:[%s8639_s0 + %s7263_s15]]   ;;  %s7267_s15 = smov 23  }
  0x1f   :  { %s7422_s29 = sld [smem:[%s8639_s0 + %s7264_s22]]   ;;  %s7268_s22 = smov 24  }
  0x20   :  { %s7427_s13 = sld [smem:[%s8639_s0 + %s7265_s28]]   ;;  %s7269_s28 = smov 25  }
  0x23   :  { %8667 = sst [smem:[#allocation32_spill]] %s7412_s17 }
  0x24   :  { %8668 = sst [smem:[#allocation33_spill]] %s7417_s3 }
  0x25   :  { %8669 = sst [smem:[#allocation34_spill]] %s7422_s29 }
  0x26   :  { %8670 = sst [smem:[#allocation35_spill]] %s7427_s13 }
  0x27   :  { %s7432_s17 = sld [smem:[%s8639_s0 + %s7266_s7]]   ;;  %s7270_s7 = smov 26  }
  0x28   :  { %s7437_s3 = sld [smem:[%s8639_s0 + %s7267_s15]]   ;;  %s7271_s15 = smov 27  }
  0x29   :  { %s7442_s29 = sld [smem:[%s8639_s0 + %s7268_s22]]   ;;  %s7272_s22 = smov 28  }
  0x2a   :  { %s7447_s13 = sld [smem:[%s8639_s0 + %s7269_s28]]   ;;  %s7273_s28 = smov 29  }
  0x2b   :  { %s7467_s4 = sld [smem:[%s8639_s0 + %s7273_s28]]   ;;  %s7277_s28 = smov 33  }
  0x2c   :  { %s7487_s6 = sld [smem:[%s8639_s0 + %s7277_s28]]   ;;  %s7281_s28 = smov 37  }
  0x2d   :  { %8671 = sst [smem:[#allocation36_spill]] %s7432_s17 }
  0x2e   :  { %8672 = sst [smem:[#allocation37_spill]] %s7437_s3 }
  0x2f   :  { %8673 = sst [smem:[#allocation38_spill]] %s7442_s29 }
  0x30   :  { %s7452_s17 = sld [smem:[%s8639_s0 + %s7270_s7]]   ;;  %s7274_s7 = smov 30  }
  0x31   :  { %s7457_s3 = sld [smem:[%s8639_s0 + %s7271_s15]]   ;;  %s7275_s15 = smov 31  }
  0x32   :  { %s7462_s29 = sld [smem:[%s8639_s0 + %s7272_s22]]   ;;  %s7276_s22 = smov 32  }
  0x33   :  { %s7477_s20 = sld [smem:[%s8639_s0 + %s7275_s15]]   ;;  %s7279_s15 = smov 35  }
  0x34   :  { %8678 = sst [smem:[#allocation43_spill]] %s7487_s6 }
  0x35   :  { %s7497_s30 = sld [smem:[%s8639_s0 + %s7279_s15]]   ;;  %s7283_s15 = smov 39  }
  0x36   :  { %8674 = sst [smem:[#allocation39_spill]] %s7452_s17 }
  0x37   :  { %s7472_s17 = sld [smem:[%s8639_s0 + %s7274_s7]]   ;;  %s7278_s7 = smov 34  }
  0x38   :  { %8675 = sst [smem:[#allocation40_spill]] %s7462_s29 }
  0x39   :  { %s7482_s29 = sld [smem:[%s8639_s0 + %s7276_s22]]   ;;  %s7280_s22 = smov 36  }
  0x3a   :  { %s7507_s6 = sld [smem:[%s8639_s0 + %s7281_s28]]   ;;  %s7285_s28 = smov 41  }
  0x3b   :  { %s7517_s27 = sld [smem:[%s8639_s0 + %s7283_s15]]   ;;  %s7287_s15 = smov 43  }
  0x3c   :  { %s7527_s12 = sld [smem:[%s8639_s0 + %s7285_s28]]  }
  0x3d   :  { %8676 = sst [smem:[#allocation41_spill]] %s7472_s17 }
  0x3e   :  { %s7492_s17 = sld [smem:[%s8639_s0 + %s7278_s7]]   ;;  %s7282_s7 = smov 38  }
  0x3f   :  { %8677 = sst [smem:[#allocation42_spill]] %s7482_s29 }
  0x40   :  { %s7502_s29 = sld [smem:[%s8639_s0 + %s7280_s22]]   ;;  %s7284_s22 = smov 40  }
  0x41   :  { %8682 = sst [smem:[#allocation47_spill]] %s7517_s27 }
  0x42   :  { %s7537_s27 = sld [smem:[%s8639_s0 + %s7287_s15]]  }
  0x44   :  { %8679 = sst [smem:[#allocation44_spill]] %s7492_s17 }
  0x45   :  { %s7512_s17 = sld [smem:[%s8639_s0 + %s7282_s7]]   ;;  %s7286_s7 = smov 42  }
  0x46   :  { %8680 = sst [smem:[#allocation45_spill]] %s7502_s29 }
  0x47   :  { %s7522_s29 = sld [smem:[%s8639_s0 + %s7284_s22]]  }
  0x4b   :  { %8681 = sst [smem:[#allocation46_spill]] %s7512_s17 }
  0x4c   :  { %s7532_s17 = sld [smem:[%s8639_s0 + %s7286_s7]]  }
  0x4d   :  { %93 = vsyncpa [#allocation3], 0 }
  0x4e   :  { %94 = vsyncpa [#allocation6], 0 }
  0x4f   :  { %95 = vsyncpa [#allocation9], 0 }
  0x50   :  { %96 = vsyncpa [#allocation12], 0 }
  0x51   :  { %97 = vsyncpa [#allocation4], 0 }
  0x52   :  { %98 = vsyncpa [#allocation15], 0  ;;  %s7288_s22 = smov [#allocation5]   ;;  %s7289_s26 = smov [#allocation8]  }
  0x53   :  { %s167_s23 = sshll.u32 %s7288_s22, 4  ;;  %s191_s28 = sshll.u32 %s7289_s26, 4  ;;  %s168_s23 = int_to_ptr.vmem [resolvable:$true] %s167_s23  ;;  %s192_s28 = int_to_ptr.vmem [resolvable:$true] %s191_s28 }
  0x54   :  { %s7081_s1 = scalar_lea.vmem %s168_s23, 16  ;;  %s7085_s2 = scalar_lea.vmem %s168_s23, 32 }
  0x55   :  { %p7082_p0 = scmp.ne.s32.totalorder %s168_s23, %s7081_s1  ;;  %p7086_p1 = scmp.lt.s32.totalorder %s168_s23, %s168_s23 }
  0x56   :  { %p7087_p2 = scmp.lt.s32.totalorder %s7085_s2, %s7081_s1 }
  0x58   :  { %p7088_p3 = por %p7087_p2, %p7086_p1 }
  0x5a   :  { %p7089_p4 = pnand %p7088_p3, %p7082_p0 }
  0x5c   :  { %7092 = shalt.err (!%p7089_p4)
}
  0x5d   :  { %170 = dma.hbm_to_vmem [thread:$0]  %s7457_s3, 16, %s168_s23, [#allocation6]  }
  0x5e   :  { %s7101_s0 = scalar_lea.vmem %s192_s28, 16  ;;  %s7105_s7 = scalar_lea.vmem %s192_s28, 32 }
  0x5f   :  { %p7102_p5 = scmp.ne.s32.totalorder %s192_s28, %s7101_s0  ;;  %p7106_p6 = scmp.lt.s32.totalorder %s192_s28, %s192_s28 }
  0x60   :  { %p7107_p7 = scmp.lt.s32.totalorder %s7105_s7, %s7101_s0 }
  0x62   :  { %p7108_p8 = por %p7107_p7, %p7106_p6 }
  0x64   :  { %p7109_p9 = pnand %p7108_p8, %p7102_p5 }
  0x66   :  { %7112 = shalt.err (!%p7109_p9)
}
  0x67   :  { %194 = dma.hbm_to_vmem [thread:$0]  %s7477_s20, 16, %s192_s28, [#allocation9]  }
  0x68   :  { %s7290_s10 = smov [#allocation2]   ;;  %s7291_s15 = smov [#allocation7]  }
  0x69   :  { %s155_s11 = sshll.u32 %s7290_s10, 4  ;;  %s179_s16 = sshll.u32 %s7291_s15, 4  ;;  %s156_s11 = int_to_ptr.vmem [resolvable:$true] %s155_s11  ;;  %s180_s16 = int_to_ptr.vmem [resolvable:$true] %s179_s16 }
  0x6a   :  { %s7121_s18 = scalar_lea.vmem %s156_s11, 16  ;;  %s7125_s22 = scalar_lea.vmem %s156_s11, 32 }
  0x6b   :  { %p7122_p10 = scmp.ne.s32.totalorder %s156_s11, %s7121_s18  ;;  %p7126_p11 = scmp.lt.s32.totalorder %s156_s11, %s156_s11 }
  0x6c   :  { %p7127_p12 = scmp.lt.s32.totalorder %s7125_s22, %s7121_s18 }
  0x6e   :  { %p7128_p13 = por %p7127_p12, %p7126_p11 }
  0x70   :  { %p7129_p0 = pnand %p7128_p13, %p7122_p10 }
  0x72   :  { %7132 = shalt.err (!%p7129_p0)
}
  0x73   :  { %158 = dma.hbm_to_vmem [thread:$0]  %s7447_s13, 16, %s156_s11, [#allocation3]  }
  0x74   :  { %s7141_s3 = scalar_lea.vmem %s180_s16, 16  ;;  %s7145_s23 = scalar_lea.vmem %s180_s16, 32 }
  0x75   :  { %p7142_p1 = scmp.ne.s32.totalorder %s180_s16, %s7141_s3  ;;  %p7146_p2 = scmp.lt.s32.totalorder %s180_s16, %s180_s16 }
  0x76   :  { %p7147_p3 = scmp.lt.s32.totalorder %s7145_s23, %s7141_s3 }
  0x78   :  { %p7148_p4 = por %p7147_p3, %p7146_p2 }
  0x7a   :  { %p7149_p5 = pnand %p7148_p4, %p7142_p1 }
  0x7c   :  { %7152 = shalt.err (!%p7149_p5)
}
  0x7d   :  { %182 = dma.hbm_to_vmem [thread:$0]  %s7467_s4, 16, %s180_s16, [#allocation6]  }
  0x7e   :  { %s7292_s20 = smov [#allocation10]   ;;  %s7293_s28 = smov [#allocation11]  }
  0x7f   :  { %s207_s26 = sshll.u32 %s7292_s20, 4  ;;  %s219_s1 = sshll.u32 %s7293_s28, 4  ;;  %s208_s26 = int_to_ptr.vmem [resolvable:$true] %s207_s26  ;;  %s220_s1 = int_to_ptr.vmem [resolvable:$true] %s219_s1 }
  0x80   :  { %s7161_s2 = scalar_lea.vmem %s208_s26, 16  ;;  %s7165_s0 = scalar_lea.vmem %s208_s26, 32 }
  0x81   :  { %p7162_p6 = scmp.ne.s32.totalorder %s208_s26, %s7161_s2  ;;  %p7166_p7 = scmp.lt.s32.totalorder %s208_s26, %s208_s26 }
  0x82   :  { %p7167_p8 = scmp.lt.s32.totalorder %s7165_s0, %s7161_s2 }
  0x84   :  { %p7168_p9 = por %p7167_p8, %p7166_p7 }
  0x86   :  { %p7169_p10 = pnand %p7168_p9, %p7162_p6 }
  0x88   :  { %7172 = shalt.err (!%p7169_p10)
}
  0x89   :  { %210 = dma.hbm_to_vmem [thread:$0]  %s7497_s30, 16, %s208_s26, [#allocation9]  }
  0x8a   :  { %s7181_s13 = scalar_lea.vmem %s220_s1, 16  ;;  %s7185_s7 = scalar_lea.vmem %s220_s1, 32 }
  0x8b   :  { %p7182_p11 = scmp.ne.s32.totalorder %s220_s1, %s7181_s13  ;;  %p7186_p12 = scmp.lt.s32.totalorder %s220_s1, %s220_s1 }
  0x8c   :  { %p7187_p13 = scmp.lt.s32.totalorder %s7185_s7, %s7181_s13 }
  0x8e   :  { %p7188_p0 = por %p7187_p13, %p7186_p12 }
  0x90   :  { %p7189_p1 = pnand %p7188_p0, %p7182_p11 }
  0x92   :  { %7192 = shalt.err (!%p7189_p1)
}
  0x93   :  { %222 = dma.hbm_to_vmem [thread:$0]  %s7507_s6, 16, %s220_s1, [#allocation12]  }
  0x94   :  { %7233 = dma.done.wait [#allocation3], 16  }
  0x95   :  { %7234 = vsyncadd [#allocation3], 4294967280 }
  0x96   :  { %7235 = dma.done.wait [#allocation6], 32  }
  0x97   :  { %7236 = vsyncadd [#allocation6], 4294967264 }
  0x98   :  { %7237 = dma.done.wait [#allocation9], 32  }
  0x99   :  { %7238 = vsyncadd [#allocation9], 4294967264 }
  0x9a   :  { %7239 = dma.done.wait [#allocation12], 16  }
  0x9b   :  { %7240 = vsyncadd [#allocation12], 4294967280  ;;  %v7294_v0 = vmov 0   ;;  %v7295_v1 = vmov 0.0   ;;  %vm311_vm0 = vcmask 1041408   ;;  %v283_v2 = vld [vmem:[%s7322_s5] sm:$0xff]  ;;  %v258_v11 = vlaneseq }
  0x9c   :  { %6817 = vset.pattern.permute.xlu0 %v7294_v0  ;;  %6848 = vset.pattern.permute.xlu1 %v7294_v0  ;;  %v303_v3 = vld [vmem:[%s7342_s21 + $0x30] sm:$0x3]  ;;  %v302_v4 = vld [vmem:[%s7342_s21 + $0x28] sm:$0xff]  ;;  %v301_v6 = vld [vmem:[%s7342_s21 + $0x20] sm:$0xff]  ;;  %vm304_vm1 = vcmask 408576   ;;  %vm7296_vm4 = vmmov 0  }
  0x9d   :  { %6205 = vmatprep.subr.bf16.mxu1 %v7295_v1  ;;  %286 = vperm.xlu0 %6817, %v283_v2   ;;  %v284_v5 = vld [vmem:[%s7322_s5 + $0x8] sm:$0xff]  ;;  %v300_v7 = vld [vmem:[%s7342_s21 + $0x18] sm:$0xff]  ;;  %v299_v8 = vld [vmem:[%s7342_s21 + $0x10] sm:$0xff]  ;;  %v7557_v12 = vand.u32 127, %v258_v11  ;;  %vm419_vm5 = vcmask 261120   ;;  %s7297_s5 = smov 120  }
  0x9e   :  { %6188 = vmatprep.subr.msk.mxu0 %vm311_vm0, %v303_v3  ;;  %v298_v9 = vld [vmem:[%s7342_s21 + $0x8] sm:$0xff]  ;;  %v297_v10 = vld [vmem:[%s7342_s21] sm:$0xff]  ;;  %6209 = vmatprep.mubr.msk.bf16.mxu1 %vm7296_vm4, %v7295_v1  ;;  %s7298_s21 = smov 96   ;;  %s7300_s30 = smov 88   ;;  %vm468_vm6 = vcmask 64512   ;;  %vm979_vm7 = vcmask 1043456  }
  0x9f   :  { %6189 = vmatpush3.msk.msra.mxu0 %vm311_vm0, %v303_v3  ;;  %v6879_v17 = vld [vmem:[%s7362_s8 + $0x8] sm:$0xff]   ;;  %v6880_v18 = vld [vmem:[%s7362_s8] sm:$0xff]   ;;  %s7301_s6 = smov 104   ;;  %s7302_s4 = smov 80   ;;  %v7663_v61 = vshrl.u32 %v258_v11, 7  ;;  %vm1184_vm11 = vcmask 130048  }
  0xa0   :  { %6190 = vmatprep.subr.mxu0 %v302_v4  ;;  %6206 = vmatpush3.bf16.msra.mxu1 %v6879_v17  ;;  %v392_v21 = vld [vmem:[%s7347_s25] sm:$0xff]  ;;  %s7299_s25 = smov 72   ;;  %s7303_s10 = smov 112   ;;  %vm1186_vm12 = vcmask 195584   ;;  %vm1624_vm13 = vcmask 523264   ;;  %vm3060_vm15 = vcmask 490496  }
  0xa1   :  { %6191 = vmatpush3.msra.mxu0 %v302_v4  ;;  %289 = vperm.xlu0 %6817, %v284_v5   ;;  %v5806_v28 = vld [vmem:[%s7367_s14] ss:$0 sm:$0xff]  ;;  %s7304_s11 = smov 64   ;;  %v267_v62 = vsub.s32 0, %v7663_v61  ;;  %s7306_s15 = smov 40  }
  0xa2   :  { %6192 = vmatprep.subr.mxu0 %v301_v6  ;;  %6207 = vmatprep.subr.bf16.mxu1 %v7295_v1  ;;  %v250_v60 = vld [vmem:[%s7327_s9] sm:$0x3]  ;;  %s7305_s9 = smov 48   ;;  %s7307_s16 = smov 56  }
  0xa3   :  { %6193 = vmatpush3.msra.mxu0 %v301_v6  ;;  %vm251_vm8 = vcmp.ne.s32.totalorder %v250_v60, 1  ;;  %s7308_s18 = smov 8   ;;  %s7309_s22 = smov 16  }
  0xa4   :  { %6194 = vmatprep.subr.mxu0 %v300_v7  ;;  %6208 = vmatpush3.bf16.msra.mxu1 %v6880_v18  ;;  %v5798_v63 = vsel %vm251_vm8, 1.0, %v7295_v1  ;;  %s7310_s3 = smov 24   ;;  %s8683_s23 = sld [smem:[#allocation28_spill]] }
  0xa5   :  { %6195 = vmatpush3.msra.mxu0 %v300_v7  ;;  %6213 = vmatprep.subr.bf16.mxu1 %v7295_v1  ;;  %v7669_v0 = vrot.slane %v5798_v63, %v267_v62  ;;  %s8684_s20 = sld [smem:[#allocation30_spill]] }
  0xa6   :  { %6196 = vmatprep.subr.mxu0 %v299_v8  ;;  %s8685_s26 = sld [smem:[#allocation26_spill]] }
  0xa7   :  { %6197 = vmatpush3.msra.mxu0 %v299_v8  ;;  %vm872_vm9 = vcmp.eq.f32.partialorder %v7669_v0, 0.0  ;;  %s8686_s28 = sld [smem:[#allocation27_spill]] }
  0xa8   :  { %6198 = vmatprep.subr.mxu0 %v298_v9  ;;  %s8687_s1 = sld [smem:[#allocation29_spill]] }
  0xa9   :  { %6199 = vmatpush3.msra.mxu0 %v298_v9  ;;  %s8688_s2 = sld [smem:[#allocation31_spill]] }
  0xaa   :  { %6200 = vmatprep.subr.mxu0 %v297_v10  ;;  %s8689_s0 = sld [smem:[#allocation32_spill]] }
  0xab   :  { %6201 = vmatpush3.msra.mxu0 %v297_v10  ;;  %s8690_s13 = sld [smem:[#allocation33_spill]] }
  0xac   :  { %6219 = vmatprep.subr.bf16.mxu0 %v7295_v1  ;;  %s8695_s7 = sld [smem:[#allocation35_spill]] }
 0x118   :  { %v287_v13 = vpop.permute.xlu0 %286 }
 0x119   :  { %vm291_vm2 = vcmp.eq.s32.totalorder %v7557_v12, %v287_v13 }
 0x11a   :  { %v5801_v14 = vsel %vm291_vm2, 1.0, %v7295_v1  ;;  %vm262_vm2 = vcmp.le.s32.totalorder %v7557_v12, %v7663_v61 }
 0x11b   :  { %6202 = vmatprep.mubr.msk.f32.mxu0 %vm304_vm1, %v5801_v14  ;;  %v271_v14 = vsub.s32 1, %v7663_v61 }
 0x11c   :  { %v290_v15 = vpop.permute.xlu0 %289 }
 0x11d   :  { %vm292_vm3 = vcmp.eq.s32.totalorder %v7557_v12, %v290_v15 }
 0x11e   :  { %v5802_v16 = vsel %vm292_vm3, 1.0, %v7295_v1 }
 0x11f   :  { %6203 = vmatmul.mubr.msk.f32.vlgmr.msra.gmra.mxu0 %vm304_vm1, %v5802_v16 }
 0x120   :  { %6221 = vmatprep.mubr.msk.bf16.mxu0 %vm7296_vm4, %v7295_v1 }
 0x1df   :  { %v6204_v19 = vpop.f32.mrf.mxu0 }
 0x1e0   :  { %v391_v20 = vmul.f32 5.656854, %v6204_v19 }
 0x1e1   :  { %v381_v22 = vpop.f32.mrf.mxu0 }
 0x1e2   :  { %v390_v23 = vmul.f32 5.656854, %v381_v22  ;;  %v7572_v24 = vadd.f32 %v392_v21, %v391_v20  ;;  %v7691_v22 = vrot.slane %v5798_v63, %v271_v14 }
 0x1e4   :  { %v7574_v25 = vadd.f32 %v392_v21, %v390_v23  ;;  %vm873_vm10 = vcmp.eq.f32.partialorder %v7691_v22, 0.0 }
 0x1e6   :  { %v400_v26 = vpack.c.bf16 %v7572_v24, %v7574_v25 }
 0x1e8   :  { %6210 = vmatmul.mubr.msk.bf16.vlgmr.msra.gmra.mxu1 %vm419_vm5, %v400_v26 }
 0x1e9   :  { %6215 = vmatprep.mubr.msk.bf16.mxu1 %vm7296_vm4, %v7295_v1 }
 0x2a8   :  { %v457_v27 = vpop.f32.mrf.mxu1 }
 0x2a9   :  { %v458_v31 = vadd.f32 %v5806_v28, %v457_v27 }
 0x2aa   :  { %v6211_v29 = vpop.f32.mrf.mxu1 }
 0x2ac   :  { %v460_v30 = vpop.f32.mrf.mxu1 }
 0x2ad   :  { %v461_v32 = vadd.f32 %v5806_v28, %v460_v30 }
 0x2ae   :  { %v6212_v33 = vpop.f32.mrf.mxu1 }
 0x2af   :  { %v7582_v34 = vpack.c.bf16 %v461_v32, %v458_v31 }
 0x2b1   :  { %515 = vrot.lane.b32.xlu0 %v7582_v34, %s7297_s5  ;;  %466 = vrot.lane.b32.xlu1 %v7582_v34, %s7298_s21  ;;  %v7597_v35 = vrot.slane %v7582_v34, 4 }
 0x2b5   :  { %617 = vrot.lane.b32.xlu0 %v7582_v34, %s7299_s25  ;;  %517 = vrot.lane.b32.xlu1 %v7582_v34, %s7300_s30 }
 0x2b9   :  { %615 = vrot.lane.b32.xlu0 %v7582_v34, %s7301_s6  ;;  %567 = vrot.lane.b32.xlu1 %v7582_v34, %s7302_s4 }
 0x2bd   :  { %565 = vrot.lane.b32.xlu1 %v7582_v34, %s7303_s10  ;;  %716 = vrot.lane.b32.xlu0 %v7597_v35, %s7300_s30 }
 0x2c1   :  { %766 = vrot.lane.b32.xlu0 %v7597_v35, %s7302_s4  ;;  %666 = vrot.lane.b32.xlu1 %v7597_v35, %s7298_s21 }
 0x2c5   :  { %764 = vrot.lane.b32.xlu0 %v7597_v35, %s7303_s10  ;;  %714 = vrot.lane.b32.xlu1 %v7597_v35, %s7297_s5 }
 0x2c9   :  { %816 = vrot.lane.b32.xlu1 %v7597_v35, %s7299_s25 }
 0x2cd   :  { %814 = vrot.lane.b32.xlu1 %v7597_v35, %s7301_s6 }
 0x2d1   :  { %974 = vrot.lane.b32.xlu1 %v7582_v34, %s7304_s11 }
 0x323   :  { %v516_v36 = vpop.permute.xlu0 %515  ;;  %v467_v37 = vpop.permute.xlu1 %466 }
 0x324   :  { %v473_v38 = vsel %vm468_vm6, %v467_v37, 0 }
 0x325   :  { %6214 = vmatpush3.bf16.xpose.msra.mxu1 %v473_v38 }
 0x326   :  { %6225 = vmatprep.subr.bf16.mxu1 %v7295_v1 }
 0x327   :  { %v618_v39 = vpop.permute.xlu0 %617  ;;  %v518_v40 = vpop.permute.xlu1 %517 }
 0x328   :  { %v523_v41 = vsel %vm468_vm6, %v518_v40, 0  ;;  %v623_v46 = vsel %vm468_vm6, %v618_v39, 0 }
 0x329   :  { %6220 = vmatpush3.bf16.xpose.msra.mxu0 %v523_v41 }
 0x32a   :  { %6231 = vmatprep.subr.bf16.mxu0 %v7295_v1 }
 0x32b   :  { %v568_v42 = vpop.permute.xlu1 %567  ;;  %v616_v44 = vpop.permute.xlu0 %615 }
 0x32c   :  { %v573_v43 = vsel %vm468_vm6, %v568_v42, 0  ;;  %6216 = vmatmul.mubr.msk.bf16.vlgmr.msra.gmra.mxu1 %vm468_vm6, %v7582_v34 }
 0x32d   :  { %6226 = vmatpush3.bf16.xpose.msra.mxu1 %v573_v43  ;;  %6227 = vmatprep.mubr.msk.bf16.mxu1 %vm7296_vm4, %v7295_v1 }
 0x32e   :  { %6237 = vmatprep.subr.bf16.mxu1 %v7295_v1 }
 0x32f   :  { %v566_v45 = vpop.permute.xlu1 %565  ;;  %v717_v47 = vpop.permute.xlu0 %716 }
 0x330   :  { %6222 = vmatmul.mubr.msk.bf16.vlgmr.msra.gmra.mxu0 %vm468_vm6, %v516_v36  ;;  %v722_v51 = vsel %vm468_vm6, %v717_v47, 0 }
 0x331   :  { %6232 = vmatpush3.bf16.xpose.msra.mxu0 %v623_v46  ;;  %6233 = vmatprep.mubr.msk.bf16.mxu0 %vm7296_vm4, %v7295_v1 }
 0x332   :  { %6243 = vmatprep.subr.bf16.mxu0 %v7295_v1 }
 0x333   :  { %v667_v48 = vpop.permute.xlu1 %666  ;;  %v767_v52 = vpop.permute.xlu0 %766 }
 0x334   :  { %v672_v49 = vsel %vm468_vm6, %v667_v48, 0  ;;  %6228 = vmatmul.mubr.msk.bf16.vlgmr.msra.gmra.mxu1 %vm468_vm6, %v566_v45  ;;  %v772_v54 = vsel %vm468_vm6, %v767_v52, 0 }
 0x335   :  { %6238 = vmatpush3.bf16.xpose.msra.mxu1 %v672_v49  ;;  %6239 = vmatprep.mubr.msk.bf16.mxu1 %vm7296_vm4, %v7295_v1 }
 0x336   :  { %6249 = vmatprep.subr.bf16.mxu1 %v7295_v1 }
 0x337   :  { %v715_v50 = vpop.permute.xlu1 %714  ;;  %v765_v57 = vpop.permute.xlu0 %764 }
 0x338   :  { %6234 = vmatmul.mubr.msk.bf16.vlgmr.msra.gmra.mxu0 %vm468_vm6, %v616_v44 }
 0x339   :  { %6244 = vmatpush3.bf16.xpose.msra.mxu0 %v722_v51  ;;  %6245 = vmatprep.mubr.msk.bf16.mxu0 %vm7296_vm4, %v7295_v1 }
 0x33a   :  { %6255 = vmatprep.subr.bf16.mxu0 %v7295_v1 }
 0x33b   :  { %v817_v53 = vpop.permute.xlu1 %816 }
 0x33c   :  { %6240 = vmatmul.mubr.msk.bf16.vlgmr.msra.gmra.mxu1 %vm468_vm6, %v7597_v35  ;;  %v822_v56 = vsel %vm468_vm6, %v817_v53, 0 }
 0x33d   :  { %6250 = vmatpush3.bf16.xpose.msra.mxu1 %v772_v54  ;;  %6251 = vmatprep.mubr.msk.bf16.mxu1 %vm7296_vm4, %v7295_v1 }
 0x33e   :  { %6261 = vmatprep.subr.bf16.mxu1 %v7295_v1 }
 0x33f   :  { %v815_v55 = vpop.permute.xlu1 %814 }
 0x340   :  { %6246 = vmatmul.mubr.msk.bf16.vlgmr.msra.gmra.mxu0 %vm468_vm6, %v715_v50 }
 0x341   :  { %6256 = vmatpush3.bf16.xpose.msra.mxu0 %v822_v56  ;;  %6257 = vmatprep.mubr.msk.bf16.mxu0 %vm7296_vm4, %v7295_v1 }
 0x342   :  { %6267 = vmatprep.subr.bf16.mxu0 %v7295_v1 }
 0x343   :  { %v975_v58 = vpop.permute.xlu1 %974 }
 0x344   :  { %v981_v59 = vsel %vm979_vm7, %v975_v58, 0  ;;  %6252 = vmatmul.mubr.msk.bf16.vlgmr.msra.gmra.mxu1 %vm468_vm6, %v765_v57 }
 0x345   :  { %6262 = vmatpush3.bf16.msra.mxu1 %v981_v59  ;;  %6263 = vmatprep.mubr.msk.bf16.mxu1 %vm7296_vm4, %v7295_v1 }
 0x346   :  { %6273 = vmatprep.subr.bf16.mxu1 %v7295_v1 }
 0x348   :  { %6258 = vmatmul.mubr.msk.bf16.vlgmr.msra.gmra.mxu0 %vm468_vm6, %v815_v55 }
 0x349   :  { %6269 = vmatprep.mubr.msk.bf16.mxu0 %vm7296_vm4, %v7295_v1 }
 0x3ec   :  { %v509_v2 = vpop.f32.mrf.mxu1 }
 0x3ed   :  { %v864_v3 = vmul.f32 0.35355338, %v509_v2 }
 0x3ee   :  { %v6217_v4 = vpop.f32.mrf.mxu1 }
 0x3ef   :  { %v7674_v5 = vsel %vm872_vm9, -1e+10, %v864_v3 }
 0x3f0   :  { %v512_v6 = vpop.f32.mrf.mxu1  ;;  %v559_v7 = vpop.f32.mrf.mxu0  ;;  %v882_v8 = vsel %vm468_vm6, %v7674_v5, -inf }
 0x3f1   :  { %v865_v9 = vmul.f32 0.35355338, %v559_v7  ;;  %883 = vmax.xlane.f32.xlu0 %v882_v8 }
 0x3f2   :  { %v6218_v10 = vpop.f32.mrf.mxu1  ;;  %v6223_v11 = vpop.f32.mrf.mxu0 }
 0x3f3   :  { %v7680_v13 = vsel %vm872_vm9, -1e+10, %v865_v9 }
 0x3f4   :  { %v562_v15 = vpop.f32.mrf.mxu0  ;;  %v609_v16 = vpop.f32.mrf.mxu1  ;;  %v885_v17 = vsel %vm468_vm6, %v7680_v13, -inf }
 0x3f5   :  { %v866_v18 = vmul.f32 0.35355338, %v609_v16  ;;  %886 = vmax.xlane.f32.xlu1 %v885_v17 }
 0x3f6   :  { %v6224_v19 = vpop.f32.mrf.mxu0  ;;  %v6229_v20 = vpop.f32.mrf.mxu1 }
 0x3f7   :  { %v7687_v21 = vsel %vm872_vm9, -1e+10, %v866_v18 }
 0x3f8   :  { %v612_v23 = vpop.f32.mrf.mxu1  ;;  %v659_v26 = vpop.f32.mrf.mxu0  ;;  %v888_v27 = vsel %vm468_vm6, %v7687_v21, -inf }
 0x3f9   :  { %v867_v28 = vmul.f32 0.35355338, %v659_v26  ;;  %889 = vmax.xlane.f32.xlu0 %v888_v27 }
 0x3fa   :  { %v6230_v29 = vpop.f32.mrf.mxu1  ;;  %v6235_v30 = vpop.f32.mrf.mxu0 }
 0x3fb   :  { %v877_v31 = vsel %vm872_vm9, -1e+10, %v867_v28 }
 0x3fc   :  { %v662_v32 = vpop.f32.mrf.mxu0  ;;  %v708_v33 = vpop.f32.mrf.mxu1  ;;  %v891_v36 = vsel %vm468_vm6, %v877_v31, -inf }
 0x3fd   :  { %v868_v37 = vmul.f32 0.35355338, %v708_v33  ;;  %892 = vmax.xlane.f32.xlu0 %v891_v36 }
 0x3fe   :  { %v6236_v38 = vpop.f32.mrf.mxu0  ;;  %v6241_v39 = vpop.f32.mrf.mxu1 }
 0x3ff   :  { %v7701_v40 = vsel %vm873_vm10, -1e+10, %v868_v37 }
 0x400   :  { %v711_v41 = vpop.f32.mrf.mxu1  ;;  %v758_v42 = vpop.f32.mrf.mxu0  ;;  %v894_v43 = vsel %vm468_vm6, %v7701_v40, -inf }
 0x401   :  { %v869_v44 = vmul.f32 0.35355338, %v758_v42  ;;  %895 = vmax.xlane.f32.xlu1 %v894_v43 }
 0x402   :  { %v6242_v45 = vpop.f32.mrf.mxu1  ;;  %v6247_v46 = vpop.f32.mrf.mxu0 }
 0x403   :  { %v7707_v47 = vsel %vm873_vm10, -1e+10, %v869_v44 }
 0x404   :  { %v761_v48 = vpop.f32.mrf.mxu0  ;;  %v808_v49 = vpop.f32.mrf.mxu1  ;;  %v897_v50 = vsel %vm468_vm6, %v7707_v47, -inf }
 0x405   :  { %v870_v51 = vmul.f32 0.35355338, %v808_v49  ;;  %898 = vmax.xlane.f32.xlu0 %v897_v50 }
 0x406   :  { %v6248_v52 = vpop.f32.mrf.mxu0  ;;  %v6253_v53 = vpop.f32.mrf.mxu1 }
 0x407   :  { %v7713_v54 = vsel %vm873_vm10, -1e+10, %v870_v51 }
 0x408   :  { %v811_v55 = vpop.f32.mrf.mxu1  ;;  %v858_v56 = vpop.f32.mrf.mxu0  ;;  %v900_v57 = vsel %vm468_vm6, %v7713_v54, -inf }
 0x409   :  { %v871_v58 = vmul.f32 0.35355338, %v858_v56  ;;  %901 = vmax.xlane.f32.xlu1 %v900_v57 }
 0x40a   :  { %v6254_v59 = vpop.f32.mrf.mxu1  ;;  %v6259_v60 = vpop.f32.mrf.mxu0 }
 0x40b   :  { %v881_v63 = vsel %vm873_vm10, -1e+10, %v871_v58 }
 0x40c   :  { %v861_v2 = vpop.f32.mrf.mxu0  ;;  %v903_v3 = vsel %vm468_vm6, %v881_v63, -inf }
 0x40d   :  { %904 = vmax.xlane.f32.xlu0 %v903_v3 }
 0x40e   :  { %v6260_v4 = vpop.f32.mrf.mxu0 }
 0x41a   :  { %1073 = vrot.lane.b32.xlu1 %v7582_v34, %s7305_s9 }
 0x41e   :  { %1123 = vrot.lane.b32.xlu1 %v7582_v34, %s7306_s15 }
 0x423   :  { %1025 = vrot.lane.b32.xlu0 %v7582_v34, %s7307_s16 }
 0x47a   :  { %v884_v6 = vpop.xlane.xlu0 %883 }
 0x47b   :  { %v906_v7 = vsub.f32 %v7674_v5, %v884_v6 }
 0x47d   :  { %v914_v8 = vmul.f32 1.442695, %v906_v7 }
 0x47e   :  { %v887_v9 = vpop.xlane.xlu1 %886 }
 0x47f   :  { %6917 = vpow2.f32 %v914_v8  ;;  %v907_v10 = vsub.f32 %v7680_v13, %v887_v9 }
 0x481   :  { %v916_v11 = vmul.f32 1.442695, %v907_v10 }
 0x482   :  { %v890_v15 = vpop.xlane.xlu0 %889 }
 0x483   :  { %6919 = vpow2.f32 %v916_v11  ;;  %v908_v16 = vsub.f32 %v7687_v21, %v890_v15 }
 0x485   :  { %v918_v17 = vmul.f32 1.442695, %v908_v16 }
 0x486   :  { %v893_v18 = vpop.xlane.xlu0 %892 }
 0x487   :  { %6921 = vpow2.f32 %v918_v17  ;;  %v909_v19 = vsub.f32 %v877_v31, %v893_v18 }
 0x489   :  { %v920_v20 = vmul.f32 1.442695, %v909_v19 }
 0x48a   :  { %v896_v33 = vpop.xlane.xlu1 %895 }
 0x48b   :  { %6923 = vpow2.f32 %v920_v20  ;;  %v910_v36 = vsub.f32 %v7701_v40, %v896_v33 }
 0x48c   :  { %v6918_v34 = vpop.eup %6917 }
 0x48d   :  { %v930_v23 = vsel %vm468_vm6, %v6918_v34, 0.0  ;;  %v922_v39 = vmul.f32 1.442695, %v910_v36 }
 0x48e   :  { %931 = vadd.xlane.f32.xlu1 %v930_v23  ;;  %v899_v27 = vpop.xlane.xlu0 %898 }
 0x48f   :  { %v911_v38 = vsub.f32 %v7707_v47, %v899_v27  ;;  %6925 = vpow2.f32 %v922_v39 }
 0x490   :  { %v6920_v5 = vpop.eup %6919 }
 0x491   :  { %v933_v26 = vsel %vm468_vm6, %v6920_v5, 0.0  ;;  %v924_v42 = vmul.f32 1.442695, %v911_v38 }
 0x492   :  { %934 = vadd.xlane.f32.xlu0 %v933_v26  ;;  %v902_v37 = vpop.xlane.xlu1 %901 }
 0x493   :  { %v912_v41 = vsub.f32 %v7713_v54, %v902_v37  ;;  %6927 = vpow2.f32 %v924_v42 }
 0x494   :  { %v7731_v13 = vpop.eup %6921 }
 0x495   :  { %v936_v21 = vsel %vm468_vm6, %v7731_v13, 0.0  ;;  %v926_v43 = vmul.f32 1.442695, %v912_v41 }
 0x496   :  { %937 = vadd.xlane.f32.xlu1 %v936_v21  ;;  %v905_v28 = vpop.xlane.xlu0 %904  ;;  %v1074_v53 = vpop.permute.xlu1 %1073 }
 0x497   :  { %v913_v44 = vsub.f32 %v881_v63, %v905_v28  ;;  %6929 = vpow2.f32 %v926_v43  ;;  %v1079_v4 = vsel %vm979_vm7, %v1074_v53, 0 }
 0x498   :  { %v7735_v29 = vpop.eup %6923 }
 0x499   :  { %v939_v30 = vsel %vm468_vm6, %v7735_v29, 0.0  ;;  %v928_v45 = vmul.f32 1.442695, %v913_v44 }
 0x49a   :  { %940 = vadd.xlane.f32.xlu0 %v939_v30  ;;  %v1026_v31 = vpop.permute.xlu0 %1025  ;;  %v1124_v54 = vpop.permute.xlu1 %1123 }
 0x49b   :  { %v1031_v32 = vsel %vm979_vm7, %v1026_v31, 0  ;;  %6931 = vpow2.f32 %v928_v45  ;;  %v1129_v7 = vsel %vm979_vm7, %v1124_v54, 0 }
 0x49c   :  { %6268 = vmatpush3.bf16.msra.mxu0 %v1031_v32  ;;  %v7748_v46 = vpop.eup %6925 }
 0x49d   :  { %6279 = vmatprep.subr.bf16.mxu0 %v7295_v1  ;;  %v942_v40 = vsel %vm468_vm6, %v7748_v46, 0.0 }
 0x4a0   :  { %v7750_v48 = vpop.eup %6927 }
 0x4a1   :  { %v945_v50 = vsel %vm468_vm6, %v7750_v48, 0.0 }
 0x4a4   :  { %v7754_v49 = vpop.eup %6929 }
 0x4a5   :  { %v948_v47 = vsel %vm468_vm6, %v7754_v49, 0.0 }
 0x4a7   :  { %1238 = vrot.lane.b32.xlu1 %v7597_v35, %s7307_s16 }
 0x4a8   :  { %v7760_v51 = vpop.eup %6931 }
 0x4a9   :  { %v951_v52 = vsel %vm468_vm6, %v7760_v51, 0.0 }
 0x4b0   :  { %1188 = vrot.lane.b32.xlu0 %v7597_v35, %s7304_s11 }
 0x4cb   :  { %943 = vadd.xlane.f32.xlu1 %v942_v40 }
 0x4cf   :  { %949 = vadd.xlane.f32.xlu1 %v948_v47  ;;  %946 = vadd.xlane.f32.xlu0 %v945_v50 }
 0x4d3   :  { %952 = vadd.xlane.f32.xlu0 %v951_v52 }
 0x4e0   :  { %1336 = vrot.lane.b32.xlu1 %v7597_v35, %s7306_s15 }
 0x4e9   :  { %1286 = vrot.lane.b32.xlu0 %v7597_v35, %s7305_s9 }
 0x517   :  { %v932_v55 = vpop.xlane.xlu1 %931 }
 0x518   :  { %6933 = vrcp.f32 %v932_v55 }
 0x51b   :  { %v935_v56 = vpop.xlane.xlu0 %934 }
 0x51c   :  { %6935 = vrcp.f32 %v935_v56 }
 0x51f   :  { %v938_v57 = vpop.xlane.xlu1 %937 }
 0x520   :  { %6937 = vrcp.f32 %v938_v57 }
 0x523   :  { %v941_v58 = vpop.xlane.xlu0 %940  ;;  %v1239_v16 = vpop.permute.xlu1 %1238 }
 0x524   :  { %6939 = vrcp.f32 %v941_v58  ;;  %v1244_v19 = vsel %vm979_vm7, %v1239_v16, 0  ;;  %v6881_v58 = vld [vmem:[%s7372_s19 + $0x8] sm:$0xff]  }
 0x525   :  { %v6934_v59 = vpop.eup %6933 }
 0x526   :  { %v962_v63 = vmul.f32 %v6934_v59, %v6918_v34 }
 0x527   :  { %v1189_v11 = vpop.permute.xlu0 %1188 }
 0x528   :  { %v1194_v17 = vsel %vm979_vm7, %v1189_v11, 0 }
 0x529   :  { %v6936_v60 = vpop.eup %6935 }
 0x52a   :  { %v963_v2 = vmul.f32 %v6936_v60, %v6920_v5  ;;  %v6882_v60 = vld [vmem:[%s7372_s19] sm:$0xff]  }
 0x52c   :  { %v970_v3 = vpack.c.bf16 %v963_v2, %v962_v63 }
 0x52d   :  { %v6938_v6 = vpop.eup %6937 }
 0x52e   :  { %6264 = vmatmul.mubr.msk.bf16.vlgmr.msra.gmra.mxu1 %vm468_vm6, %v970_v3  ;;  %v1024_v35 = vrot.slane %v970_v3, 4  ;;  %v964_v9 = vmul.f32 %v6938_v6, %v7731_v13 }
 0x52f   :  { %6274 = vmatpush3.bf16.msra.mxu1 %v1079_v4  ;;  %6275 = vmatprep.mubr.msk.bf16.mxu1 %vm7296_vm4, %v7295_v1 }
 0x530   :  { %6270 = vmatmul.mubr.msk.bf16.vlgmr.msra.gmra.mxu0 %vm468_vm6, %v1024_v35  ;;  %6285 = vmatprep.subr.bf16.mxu1 %v7295_v1 }
 0x531   :  { %v6940_v8 = vpop.eup %6939  ;;  %6280 = vmatpush3.bf16.msra.mxu0 %v1129_v7  ;;  %6281 = vmatprep.mubr.msk.bf16.mxu0 %vm7296_vm4, %v7295_v1 }
 0x532   :  { %v965_v10 = vmul.f32 %v6940_v8, %v7735_v29  ;;  %6291 = vmatprep.subr.bf16.mxu0 %v7295_v1 }
 0x534   :  { %v971_v15 = vpack.c.bf16 %v965_v10, %v964_v9 }
 0x536   :  { %6276 = vmatmul.mubr.msk.bf16.vlgmr.msra.gmra.mxu1 %vm468_vm6, %v971_v15  ;;  %v1122_v18 = vrot.slane %v971_v15, 4 }
 0x537   :  { %6286 = vmatpush3.bf16.msra.mxu1 %v1194_v17  ;;  %6287 = vmatprep.mubr.msk.bf16.mxu1 %vm7296_vm4, %v7295_v1 }
 0x538   :  { %6282 = vmatmul.mubr.msk.bf16.vlgmr.msra.gmra.mxu0 %vm468_vm6, %v1122_v18  ;;  %6297 = vmatprep.subr.bf16.mxu1 %v7295_v1 }
 0x539   :  { %6292 = vmatpush3.bf16.msra.mxu0 %v1244_v19  ;;  %6293 = vmatprep.mubr.msk.bf16.mxu0 %vm7296_vm4, %v7295_v1 }
 0x53a   :  { %6303 = vmatprep.subr.bf16.mxu0 %v7295_v1 }
 0x554   :  { %v944_v20 = vpop.xlane.xlu1 %943 }
 0x555   :  { %6941 = vrcp.f32 %v944_v20 }
 0x558   :  { %v947_v34 = vpop.xlane.xlu0 %946  ;;  %v950_v23 = vpop.xlane.xlu1 %949 }
 0x559   :  { %6943 = vrcp.f32 %v947_v34 }
 0x55c   :  { %v953_v5 = vpop.xlane.xlu0 %952  ;;  %v1337_v32 = vpop.permute.xlu1 %1336 }
 0x55d   :  { %6945 = vrcp.f32 %v953_v5  ;;  %v1342_v38 = vsel %vm979_vm7, %v1337_v32, 0 }
 0x55e   :  { %6947 = vrcp.f32 %v950_v23 }
 0x560   :  { %v1287_v28 = vpop.permute.xlu0 %1286 }
 0x561   :  { %v1292_v33 = vsel %vm979_vm7, %v1287_v28, 0 }
 0x562   :  { %v6942_v26 = vpop.eup %6941 }
 0x563   :  { %v966_v13 = vmul.f32 %v6942_v26, %v7748_v46 }
 0x566   :  { %v6944_v27 = vpop.eup %6943 }
 0x567   :  { %v967_v21 = vmul.f32 %v6944_v27, %v7750_v48 }
 0x569   :  { %v972_v30 = vpack.c.bf16 %v967_v21, %v966_v13 }
 0x56a   :  { %v6946_v29 = vpop.eup %6945 }
 0x56b   :  { %v6948_v31 = vpop.eup %6947  ;;  %6288 = vmatmul.mubr.msk.bf16.vlgmr.msra.gmra.mxu1 %vm468_vm6, %v972_v30  ;;  %v1237_v36 = vrot.slane %v972_v30, 4  ;;  %v969_v37 = vmul.f32 %v6946_v29, %v7760_v51 }
 0x56c   :  { %6298 = vmatpush3.bf16.msra.mxu1 %v1292_v33  ;;  %6299 = vmatprep.mubr.msk.bf16.mxu1 %vm7296_vm4, %v7295_v1  ;;  %v968_v39 = vmul.f32 %v6948_v31, %v7754_v49 }
 0x56d   :  { %6294 = vmatmul.mubr.msk.bf16.vlgmr.msra.gmra.mxu0 %vm468_vm6, %v1237_v36  ;;  %6309 = vmatprep.subr.bf16.mxu1 %v7295_v1 }
 0x56e   :  { %6304 = vmatpush3.bf16.msra.mxu0 %v1342_v38  ;;  %6305 = vmatprep.mubr.msk.bf16.mxu0 %vm7296_vm4, %v7295_v1  ;;  %v973_v41 = vpack.c.bf16 %v969_v37, %v968_v39 }
 0x56f   :  { %6317 = vmatprep.subr.bf16.mxu0 %v7295_v1 }
 0x570   :  { %v1335_v42 = vrot.slane %v973_v41, 4 }
 0x573   :  { %6300 = vmatmul.mubr.msk.bf16.vlgmr.msra.gmra.mxu1 %vm468_vm6, %v973_v41  ;;  %v5826_v41 = vld [vmem:[%s7377_s24] ss:$0 sm:$0xff] }
 0x574   :  { %6313 = vmatprep.mubr.msk.bf16.mxu1 %vm7296_vm4, %v7295_v1  ;;  %6310 = vmatpush3.bf16.msra.mxu1 %v6881_v58 }
 0x575   :  { %6306 = vmatmul.mubr.msk.bf16.vlgmr.msra.gmra.mxu0 %vm468_vm6, %v1335_v42  ;;  %6311 = vmatprep.subr.bf16.mxu1 %v7295_v1 }
 0x576   :  { %6321 = vmatprep.mubr.msk.bf16.mxu0 %vm7296_vm4, %v7295_v1 }
 0x578   :  { %6312 = vmatpush3.bf16.msra.mxu1 %v6882_v60  ;;  %v6884_v60 = vld [vmem:[%s8683_s23] sm:$0xff]  }
 0x579   :  { %6325 = vmatprep.subr.bf16.mxu1 %v7295_v1 }
 0x5ee   :  { %v1017_v43 = vpop.f32.mrf.mxu1 }
 0x5f0   :  { %v6265_v44 = vpop.f32.mrf.mxu1  ;;  %v1067_v45 = vpop.f32.mrf.mxu0 }
 0x5f2   :  { %v1020_v46 = vpop.f32.mrf.mxu1  ;;  %v6271_v48 = vpop.f32.mrf.mxu0 }
 0x5f4   :  { %v6266_v40 = vpop.f32.mrf.mxu1  ;;  %v1070_v49 = vpop.f32.mrf.mxu0 }
 0x5f6   :  { %v6272_v47 = vpop.f32.mrf.mxu0  ;;  %v1115_v50 = vpop.f32.mrf.mxu1 }
 0x5f8   :  { %v6277_v51 = vpop.f32.mrf.mxu1  ;;  %v1165_v52 = vpop.f32.mrf.mxu0 }
 0x5fa   :  { %v1118_v53 = vpop.f32.mrf.mxu1  ;;  %v6283_v54 = vpop.f32.mrf.mxu0 }
 0x5fc   :  { %v6278_v55 = vpop.f32.mrf.mxu1  ;;  %v1168_v56 = vpop.f32.mrf.mxu0 }
 0x5fe   :  { %v6284_v57 = vpop.f32.mrf.mxu0 }
 0x62b   :  { %v1230_v59 = vpop.f32.mrf.mxu1 }
 0x62d   :  { %v6289_v63 = vpop.f32.mrf.mxu1  ;;  %v1280_v2 = vpop.f32.mrf.mxu0 }
 0x62e   :  { %v6818_v3 = vpack.i.bf16 %v1280_v2, %v1067_v45  ;;  %v6885_v63 = vld [vmem:[%s8684_s20 + $0x18] sm:$0xff]  }
 0x62f   :  { %v1233_v4 = vpop.f32.mrf.mxu1  ;;  %v6295_v35 = vpop.f32.mrf.mxu0 }
 0x630   :  { %6819 = vrot.lane.b32.xlu0 %v6818_v3, %s7308_s18 }
 0x631   :  { %v6290_v6 = vpop.f32.mrf.mxu1  ;;  %v1283_v7 = vpop.f32.mrf.mxu0 }
 0x633   :  { %v6296_v8 = vpop.f32.mrf.mxu0  ;;  %v1328_v9 = vpop.f32.mrf.mxu1 }
 0x634   :  { %v6823_v10 = vpack.i.bf16 %v1328_v9, %v1115_v50 }
 0x635   :  { %v6301_v11 = vpop.f32.mrf.mxu1  ;;  %v1378_v15 = vpop.f32.mrf.mxu0 }
 0x636   :  { %v6828_v16 = vpack.i.bf16 %v1378_v15, %v1165_v52  ;;  %6824 = vrot.lane.b32.xlu1 %v6823_v10, %s7309_s22  ;;  %v5830_v10 = vld [vmem:[%s8685_s26] ss:$0 sm:$0xff] }
 0x637   :  { %v1331_v17 = vpop.f32.mrf.mxu1  ;;  %v6307_v18 = vpop.f32.mrf.mxu0 }
 0x638   :  { %6829 = vrot.lane.b32.xlu0 %v6828_v16, %s7310_s3  ;;  %v5831_v17 = vld [vmem:[%s8686_s28] ss:$0 sm:$0xff] }
 0x639   :  { %v6302_v19 = vpop.f32.mrf.mxu1  ;;  %v1381_v20 = vpop.f32.mrf.mxu0 }
 0x63b   :  { %v6308_v34 = vpop.f32.mrf.mxu0 }
 0x6a2   :  { %v6820_v23 = vpop.permute.xlu0 %6819 }
 0x6a3   :  { %v6822_v5 = vunpack.i.h.bf16 %v6820_v23  ;;  %v6821_v26 = vunpack.i.l.bf16 %v6820_v23  ;;  %v6886_v23 = vld [vmem:[%s8684_s20 + $0x10] sm:$0xff]  }
 0x6a5   :  { %v1396_v28 = vsel %vm468_vm6, %v1230_v59, %v6822_v5  ;;  %v1183_v29 = vsel %vm468_vm6, %v1017_v43, %v6821_v26  ;;  %v6887_v5 = vld [vmem:[%s8684_s20 + $0x8] sm:$0xff]   ;;  %v6888_v26 = vld [vmem:[%s8684_s20] sm:$0xff]  }
 0x6a8   :  { %v6825_v27 = vpop.permute.xlu1 %6824 }
 0x6a9   :  { %v6827_v13 = vunpack.i.h.bf16 %v6825_v27  ;;  %v6826_v21 = vunpack.i.l.bf16 %v6825_v27  ;;  %v5832_v27 = vld [vmem:[%s8687_s1] ss:$0 sm:$0xff] }
 0x6aa   :  { %v6830_v30 = vpop.permute.xlu0 %6829 }
 0x6ab   :  { %v1185_v31 = vsel %vm1184_vm11, %v1183_v29, %v6826_v21  ;;  %v1397_v32 = vsel %vm1184_vm11, %v1396_v28, %v6827_v13  ;;  %v6832_v33 = vunpack.i.h.bf16 %v6830_v30  ;;  %v6831_v36 = vunpack.i.l.bf16 %v6830_v30 }
 0x6ad   :  { %v1187_v37 = vsel %vm1186_vm12, %v1185_v31, %v6831_v36  ;;  %v1398_v38 = vsel %vm1186_vm12, %v1397_v32, %v6832_v33 }
 0x6ae   :  { %v1404_v39 = vpack.c.bf16 %v1398_v38, %v1187_v37  ;;  %v5836_v37 = vld [vmem:[%s8688_s2] ss:$0 sm:$0xff] }
 0x6b0   :  { %6314 = vmatmul.mubr.msk.bf16.vlgmr.msra.gmra.mxu1 %vm419_vm5, %v1404_v39 }
 0x6b1   :  { %6333 = vmatprep.mubr.msk.bf16.mxu1 %vm7296_vm4, %v7295_v1  ;;  %6326 = vmatpush3.bf16.msra.mxu1 %v6885_v63 }
 0x6b2   :  { %6327 = vmatprep.subr.bf16.mxu1 %v7295_v1 }
 0x6b5   :  { %6328 = vmatpush3.bf16.msra.mxu1 %v6886_v23 }
 0x6b6   :  { %6329 = vmatprep.subr.bf16.mxu1 %v7295_v1 }
 0x6b9   :  { %6330 = vmatpush3.bf16.msra.mxu1 %v6887_v5 }
 0x6ba   :  { %6331 = vmatprep.subr.bf16.mxu1 %v7295_v1 }
 0x6bd   :  { %6332 = vmatpush3.bf16.msra.mxu1 %v6888_v26 }
 0x6be   :  { %6351 = vmatprep.subr.bf16.mxu1 %v7295_v1 }
 0x770   :  { %v1460_v42 = vpop.f32.mrf.mxu1 }
 0x771   :  { %v1461_v43 = vadd.f32 %v5826_v41, %v1460_v42 }
 0x772   :  { %v6315_v44 = vpop.f32.mrf.mxu1 }
 0x773   :  { %v1467_v45 = vadd.f32 %v1461_v43, %v7574_v25 }
 0x774   :  { %v1463_v46 = vpop.f32.mrf.mxu1 }
 0x775   :  { %v1464_v48 = vadd.f32 %v5826_v41, %v1463_v46  ;;  %v1471_v40 = vsel %vm419_vm5, %v1467_v45, 0.0 }
 0x776   :  { %1472 = vadd.xlane.f32.xlu1 %v1471_v40  ;;  %v6316_v49 = vpop.f32.mrf.mxu1 }
 0x777   :  { %v1468_v47 = vadd.f32 %v1464_v48, %v7572_v24  ;;  %v6883_v24 = vld [vmem:[%s8683_s23 + $0x8] sm:$0xff]  }
 0x778   :  { %6318 = vmatpush3.bf16.msra.mxu0 %v6883_v24 }
 0x779   :  { %v1474_v50 = vsel %vm419_vm5, %v1468_v47, 0.0  ;;  %6319 = vmatprep.subr.bf16.mxu0 %v7295_v1 }
 0x77a   :  { %1475 = vadd.xlane.f32.xlu0 %v1474_v50 }
 0x77c   :  { %6320 = vmatpush3.bf16.msra.mxu0 %v6884_v60 }
 0x77d   :  { %6337 = vmatprep.subr.bf16.mxu0 %v7295_v1 }
 0x7ff   :  { %v1473_v51 = vpop.xlane.xlu1 %1472 }
 0x800   :  { %v1478_v52 = vmul.f32 0.03125, %v1473_v51 }
 0x802   :  { %v1480_v53 = vsub.f32 %v1467_v45, %v1478_v52 }
 0x803   :  { %v1476_v54 = vpop.xlane.xlu0 %1475 }
 0x804   :  { %v1479_v55 = vmul.f32 0.03125, %v1476_v54  ;;  %v1482_v25 = vmul.f32 %v1480_v53, %v1480_v53 }
 0x806   :  { %v1481_v56 = vsub.f32 %v1468_v47, %v1479_v55  ;;  %v1484_v57 = vsel %vm419_vm5, %v1482_v25, 0.0 }
 0x807   :  { %1485 = vadd.xlane.f32.xlu0 %v1484_v57  ;;  %v6889_v57 = vld [vmem:[%s7362_s8 + $0x18] sm:$0xff]  }
 0x808   :  { %v1483_v58 = vmul.f32 %v1481_v56, %v1481_v56 }
 0x80a   :  { %v1487_v59 = vsel %vm419_vm5, %v1483_v58, 0.0  ;;  %v6890_v58 = vld [vmem:[%s7362_s8 + $0x10] sm:$0xff]   ;;  %s8691_s8 = sld [smem:[#allocation22_spill]] }
 0x80b   :  { %1488 = vadd.xlane.f32.xlu1 %v1487_v59 }
 0x890   :  { %v1486_v2 = vpop.xlane.xlu0 %1485 }
 0x891   :  { %v1490_v3 = vmul.f32 0.03125, %v1486_v2 }
 0x893   :  { %v1492_v4 = vadd.f32 1e-05, %v1490_v3 }
 0x894   :  { %v1489_v35 = vpop.xlane.xlu1 %1488 }
 0x895   :  { %6949 = vrsqrt.f32 %v1492_v4  ;;  %v1491_v6 = vmul.f32 0.03125, %v1489_v35 }
 0x897   :  { %v1493_v7 = vadd.f32 1e-05, %v1491_v6  ;;  %v5842_v6 = vld [vmem:[%s8689_s0] ss:$0 sm:$0xff] }
 0x899   :  { %6951 = vrsqrt.f32 %v1493_v7 }
 0x8a2   :  { %v6950_v8 = vpop.eup %6949 }
 0x8a3   :  { %v1496_v9 = vmul.f32 %v6950_v8, %v1480_v53 }
 0x8a5   :  { %v1504_v16 = vmul.f32 %v5830_v10, %v1496_v9 }
 0x8a6   :  { %v6952_v11 = vpop.eup %6951 }
 0x8a7   :  { %v1497_v15 = vmul.f32 %v6952_v11, %v1481_v56  ;;  %v1512_v19 = vadd.f32 %v5831_v17, %v1504_v16 }
 0x8a9   :  { %v1505_v18 = vmul.f32 %v5830_v10, %v1497_v15  ;;  %v5843_v10 = vld [vmem:[%s8690_s13] ss:$0 sm:$0xff] }
 0x8ab   :  { %v1513_v20 = vadd.f32 %v5831_v17, %v1505_v18 }
 0x8ad   :  { %v1519_v34 = vpack.c.bf16 %v1513_v20, %v1512_v19 }
 0x8af   :  { %6322 = vmatmul.mubr.msk.bf16.vlgmr.msra.gmra.mxu0 %vm419_vm5, %v1519_v34 }
 0x8b0   :  { %6341 = vmatprep.mubr.msk.bf16.mxu0 %vm7296_vm4, %v7295_v1  ;;  %6338 = vmatpush3.bf16.msra.mxu0 %v6889_v57 }
 0x8b1   :  { %6339 = vmatprep.subr.bf16.mxu0 %v7295_v1 }
 0x8b4   :  { %6340 = vmatpush3.bf16.msra.mxu0 %v6890_v58 }
 0x8b5   :  { %6345 = vmatprep.subr.bf16.mxu0 %v7295_v1 }
 0x96f   :  { %v1575_v13 = vpop.f32.mrf.mxu0 }
 0x970   :  { %v1576_v28 = vadd.f32 %v5832_v27, %v1575_v13 }
 0x971   :  { %v6323_v21 = vpop.f32.mrf.mxu0 }
 0x972   :  { %v1582_v32 = vmax.f32 %v1576_v28, 0.0 }
 0x973   :  { %v1578_v29 = vpop.f32.mrf.mxu0 }
 0x974   :  { %v1579_v30 = vadd.f32 %v5832_v27, %v1578_v29 }
 0x975   :  { %v6324_v31 = vpop.f32.mrf.mxu0 }
 0x976   :  { %v1583_v33 = vmax.f32 %v1579_v30, 0.0 }
 0x978   :  { %v1593_v36 = vpack.c.bf16 %v1583_v33, %v1582_v32 }
 0x97a   :  { %6334 = vmatmul.mubr.msk.bf16.vlgmr.msra.gmra.mxu1 %vm1624_vm13, %v1593_v36 }
 0x97b   :  { %6353 = vmatprep.mubr.msk.bf16.mxu1 %vm7296_vm4, %v7295_v1 }
 0xa3a   :  { %v1662_v38 = vpop.f32.mrf.mxu1 }
 0xa3b   :  { %v1663_v39 = vadd.f32 %v5836_v37, %v1662_v38 }
 0xa3c   :  { %v6335_v41 = vpop.f32.mrf.mxu1 }
 0xa3d   :  { %v1669_v42 = vadd.f32 %v1663_v39, %v1512_v19  ;;  %v5849_v19 = vld [vmem:[%s7367_s14 + $0x1] ss:$0 sm:$0xff]  ;;  %s8692_s14 = sld [smem:[#allocation24_spill]] }
 0xa3e   :  { %v1665_v43 = vpop.f32.mrf.mxu1 }
 0xa3f   :  { %v1666_v44 = vadd.f32 %v5836_v37, %v1665_v43  ;;  %v1673_v45 = vsel %vm419_vm5, %v1669_v42, 0.0 }
 0xa40   :  { %1674 = vadd.xlane.f32.xlu0 %v1673_v45  ;;  %v6336_v46 = vpop.f32.mrf.mxu1 }
 0xa41   :  { %v1670_v48 = vadd.f32 %v1666_v44, %v1513_v20 }
 0xa43   :  { %v1676_v40 = vsel %vm419_vm5, %v1670_v48, 0.0 }
 0xa44   :  { %1677 = vadd.xlane.f32.xlu1 %v1676_v40 }
 0xac9   :  { %v1675_v49 = vpop.xlane.xlu0 %1674 }
 0xaca   :  { %v1679_v47 = vmul.f32 0.03125, %v1675_v49 }
 0xacc   :  { %v1681_v50 = vsub.f32 %v1669_v42, %v1679_v47 }
 0xacd   :  { %v1678_v51 = vpop.xlane.xlu1 %1677 }
 0xace   :  { %v1680_v52 = vmul.f32 0.03125, %v1678_v51  ;;  %v1683_v53 = vmul.f32 %v1681_v50, %v1681_v50 }
 0xad0   :  { %v1682_v54 = vsub.f32 %v1670_v48, %v1680_v52  ;;  %v1685_v55 = vsel %vm419_vm5, %v1683_v53, 0.0 }
 0xad1   :  { %1686 = vadd.xlane.f32.xlu0 %v1685_v55 }
 0xad2   :  { %v1684_v25 = vmul.f32 %v1682_v54, %v1682_v54 }
 0xad4   :  { %v1688_v56 = vsel %vm419_vm5, %v1684_v25, 0.0 }
 0xad5   :  { %1689 = vadd.xlane.f32.xlu1 %v1688_v56 }
 0xb5a   :  { %v1687_v59 = vpop.xlane.xlu0 %1686 }
 0xb5b   :  { %v1691_v24 = vmul.f32 0.03125, %v1687_v59 }
 0xb5d   :  { %v1693_v60 = vadd.f32 1e-05, %v1691_v24 }
 0xb5e   :  { %v1690_v63 = vpop.xlane.xlu1 %1689 }
 0xb5f   :  { %6953 = vrsqrt.f32 %v1693_v60  ;;  %v1692_v2 = vmul.f32 0.03125, %v1690_v63 }
 0xb61   :  { %v1694_v3 = vadd.f32 1e-05, %v1692_v2 }
 0xb63   :  { %6955 = vrsqrt.f32 %v1694_v3 }
 0xb6c   :  { %v6954_v4 = vpop.eup %6953 }
 0xb6d   :  { %v1697_v35 = vmul.f32 %v6954_v4, %v1681_v50 }
 0xb6f   :  { %v1705_v9 = vmul.f32 %v5842_v6, %v1697_v35 }
 0xb70   :  { %v6956_v7 = vpop.eup %6955 }
 0xb71   :  { %v1698_v8 = vmul.f32 %v6956_v7, %v1682_v54  ;;  %v7865_v15 = vadd.f32 %v5843_v10, %v1705_v9 }
 0xb73   :  { %v1706_v11 = vmul.f32 %v5842_v6, %v1698_v8 }
 0xb75   :  { %v7867_v16 = vadd.f32 %v5843_v10, %v1706_v11 }
 0xb77   :  { %v1722_v17 = vpack.c.bf16 %v7867_v16, %v7865_v15 }
 0xb79   :  { %6342 = vmatmul.mubr.msk.bf16.vlgmr.msra.gmra.mxu0 %vm419_vm5, %v1722_v17 }
 0xb7a   :  { %6347 = vmatprep.mubr.msk.bf16.mxu0 %vm7296_vm4, %v7295_v1 }
 0xc39   :  { %v1778_v18 = vpop.f32.mrf.mxu0 }
 0xc3a   :  { %v1779_v23 = vadd.f32 %v5849_v19, %v1778_v18 }
 0xc3b   :  { %v6343_v20 = vpop.f32.mrf.mxu0 }
 0xc3d   :  { %v1781_v34 = vpop.f32.mrf.mxu0 }
 0xc3e   :  { %v1782_v5 = vadd.f32 %v5849_v19, %v1781_v34 }
 0xc3f   :  { %v6344_v26 = vpop.f32.mrf.mxu0 }
 0xc40   :  { %v7875_v27 = vpack.c.bf16 %v1782_v5, %v1779_v23 }
 0xc42   :  { %1837 = vrot.lane.b32.xlu1 %v7875_v27, %s7300_s30  ;;  %1787 = vrot.lane.b32.xlu0 %v7875_v27, %s7298_s21  ;;  %v7890_v13 = vrot.slane %v7875_v27, 4 }
 0xc46   :  { %1835 = vrot.lane.b32.xlu1 %v7875_v27, %s7297_s5  ;;  %1887 = vrot.lane.b32.xlu0 %v7875_v27, %s7302_s4 }
 0xc4a   :  { %1937 = vrot.lane.b32.xlu1 %v7875_v27, %s7299_s25  ;;  %1885 = vrot.lane.b32.xlu0 %v7875_v27, %s7303_s10 }
 0xc4e   :  { %1935 = vrot.lane.b32.xlu1 %v7875_v27, %s7301_s6  ;;  %1986 = vrot.lane.b32.xlu0 %v7890_v13, %s7298_s21 }
 0xc52   :  { %2036 = vrot.lane.b32.xlu1 %v7890_v13, %s7300_s30  ;;  %2034 = vrot.lane.b32.xlu0 %v7890_v13, %s7297_s5 }
 0xc56   :  { %2086 = vrot.lane.b32.xlu1 %v7890_v13, %s7302_s4  ;;  %2136 = vrot.lane.b32.xlu0 %v7890_v13, %s7299_s25 }
 0xc5a   :  { %2084 = vrot.lane.b32.xlu1 %v7890_v13, %s7303_s10  ;;  %2134 = vrot.lane.b32.xlu0 %v7890_v13, %s7301_s6 }
 0xc5e   :  { %2342 = vrot.lane.b32.xlu1 %v7875_v27, %s7307_s16  ;;  %2292 = vrot.lane.b32.xlu0 %v7875_v27, %s7304_s11 }
 0xcb4   :  { %v1838_v21 = vpop.permute.xlu1 %1837  ;;  %v1788_v28 = vpop.permute.xlu0 %1787 }
 0xcb5   :  { %v1843_v29 = vsel %vm468_vm6, %v1838_v21, 0  ;;  %v1793_v30 = vsel %vm468_vm6, %v1788_v28, 0 }
 0xcb6   :  { %6346 = vmatpush3.bf16.xpose.msra.mxu0 %v1793_v30  ;;  %6352 = vmatpush3.bf16.xpose.msra.mxu1 %v1843_v29 }
 0xcb7   :  { %6357 = vmatprep.subr.bf16.mxu0 %v7295_v1  ;;  %6363 = vmatprep.subr.bf16.mxu1 %v7295_v1 }
 0xcb8   :  { %v1836_v31 = vpop.permute.xlu1 %1835  ;;  %v1888_v32 = vpop.permute.xlu0 %1887 }
 0xcb9   :  { %v1893_v37 = vsel %vm468_vm6, %v1888_v32, 0 }
 0xcbc   :  { %v1938_v33 = vpop.permute.xlu1 %1937  ;;  %v1886_v36 = vpop.permute.xlu0 %1885 }
 0xcbd   :  { %v1943_v38 = vsel %vm468_vm6, %v1938_v33, 0  ;;  %6348 = vmatmul.mubr.msk.bf16.vlgmr.msra.gmra.mxu0 %vm468_vm6, %v7875_v27  ;;  %6354 = vmatmul.mubr.msk.bf16.vlgmr.msra.gmra.mxu1 %vm468_vm6, %v1836_v31 }
 0xcbe   :  { %6358 = vmatpush3.bf16.xpose.msra.mxu0 %v1893_v37  ;;  %6364 = vmatpush3.bf16.xpose.msra.mxu1 %v1943_v38 }
 0xcbf   :  { %6359 = vmatprep.mubr.msk.bf16.mxu0 %vm7296_vm4, %v7295_v1  ;;  %6365 = vmatprep.mubr.msk.bf16.mxu1 %vm7296_vm4, %v7295_v1 }
 0xcc0   :  { %v1936_v39 = vpop.permute.xlu1 %1935  ;;  %v1987_v41 = vpop.permute.xlu0 %1986  ;;  %6369 = vmatprep.subr.bf16.mxu0 %v7295_v1  ;;  %6375 = vmatprep.subr.bf16.mxu1 %v7295_v1 }
 0xcc1   :  { %v1992_v44 = vsel %vm468_vm6, %v1987_v41, 0 }
 0xcc4   :  { %v2037_v42 = vpop.permute.xlu1 %2036  ;;  %v2035_v43 = vpop.permute.xlu0 %2034 }
 0xcc5   :  { %v2042_v45 = vsel %vm468_vm6, %v2037_v42, 0  ;;  %6360 = vmatmul.mubr.msk.bf16.vlgmr.msra.gmra.mxu0 %vm468_vm6, %v1886_v36  ;;  %6366 = vmatmul.mubr.msk.bf16.vlgmr.msra.gmra.mxu1 %vm468_vm6, %v1936_v39 }
 0xcc6   :  { %6370 = vmatpush3.bf16.xpose.msra.mxu0 %v1992_v44  ;;  %6376 = vmatpush3.bf16.xpose.msra.mxu1 %v2042_v45 }
 0xcc7   :  { %6371 = vmatprep.mubr.msk.bf16.mxu0 %vm7296_vm4, %v7295_v1  ;;  %6377 = vmatprep.mubr.msk.bf16.mxu1 %vm7296_vm4, %v7295_v1 }
 0xcc8   :  { %v2087_v46 = vpop.permute.xlu1 %2086  ;;  %v2137_v48 = vpop.permute.xlu0 %2136  ;;  %6381 = vmatprep.subr.bf16.mxu0 %v7295_v1  ;;  %6387 = vmatprep.subr.bf16.mxu1 %v7295_v1 }
 0xcc9   :  { %v2092_v47 = vsel %vm468_vm6, %v2087_v46, 0  ;;  %v2142_v50 = vsel %vm468_vm6, %v2137_v48, 0 }
 0xccc   :  { %v2085_v40 = vpop.permute.xlu1 %2084  ;;  %v2135_v49 = vpop.permute.xlu0 %2134 }
 0xccd   :  { %6372 = vmatmul.mubr.msk.bf16.vlgmr.msra.gmra.mxu0 %vm468_vm6, %v7890_v13  ;;  %6378 = vmatmul.mubr.msk.bf16.vlgmr.msra.gmra.mxu1 %vm468_vm6, %v2035_v43 }
 0xcce   :  { %6382 = vmatpush3.bf16.xpose.msra.mxu0 %v2092_v47  ;;  %6388 = vmatpush3.bf16.xpose.msra.mxu1 %v2142_v50 }
 0xccf   :  { %6383 = vmatprep.mubr.msk.bf16.mxu0 %vm7296_vm4, %v7295_v1  ;;  %6389 = vmatprep.mubr.msk.bf16.mxu1 %vm7296_vm4, %v7295_v1 }
 0xcd0   :  { %6393 = vmatprep.subr.bf16.mxu0 %v7295_v1  ;;  %6399 = vmatprep.subr.bf16.mxu1 %v7295_v1  ;;  %v2343_v51 = vpop.permute.xlu1 %2342  ;;  %v2293_v52 = vpop.permute.xlu0 %2292 }
 0xcd1   :  { %v2348_v53 = vsel %vm979_vm7, %v2343_v51, 0  ;;  %v2298_v54 = vsel %vm979_vm7, %v2293_v52, 0 }
 0xcd5   :  { %6384 = vmatmul.mubr.msk.bf16.vlgmr.msra.gmra.mxu0 %vm468_vm6, %v2085_v40  ;;  %6390 = vmatmul.mubr.msk.bf16.vlgmr.msra.gmra.mxu1 %vm468_vm6, %v2135_v49 }
 0xcd6   :  { %6394 = vmatpush3.bf16.msra.mxu0 %v2298_v54  ;;  %6400 = vmatpush3.bf16.msra.mxu1 %v2348_v53 }
 0xcd7   :  { %6395 = vmatprep.mubr.msk.bf16.mxu0 %vm7296_vm4, %v7295_v1  ;;  %6405 = vmatprep.subr.bf16.mxu0 %v7295_v1 }
 0xcd8   :  { %6401 = vmatprep.mubr.msk.bf16.mxu1 %vm7296_vm4, %v7295_v1  ;;  %6411 = vmatprep.subr.bf16.mxu1 %v7295_v1 }
 0xd7d   :  { %v1829_v55 = vpop.f32.mrf.mxu0  ;;  %v1879_v25 = vpop.f32.mrf.mxu1 }
 0xd7e   :  { %v2184_v56 = vmul.f32 0.35355338, %v1829_v55  ;;  %v2185_v57 = vmul.f32 0.35355338, %v1879_v25 }
 0xd7f   :  { %v6349_v58 = vpop.f32.mrf.mxu0  ;;  %v6355_v59 = vpop.f32.mrf.mxu1 }
 0xd80   :  { %v7960_v24 = vsel %vm872_vm9, -1e+10, %v2184_v56  ;;  %v7964_v60 = vsel %vm872_vm9, -1e+10, %v2185_v57 }
 0xd81   :  { %v1832_v63 = vpop.f32.mrf.mxu0  ;;  %v1882_v2 = vpop.f32.mrf.mxu1  ;;  %v2200_v3 = vsel %vm468_vm6, %v7960_v24, -inf  ;;  %v2203_v4 = vsel %vm468_vm6, %v7964_v60, -inf }
 0xd82   :  { %2201 = vmax.xlane.f32.xlu1 %v2200_v3  ;;  %2204 = vmax.xlane.f32.xlu0 %v2203_v4 }
 0xd83   :  { %v6350_v35 = vpop.f32.mrf.mxu0  ;;  %v6356_v6 = vpop.f32.mrf.mxu1 }
 0xd85   :  { %v1929_v7 = vpop.f32.mrf.mxu0  ;;  %v1979_v8 = vpop.f32.mrf.mxu1 }
 0xd86   :  { %v2186_v9 = vmul.f32 0.35355338, %v1929_v7  ;;  %v2187_v10 = vmul.f32 0.35355338, %v1979_v8 }
 0xd87   :  { %v6361_v11 = vpop.f32.mrf.mxu0  ;;  %v6367_v17 = vpop.f32.mrf.mxu1 }
 0xd88   :  { %v2194_v18 = vsel %vm872_vm9, -1e+10, %v2186_v9  ;;  %v7974_v19 = vsel %vm872_vm9, -1e+10, %v2187_v10 }
 0xd89   :  { %v1932_v20 = vpop.f32.mrf.mxu0  ;;  %v1982_v34 = vpop.f32.mrf.mxu1  ;;  %v2206_v23 = vsel %vm468_vm6, %v2194_v18, -inf  ;;  %v2209_v5 = vsel %vm468_vm6, %v7974_v19, -inf }
 0xd8a   :  { %2207 = vmax.xlane.f32.xlu0 %v2206_v23  ;;  %2210 = vmax.xlane.f32.xlu1 %v2209_v5 }
 0xd8b   :  { %v6362_v26 = vpop.f32.mrf.mxu0  ;;  %v6368_v21 = vpop.f32.mrf.mxu1 }
 0xd8d   :  { %v2028_v28 = vpop.f32.mrf.mxu0  ;;  %v2078_v29 = vpop.f32.mrf.mxu1 }
 0xd8e   :  { %v2188_v30 = vmul.f32 0.35355338, %v2028_v28  ;;  %v2189_v31 = vmul.f32 0.35355338, %v2078_v29 }
 0xd8f   :  { %v6373_v32 = vpop.f32.mrf.mxu0  ;;  %v6379_v33 = vpop.f32.mrf.mxu1 }
 0xd90   :  { %v2196_v36 = vsel %vm873_vm10, -1e+10, %v2188_v30  ;;  %v7983_v37 = vsel %vm873_vm10, -1e+10, %v2189_v31 }
 0xd91   :  { %v2031_v38 = vpop.f32.mrf.mxu0  ;;  %v2081_v39 = vpop.f32.mrf.mxu1  ;;  %v2212_v41 = vsel %vm468_vm6, %v2196_v36, -inf  ;;  %v2215_v42 = vsel %vm468_vm6, %v7983_v37, -inf }
 0xd92   :  { %2213 = vmax.xlane.f32.xlu0 %v2212_v41  ;;  %2216 = vmax.xlane.f32.xlu1 %v2215_v42 }
 0xd93   :  { %v6374_v43 = vpop.f32.mrf.mxu0  ;;  %v6380_v44 = vpop.f32.mrf.mxu1 }
 0xd95   :  { %v2128_v45 = vpop.f32.mrf.mxu0  ;;  %v2178_v46 = vpop.f32.mrf.mxu1 }
 0xd96   :  { %v2190_v48 = vmul.f32 0.35355338, %v2128_v45  ;;  %v2191_v40 = vmul.f32 0.35355338, %v2178_v46 }
 0xd97   :  { %v6385_v49 = vpop.f32.mrf.mxu0  ;;  %v6391_v47 = vpop.f32.mrf.mxu1 }
 0xd98   :  { %v2198_v50 = vsel %vm873_vm10, -1e+10, %v2190_v48  ;;  %v2199_v51 = vsel %vm873_vm10, -1e+10, %v2191_v40 }
 0xd99   :  { %v2131_v52 = vpop.f32.mrf.mxu0  ;;  %v2181_v53 = vpop.f32.mrf.mxu1  ;;  %v2218_v54 = vsel %vm468_vm6, %v2198_v50, -inf  ;;  %v2221_v55 = vsel %vm468_vm6, %v2199_v51, -inf }
 0xd9a   :  { %2219 = vmax.xlane.f32.xlu0 %v2218_v54  ;;  %2222 = vmax.xlane.f32.xlu1 %v2221_v55 }
 0xd9b   :  { %v6386_v25 = vpop.f32.mrf.mxu0  ;;  %v6392_v56 = vpop.f32.mrf.mxu1 }
 0xdab   :  { %2390 = vrot.lane.b32.xlu1 %v7875_v27, %s7305_s9 }
 0xdb0   :  { %2440 = vrot.lane.b32.xlu0 %v7875_v27, %s7306_s15 }
 0xe0b   :  { %v2202_v57 = vpop.xlane.xlu1 %2201  ;;  %v2205_v58 = vpop.xlane.xlu0 %2204 }
 0xe0c   :  { %v2224_v59 = vsub.f32 %v7960_v24, %v2202_v57  ;;  %v2225_v63 = vsub.f32 %v7964_v60, %v2205_v58 }
 0xe0e   :  { %v2232_v2 = vmul.f32 1.442695, %v2224_v59  ;;  %v2234_v3 = vmul.f32 1.442695, %v2225_v63 }
 0xe10   :  { %6957 = vpow2.f32 %v2232_v2 }
 0xe11   :  { %6959 = vpow2.f32 %v2234_v3 }
 0xe13   :  { %v2208_v4 = vpop.xlane.xlu0 %2207  ;;  %v2211_v34 = vpop.xlane.xlu1 %2210 }
 0xe14   :  { %v2226_v35 = vsub.f32 %v2194_v18, %v2208_v4  ;;  %v2227_v23 = vsub.f32 %v7974_v19, %v2211_v34 }
 0xe16   :  { %v2236_v6 = vmul.f32 1.442695, %v2226_v35  ;;  %v2238_v26 = vmul.f32 1.442695, %v2227_v23 }
 0xe18   :  { %6961 = vpow2.f32 %v2236_v6 }
 0xe1b   :  { %v2214_v7 = vpop.xlane.xlu0 %2213  ;;  %v2217_v5 = vpop.xlane.xlu1 %2216 }
 0xe1c   :  { %v2228_v8 = vsub.f32 %v2196_v36, %v2214_v7  ;;  %v2229_v21 = vsub.f32 %v7983_v37, %v2217_v5 }
 0xe1d   :  { %v6958_v9 = vpop.eup %6957 }
 0xe1e   :  { %v6960_v10 = vpop.eup %6959  ;;  %v2240_v11 = vmul.f32 1.442695, %v2228_v8  ;;  %v2248_v27 = vsel %vm468_vm6, %v6958_v9, 0.0  ;;  %v2242_v29 = vmul.f32 1.442695, %v2229_v21 }
 0xe1f   :  { %2249 = vadd.xlane.f32.xlu0 %v2248_v27  ;;  %v2251_v24 = vsel %vm468_vm6, %v6960_v10, 0.0 }
 0xe20   :  { %6963 = vpow2.f32 %v2240_v11  ;;  %2252 = vadd.xlane.f32.xlu1 %v2251_v24 }
 0xe21   :  { %6965 = vpow2.f32 %v2238_v26 }
 0xe22   :  { %6967 = vpow2.f32 %v2242_v29 }
 0xe23   :  { %v2223_v28 = vpop.xlane.xlu1 %2222  ;;  %v2220_v31 = vpop.xlane.xlu0 %2219 }
 0xe24   :  { %v2231_v30 = vsub.f32 %v2199_v51, %v2223_v28  ;;  %v2230_v33 = vsub.f32 %v2198_v50, %v2220_v31 }
 0xe25   :  { %v8002_v60 = vpop.eup %6961 }
 0xe26   :  { %v2254_v17 = vsel %vm468_vm6, %v8002_v60, 0.0  ;;  %v2246_v32 = vmul.f32 1.442695, %v2231_v30  ;;  %v2244_v36 = vmul.f32 1.442695, %v2230_v33 }
 0xe27   :  { %2255 = vadd.xlane.f32.xlu0 %v2254_v17  ;;  %v2441_v45 = vpop.permute.xlu0 %2440  ;;  %v2391_v46 = vpop.permute.xlu1 %2390 }
 0xe28   :  { %6969 = vpow2.f32 %v2246_v32  ;;  %v2396_v53 = vsel %vm979_vm7, %v2391_v46, 0 }
 0xe29   :  { %6971 = vpow2.f32 %v2244_v36 }
 0xe2d   :  { %v8006_v18 = vpop.eup %6963 }
 0xe2e   :  { %v2260_v20 = vsel %vm468_vm6, %v8006_v18, 0.0  ;;  %v6966_v38 = vpop.eup %6965 }
 0xe2f   :  { %2261 = vadd.xlane.f32.xlu0 %v2260_v20  ;;  %v2257_v19 = vsel %vm468_vm6, %v6966_v38, 0.0  ;;  %v6968_v39 = vpop.eup %6967 }
 0xe30   :  { %v2263_v37 = vsel %vm468_vm6, %v6968_v39, 0.0 }
 0xe31   :  { %2503 = vrot.lane.b32.xlu1 %v7890_v13, %s7304_s11 }
 0xe35   :  { %v8018_v41 = vpop.eup %6969 }
 0xe36   :  { %v2269_v42 = vsel %vm468_vm6, %v8018_v41, 0.0  ;;  %v8022_v43 = vpop.eup %6971 }
 0xe37   :  { %v2266_v44 = vsel %vm468_vm6, %v8022_v43, 0.0 }
 0xe45   :  { %2553 = vrot.lane.b32.xlu0 %v7890_v13, %s7307_s16 }
 0xe55   :  { %2258 = vadd.xlane.f32.xlu1 %v2257_v19 }
 0xe59   :  { %2264 = vadd.xlane.f32.xlu1 %v2263_v37 }
 0xe5d   :  { %2270 = vadd.xlane.f32.xlu1 %v2269_v42 }
 0xe64   :  { %2267 = vadd.xlane.f32.xlu0 %v2266_v44 }
 0xe6e   :  { %2601 = vrot.lane.b32.xlu1 %v7890_v13, %s7305_s9 }
 0xe7a   :  { %2651 = vrot.lane.b32.xlu0 %v7890_v13, %s7306_s15  ;;  %v2446_v13 = vsel %vm979_vm7, %v2441_v45, 0 }
 0xea8   :  { %v2250_v48 = vpop.xlane.xlu0 %2249 }
 0xea9   :  { %6973 = vrcp.f32 %v2250_v48  ;;  %v2253_v40 = vpop.xlane.xlu1 %2252  ;;  %v6891_v48 = vld [vmem:[%s7372_s19 + $0x18] sm:$0xff]  }
 0xeaa   :  { %6975 = vrcp.f32 %v2253_v40 }
 0xead   :  { %v2504_v55 = vpop.permute.xlu1 %2503 }
 0xeb0   :  { %v2256_v25 = vpop.xlane.xlu0 %2255 }
 0xeb1   :  { %6977 = vrcp.f32 %v2256_v25 }
 0xeb6   :  { %v6974_v49 = vpop.eup %6973 }
 0xeb7   :  { %v6976_v47 = vpop.eup %6975  ;;  %v2280_v50 = vmul.f32 %v6974_v49, %v6958_v9 }
 0xeb8   :  { %v2281_v51 = vmul.f32 %v6976_v47, %v6960_v10  ;;  %v2262_v57 = vpop.xlane.xlu0 %2261  ;;  %v2509_v10 = vsel %vm979_vm7, %v2504_v55, 0 }
 0xeba   :  { %v2288_v52 = vpack.c.bf16 %v2281_v51, %v2280_v50  ;;  %v6892_v51 = vld [vmem:[%s7372_s19 + $0x10] sm:$0xff]   ;;  %s8693_s19 = sld [smem:[#allocation34_spill]] }
 0xebc   :  { %6396 = vmatmul.mubr.msk.bf16.vlgmr.msra.gmra.mxu0 %vm468_vm6, %v2288_v52  ;;  %v2341_v54 = vrot.slane %v2288_v52, 4  ;;  %v2554_v59 = vpop.permute.xlu0 %2553 }
 0xebd   :  { %6406 = vmatpush3.bf16.msra.mxu0 %v2396_v53  ;;  %6407 = vmatprep.mubr.msk.bf16.mxu0 %vm7296_vm4, %v7295_v1  ;;  %v2559_v24 = vsel %vm979_vm7, %v2554_v59, 0 }
 0xebe   :  { %6402 = vmatmul.mubr.msk.bf16.vlgmr.msra.gmra.mxu1 %vm468_vm6, %v2341_v54  ;;  %6417 = vmatprep.subr.bf16.mxu0 %v7295_v1  ;;  %v6978_v2 = vpop.eup %6977 }
 0xebf   :  { %6412 = vmatpush3.bf16.msra.mxu1 %v2446_v13  ;;  %6413 = vmatprep.mubr.msk.bf16.mxu1 %vm7296_vm4, %v7295_v1  ;;  %v2282_v35 = vmul.f32 %v6978_v2, %v8002_v60 }
 0xec0   :  { %6423 = vmatprep.subr.bf16.mxu1 %v7295_v1 }
 0xede   :  { %v2259_v56 = vpop.xlane.xlu1 %2258 }
 0xedf   :  { %6979 = vrcp.f32 %v2259_v56 }
 0xee0   :  { %6981 = vrcp.f32 %v2262_v57 }
 0xee2   :  { %v2265_v58 = vpop.xlane.xlu1 %2264 }
 0xee3   :  { %6983 = vrcp.f32 %v2265_v58 }
 0xee6   :  { %v2271_v63 = vpop.xlane.xlu1 %2270 }
 0xee7   :  { %6985 = vrcp.f32 %v2271_v63 }
 0xeea   :  { %v2602_v20 = vpop.permute.xlu1 %2601 }
 0xeeb   :  { %v2607_v5 = vsel %vm979_vm7, %v2602_v20, 0 }
 0xeec   :  { %v6980_v3 = vpop.eup %6979 }
 0xeed   :  { %v2268_v4 = vpop.xlane.xlu0 %2267  ;;  %v2283_v6 = vmul.f32 %v6980_v3, %v6966_v38  ;;  %v6982_v7 = vpop.eup %6981 }
 0xeee   :  { %6987 = vrcp.f32 %v2268_v4  ;;  %v2284_v60 = vmul.f32 %v6982_v7, %v8006_v18 }
 0xeef   :  { %v2289_v8 = vpack.c.bf16 %v2283_v6, %v2282_v35 }
 0xef0   :  { %v6984_v9 = vpop.eup %6983 }
 0xef1   :  { %6408 = vmatmul.mubr.msk.bf16.vlgmr.msra.gmra.mxu0 %vm468_vm6, %v2289_v8  ;;  %v2439_v11 = vrot.slane %v2289_v8, 4  ;;  %v2285_v27 = vmul.f32 %v6984_v9, %v6968_v39  ;;  %v2652_v34 = vpop.permute.xlu0 %2651 }
 0xef2   :  { %6418 = vmatpush3.bf16.msra.mxu0 %v2509_v10  ;;  %6419 = vmatprep.mubr.msk.bf16.mxu0 %vm7296_vm4, %v7295_v1  ;;  %v2657_v21 = vsel %vm979_vm7, %v2652_v34, 0 }
 0xef3   :  { %6414 = vmatmul.mubr.msk.bf16.vlgmr.msra.gmra.mxu1 %vm468_vm6, %v2439_v11  ;;  %6429 = vmatprep.subr.bf16.mxu0 %v7295_v1  ;;  %v2290_v17 = vpack.c.bf16 %v2285_v27, %v2284_v60 }
 0xef4   :  { %6424 = vmatpush3.bf16.msra.mxu1 %v2559_v24  ;;  %6425 = vmatprep.mubr.msk.bf16.mxu1 %vm7296_vm4, %v7295_v1  ;;  %v6986_v23 = vpop.eup %6985 }
 0xef5   :  { %6435 = vmatprep.subr.bf16.mxu1 %v7295_v1  ;;  %v2552_v26 = vrot.slane %v2290_v17, 4  ;;  %v2287_v29 = vmul.f32 %v6986_v23, %v8018_v41 }
 0xef9   :  { %6420 = vmatmul.mubr.msk.bf16.vlgmr.msra.gmra.mxu0 %vm468_vm6, %v2290_v17 }
 0xefa   :  { %6430 = vmatpush3.bf16.msra.mxu0 %v2607_v5  ;;  %6431 = vmatprep.mubr.msk.bf16.mxu0 %vm7296_vm4, %v7295_v1 }
 0xefb   :  { %v6988_v18 = vpop.eup %6987  ;;  %6426 = vmatmul.mubr.msk.bf16.vlgmr.msra.gmra.mxu1 %vm468_vm6, %v2552_v26  ;;  %6441 = vmatprep.subr.bf16.mxu0 %v7295_v1 }
 0xefc   :  { %6436 = vmatpush3.bf16.msra.mxu1 %v2657_v21  ;;  %v2286_v28 = vmul.f32 %v6988_v18, %v8022_v43  ;;  %6437 = vmatprep.mubr.msk.bf16.mxu1 %vm7296_vm4, %v7295_v1 }
 0xefd   :  { %6449 = vmatprep.subr.bf16.mxu1 %v7295_v1 }
 0xefe   :  { %v2291_v30 = vpack.c.bf16 %v2287_v29, %v2286_v28 }
 0xf00   :  { %v2650_v31 = vrot.slane %v2291_v30, 4 }
 0xf01   :  { %6432 = vmatmul.mubr.msk.bf16.vlgmr.msra.gmra.mxu0 %vm468_vm6, %v2291_v30  ;;  %v5874_v30 = vld [vmem:[%s7377_s24 + $0x1] ss:$0 sm:$0xff]  ;;  %s8694_s24 = sld [smem:[#allocation25_spill]] }
 0xf02   :  { %6445 = vmatprep.mubr.msk.bf16.mxu0 %vm7296_vm4, %v7295_v1  ;;  %6442 = vmatpush3.bf16.msra.mxu0 %v6891_v48 }
 0xf03   :  { %6438 = vmatmul.mubr.msk.bf16.vlgmr.msra.gmra.mxu1 %vm468_vm6, %v2650_v31  ;;  %6443 = vmatprep.subr.bf16.mxu0 %v7295_v1 }
 0xf04   :  { %6453 = vmatprep.mubr.msk.bf16.mxu1 %vm7296_vm4, %v7295_v1 }
 0xf06   :  { %6444 = vmatpush3.bf16.msra.mxu0 %v6892_v51  ;;  %v3039_v51 = vld [vmem:[%s8691_s8 + $0x8] sm:$0xff] }
 0xf07   :  { %6457 = vmatprep.subr.bf16.mxu0 %v7295_v1 }
 0xf7c   :  { %v2334_v32 = vpop.f32.mrf.mxu0 }
 0xf7e   :  { %v6397_v33 = vpop.f32.mrf.mxu0  ;;  %v2384_v36 = vpop.f32.mrf.mxu1 }
 0xf80   :  { %v2337_v38 = vpop.f32.mrf.mxu0  ;;  %v6403_v19 = vpop.f32.mrf.mxu1 }
 0xf82   :  { %v6398_v39 = vpop.f32.mrf.mxu0  ;;  %v2387_v37 = vpop.f32.mrf.mxu1 }
 0xf84   :  { %v6404_v41 = vpop.f32.mrf.mxu1 }
 0xfb1   :  { %v2432_v42 = vpop.f32.mrf.mxu0 }
 0xfb3   :  { %v6409_v43 = vpop.f32.mrf.mxu0  ;;  %v2482_v44 = vpop.f32.mrf.mxu1 }
 0xfb4   :  { %v3038_v43 = vld [vmem:[%s8691_s8] sm:$0xff] }
 0xfb5   :  { %v2435_v45 = vpop.f32.mrf.mxu0  ;;  %v6415_v46 = vpop.f32.mrf.mxu1 }
 0xfb7   :  { %v6410_v40 = vpop.f32.mrf.mxu0  ;;  %v2485_v49 = vpop.f32.mrf.mxu1 }
 0xfb9   :  { %v6416_v47 = vpop.f32.mrf.mxu1  ;;  %v2545_v50 = vpop.f32.mrf.mxu0 }
 0xfbb   :  { %v6421_v52 = vpop.f32.mrf.mxu0  ;;  %v2595_v53 = vpop.f32.mrf.mxu1 }
 0xfbc   :  { %v6833_v54 = vpack.i.bf16 %v2595_v53, %v2384_v36  ;;  %v6893_v52 = vld [vmem:[%s8683_s23 + $0x18] sm:$0xff]   ;;  %v6894_v53 = vld [vmem:[%s8683_s23 + $0x10] sm:$0xff]   ;;  %s8696_s23 = sld [smem:[#allocation40_spill]] }
 0xfbd   :  { %v2548_v13 = vpop.f32.mrf.mxu0  ;;  %v6427_v55 = vpop.f32.mrf.mxu1  ;;  %6450 = vmatpush3.bf16.msra.mxu1 %v6893_v52 }
 0xfbe   :  { %6834 = vrot.lane.b32.xlu1 %v6833_v54, %s7308_s18  ;;  %6451 = vmatprep.subr.bf16.mxu1 %v7295_v1  ;;  %v3059_v54 = vld [vmem:[%s8692_s14 + $0x38] sm:$0xf] }
 0xfbf   :  { %v6422_v25 = vpop.f32.mrf.mxu0  ;;  %v2598_v56 = vpop.f32.mrf.mxu1  ;;  %v6895_v13 = vld [vmem:[%s8684_s20 + $0x38] sm:$0xff]  }
 0xfc1   :  { %v6428_v57 = vpop.f32.mrf.mxu1  ;;  %v2643_v58 = vpop.f32.mrf.mxu0  ;;  %6452 = vmatpush3.bf16.msra.mxu1 %v6894_v53 }
 0xfc2   :  { %v6838_v59 = vpack.i.bf16 %v2643_v58, %v2432_v42  ;;  %6469 = vmatprep.subr.msk.mxu1 %vm979_vm7, %v3059_v54 }
 0xfc3   :  { %v6433_v63 = vpop.f32.mrf.mxu0  ;;  %v2693_v2 = vpop.f32.mrf.mxu1 }
 0xfc4   :  { %v6843_v3 = vpack.i.bf16 %v2693_v2, %v2482_v44  ;;  %6839 = vrot.lane.b32.xlu0 %v6838_v59, %s7309_s22 }
 0xfc5   :  { %v2646_v4 = vpop.f32.mrf.mxu0  ;;  %v6439_v35 = vpop.f32.mrf.mxu1 }
 0xfc6   :  { %6844 = vrot.lane.b32.xlu1 %v6843_v3, %s7310_s3  ;;  %v5880_v3 = vld [vmem:[%s8685_s26 + $0x1] ss:$0 sm:$0xff] }
 0xfc7   :  { %v6434_v6 = vpop.f32.mrf.mxu0  ;;  %v2696_v7 = vpop.f32.mrf.mxu1 }
 0xfc9   :  { %v6440_v8 = vpop.f32.mrf.mxu1 }
 0xfca   :  { %v5881_v8 = vld [vmem:[%s8686_s28 + $0x1] ss:$0 sm:$0xff] }
0x1030   :  { %v6835_v9 = vpop.permute.xlu1 %6834 }
0x1031   :  { %v6837_v10 = vunpack.i.h.bf16 %v6835_v9  ;;  %v6836_v11 = vunpack.i.l.bf16 %v6835_v9 }
0x1033   :  { %v2711_v17 = vsel %vm468_vm6, %v2545_v50, %v6837_v10  ;;  %v2500_v20 = vsel %vm468_vm6, %v2334_v32, %v6836_v11 }
0x1036   :  { %v6840_v27 = vpop.permute.xlu0 %6839 }
0x1037   :  { %v6842_v24 = vunpack.i.h.bf16 %v6840_v27  ;;  %v6841_v60 = vunpack.i.l.bf16 %v6840_v27 }
0x1038   :  { %v6845_v34 = vpop.permute.xlu1 %6844 }
0x1039   :  { %v2501_v23 = vsel %vm1184_vm11, %v2500_v20, %v6841_v60  ;;  %v2712_v5 = vsel %vm1184_vm11, %v2711_v17, %v6842_v24  ;;  %v6847_v26 = vunpack.i.h.bf16 %v6845_v34  ;;  %v6846_v18 = vunpack.i.l.bf16 %v6845_v34  ;;  %v3058_v60 = vld [vmem:[%s8692_s14 + $0x30] sm:$0xff]  ;;  %v3057_v17 = vld [vmem:[%s8692_s14 + $0x28] sm:$0xff]  ;;  %v3056_v20 = vld [vmem:[%s8692_s14 + $0x20] sm:$0xff] }
0x103a   :  { %v3055_v34 = vld [vmem:[%s8692_s14 + $0x18] sm:$0xff] }
0x103b   :  { %v2713_v21 = vsel %vm1186_vm12, %v2712_v5, %v6847_v26  ;;  %v2502_v28 = vsel %vm1186_vm12, %v2501_v23, %v6846_v18  ;;  %v3054_v23 = vld [vmem:[%s8692_s14 + $0x10] sm:$0xff]  ;;  %v3053_v26 = vld [vmem:[%s8692_s14 + $0x8] sm:$0xff]  ;;  %v3052_v18 = vld [vmem:[%s8692_s14] sm:$0xff] }
0x103c   :  { %v2721_v29 = vpack.c.bf16 %v2713_v21, %v2502_v28  ;;  %v6896_v28 = vld [vmem:[%s8684_s20 + $0x30] sm:$0xff]  }
0x103e   :  { %6446 = vmatmul.mubr.msk.bf16.vlgmr.msra.gmra.mxu0 %vm419_vm5, %v2721_v29  ;;  %v6897_v29 = vld [vmem:[%s8684_s20 + $0x28] sm:$0xff]  }
0x103f   :  { %6465 = vmatprep.mubr.msk.bf16.mxu0 %vm7296_vm4, %v7295_v1  ;;  %6458 = vmatpush3.bf16.msra.mxu0 %v6895_v13 }
0x1040   :  { %6459 = vmatprep.subr.bf16.mxu0 %v7295_v1 }
0x1043   :  { %6460 = vmatpush3.bf16.msra.mxu0 %v6896_v28 }
0x1044   :  { %6461 = vmatprep.subr.bf16.mxu0 %v7295_v1 }
0x1047   :  { %6462 = vmatpush3.bf16.msra.mxu0 %v6897_v29 }
0x1048   :  { %6463 = vmatprep.subr.bf16.mxu0 %v7295_v1 }
0x10fe   :  { %v2777_v31 = vpop.f32.mrf.mxu0 }
0x10ff   :  { %v2778_v32 = vadd.f32 %v5874_v30, %v2777_v31  ;;  %v6899_v31 = vld [vmem:[%s8693_s19 + $0x8] sm:$0xff]  }
0x1100   :  { %v6447_v33 = vpop.f32.mrf.mxu0 }
0x1101   :  { %v2784_v36 = vadd.f32 %v2778_v32, %v7865_v15  ;;  %v6900_v32 = vld [vmem:[%s8693_s19] sm:$0xff]  }
0x1102   :  { %v2780_v38 = vpop.f32.mrf.mxu0  ;;  %v5887_v33 = vld [vmem:[%s8687_s1 + $0x1] ss:$0 sm:$0xff] }
0x1103   :  { %v2781_v19 = vadd.f32 %v5874_v30, %v2780_v38  ;;  %v2790_v39 = vsel %vm419_vm5, %v2784_v36, 0.0  ;;  %v6898_v30 = vld [vmem:[%s8684_s20 + $0x20] sm:$0xff]   ;;  %s8697_s20 = sld [smem:[#allocation23_spill]] }
0x1104   :  { %2791 = vadd.xlane.f32.xlu0 %v2790_v39  ;;  %v6448_v37 = vpop.f32.mrf.mxu0  ;;  %6464 = vmatpush3.bf16.msra.mxu0 %v6898_v30 }
0x1105   :  { %v2785_v41 = vadd.f32 %v2781_v19, %v7867_v16  ;;  %6488 = vmatprep.subr.bf16.mxu0 %v7295_v1 }
0x1107   :  { %v2793_v42 = vsel %vm419_vm5, %v2785_v41, 0.0 }
0x1108   :  { %2794 = vadd.xlane.f32.xlu1 %v2793_v42 }
0x1119   :  { %3041 = vperm.xlu1 %6848, %v3038_v43  }
0x118d   :  { %v2792_v44 = vpop.xlane.xlu0 %2791 }
0x118e   :  { %v2796_v45 = vmul.f32 0.03125, %v2792_v44 }
0x1190   :  { %v2798_v46 = vsub.f32 %v2784_v36, %v2796_v45 }
0x1191   :  { %v2795_v15 = vpop.xlane.xlu1 %2794 }
0x1192   :  { %v2797_v48 = vmul.f32 0.03125, %v2795_v15  ;;  %v2800_v40 = vmul.f32 %v2798_v46, %v2798_v46  ;;  %v3147_v15 = vld [vmem:[%s8694_s24] sm:$0xff] }
0x1194   :  { %v2799_v49 = vsub.f32 %v2785_v41, %v2797_v48  ;;  %v2802_v47 = vsel %vm419_vm5, %v2800_v40, 0.0 }
0x1195   :  { %2803 = vadd.xlane.f32.xlu0 %v2802_v47  ;;  %v3042_v7 = vpop.permute.xlu1 %3041 }
0x1196   :  { %v2801_v16 = vmul.f32 %v2799_v49, %v2799_v49  ;;  %vm3046_vm14 = vcmp.eq.s32.totalorder %v7557_v12, %v3042_v7 }
0x1197   :  { %v5910_v24 = vsel %vm3046_vm14, 1.0, %v7295_v1 }
0x1198   :  { %v2805_v50 = vsel %vm419_vm5, %v2801_v16, 0.0 }
0x1199   :  { %2806 = vadd.xlane.f32.xlu0 %v2805_v50  ;;  %v5900_v50 = vld [vmem:[%s8688_s2 + $0x1] ss:$0 sm:$0xff] }
0x11af   :  { %3044 = vperm.xlu0 %6817, %v3039_v51  }
0x121e   :  { %v2804_v55 = vpop.xlane.xlu0 %2803 }
0x121f   :  { %v2808_v25 = vmul.f32 0.03125, %v2804_v55 }
0x1221   :  { %v2810_v56 = vadd.f32 1e-05, %v2808_v25 }
0x1222   :  { %v2807_v57 = vpop.xlane.xlu0 %2806 }
0x1223   :  { %6989 = vrsqrt.f32 %v2810_v56  ;;  %v2809_v58 = vmul.f32 0.03125, %v2807_v57 }
0x1225   :  { %v2811_v59 = vadd.f32 1e-05, %v2809_v58 }
0x1227   :  { %6991 = vrsqrt.f32 %v2811_v59 }
0x122a   :  { %v3045_v5 = vpop.permute.xlu0 %3044 }
0x122b   :  { %vm3047_vm0 = vcmp.eq.s32.totalorder %v7557_v12, %v3045_v5  ;;  %v6901_v5 = vld [vmem:[%s8696_s23 + $0x8] sm:$0xff]  }
0x122c   :  { %v5911_v21 = vsel %vm3047_vm0, 1.0, %v7295_v1 }
0x1230   :  { %v6990_v63 = vpop.eup %6989 }
0x1231   :  { %v2814_v2 = vmul.f32 %v6990_v63, %v2798_v46  ;;  %v5919_v63 = vld [vmem:[%s8695_s7] ss:$0 sm:$0xff] }
0x1233   :  { %v2822_v6 = vmul.f32 %v5880_v3, %v2814_v2 }
0x1234   :  { %v6992_v4 = vpop.eup %6991 }
0x1235   :  { %v2815_v35 = vmul.f32 %v6992_v4, %v2799_v49  ;;  %v8105_v10 = vadd.f32 %v5881_v8, %v2822_v6 }
0x1237   :  { %v2823_v9 = vmul.f32 %v5880_v3, %v2815_v35 }
0x1239   :  { %v8107_v11 = vadd.f32 %v5881_v8, %v2823_v9 }
0x123b   :  { %v2839_v27 = vpack.c.bf16 %v8107_v11, %v8105_v10 }
0x123d   :  { %6454 = vmatmul.mubr.msk.bf16.vlgmr.msra.gmra.mxu1 %vm419_vm5, %v2839_v27 }
0x123e   :  { %6470 = vmatpush3.msk.msra.mxu1 %vm979_vm7, %v3059_v54  ;;  %6485 = vmatprep.mubr.msk.f32.mxu1 %vm3060_vm15, %v5910_v24 }
0x123f   :  { %6471 = vmatprep.subr.mxu1 %v3058_v60 }
0x1240   :  { %6472 = vmatpush3.msra.mxu1 %v3058_v60 }
0x1241   :  { %6473 = vmatprep.subr.mxu1 %v3057_v17 }
0x1242   :  { %6474 = vmatpush3.msra.mxu1 %v3057_v17 }
0x1243   :  { %6475 = vmatprep.subr.mxu1 %v3056_v20 }
0x1244   :  { %6476 = vmatpush3.msra.mxu1 %v3056_v20 }
0x1245   :  { %6477 = vmatprep.subr.mxu1 %v3055_v34 }
0x1246   :  { %6478 = vmatpush3.msra.mxu1 %v3055_v34 }
0x1247   :  { %6479 = vmatprep.subr.mxu1 %v3054_v23 }
0x1248   :  { %6480 = vmatpush3.msra.mxu1 %v3054_v23 }
0x1249   :  { %6481 = vmatprep.subr.mxu1 %v3053_v26 }
0x124a   :  { %6482 = vmatpush3.msra.mxu1 %v3053_v26  ;;  %v6902_v26 = vld [vmem:[%s8696_s23] sm:$0xff]  }
0x124b   :  { %6483 = vmatprep.subr.mxu1 %v3052_v18 }
0x124c   :  { %6484 = vmatpush3.msra.mxu1 %v3052_v18 }
0x124d   :  { %6486 = vmatmul.mubr.msk.f32.vlgmr.msra.gmra.mxu1 %vm3060_vm15, %v5911_v21  ;;  %6496 = vmatprep.subr.bf16.mxu1 %v7295_v1 }
0x124e   :  { %6500 = vmatprep.mubr.msk.bf16.mxu1 %vm7296_vm4, %v7295_v1  ;;  %6497 = vmatpush3.bf16.msra.mxu1 %v6899_v31 }
0x124f   :  { %6498 = vmatprep.subr.bf16.mxu1 %v7295_v1 }
0x1252   :  { %6499 = vmatpush3.bf16.msra.mxu1 %v6900_v32 }
0x1253   :  { %6510 = vmatprep.subr.bf16.mxu1 %v7295_v1 }
0x12fd   :  { %v2895_v36 = vpop.f32.mrf.mxu1 }
0x12fe   :  { %v2896_v19 = vadd.f32 %v5887_v33, %v2895_v36 }
0x12ff   :  { %v6455_v38 = vpop.f32.mrf.mxu1 }
0x1300   :  { %v2902_v42 = vmax.f32 %v2896_v19, 0.0 }
0x1301   :  { %v2898_v39 = vpop.f32.mrf.mxu1 }
0x1302   :  { %v2899_v37 = vadd.f32 %v5887_v33, %v2898_v39 }
0x1303   :  { %v6456_v41 = vpop.f32.mrf.mxu1 }
0x1304   :  { %v2903_v43 = vmax.f32 %v2899_v37, 0.0 }
0x1306   :  { %v2915_v44 = vpack.c.bf16 %v2903_v43, %v2902_v42 }
0x1308   :  { %6466 = vmatmul.mubr.msk.bf16.vlgmr.msra.gmra.mxu0 %vm1624_vm13, %v2915_v44 }
0x1309   :  { %6492 = vmatprep.mubr.msk.bf16.mxu0 %vm7296_vm4, %v7295_v1  ;;  %6489 = vmatpush3.bf16.msra.mxu0 %v6901_v5 }
0x130a   :  { %6490 = vmatprep.subr.bf16.mxu0 %v7295_v1 }
0x130d   :  { %v6487_v45 = vpop.f32.mrf.mxu1  ;;  %6491 = vmatpush3.bf16.msra.mxu0 %v6902_v26 }
0x130e   :  { %v3146_v46 = vmul.f32 5.656854, %v6487_v45  ;;  %6504 = vmatprep.subr.bf16.mxu0 %v7295_v1 }
0x130f   :  { %v3136_v48 = vpop.f32.mrf.mxu1 }
0x1310   :  { %v3145_v40 = vmul.f32 5.656854, %v3136_v48  ;;  %v8143_v49 = vadd.f32 %v3147_v15, %v3146_v46  ;;  %v5908_v46 = vld [vmem:[%s8689_s0 + $0x1] ss:$0 sm:$0xff] }
0x1312   :  { %v8145_v47 = vadd.f32 %v3147_v15, %v3145_v40 }
0x1314   :  { %v3223_v16 = vpack.c.bf16 %v8143_v49, %v8145_v47 }
0x1316   :  { %6501 = vmatmul.mubr.msk.bf16.vlgmr.msra.gmra.mxu1 %vm419_vm5, %v3223_v16 }
0x1317   :  { %6512 = vmatprep.mubr.msk.bf16.mxu1 %vm7296_vm4, %v7295_v1 }
0x13c8   :  { %v2983_v51 = vpop.f32.mrf.mxu0 }
0x13c9   :  { %v2984_v52 = vadd.f32 %v5900_v50, %v2983_v51  ;;  %v5909_v51 = vld [vmem:[%s8690_s13 + $0x1] ss:$0 sm:$0xff] }
0x13ca   :  { %v6467_v53 = vpop.f32.mrf.mxu0 }
0x13cb   :  { %v2990_v54 = vadd.f32 %v2984_v52, %v8105_v10 }
0x13cc   :  { %v2986_v13 = vpop.f32.mrf.mxu0 }
0x13cd   :  { %v2987_v55 = vadd.f32 %v5900_v50, %v2986_v13  ;;  %v2996_v25 = vsel %vm419_vm5, %v2990_v54, 0.0 }
0x13ce   :  { %2997 = vadd.xlane.f32.xlu1 %v2996_v25  ;;  %v6468_v56 = vpop.f32.mrf.mxu0 }
0x13cf   :  { %v2991_v57 = vadd.f32 %v2987_v55, %v8107_v11 }
0x13d1   :  { %v2999_v58 = vsel %vm419_vm5, %v2991_v57, 0.0 }
0x13d2   :  { %3000 = vadd.xlane.f32.xlu0 %v2999_v58 }
0x13d6   :  { %v3279_v59 = vpop.f32.mrf.mxu1 }
0x13d7   :  { %v3280_v4 = vadd.f32 %v5919_v63, %v3279_v59 }
0x13d8   :  { %v6502_v2 = vpop.f32.mrf.mxu1 }
0x13da   :  { %v3282_v3 = vpop.f32.mrf.mxu1 }
0x13db   :  { %v3283_v35 = vadd.f32 %v5919_v63, %v3282_v3 }
0x13dc   :  { %v6503_v6 = vpop.f32.mrf.mxu1 }
0x13dd   :  { %v8158_v7 = vpack.c.bf16 %v3283_v35, %v3280_v4  ;;  %v254_v35 = vld [vmem:[%s8697_s20] sm:$0x3] }
0x13de   :  { %vm255_vm1 = vcmp.ne.s32.totalorder %v254_v35, 1 }
0x13df   :  { %v8175_v23 = vrot.slane %v8158_v7, 4  ;;  %v5799_v6 = vsel %vm255_vm1, 1.0, %v7295_v1 }
0x1457   :  { %v2998_v8 = vpop.xlane.xlu1 %2997 }
0x1458   :  { %v3002_v9 = vmul.f32 0.03125, %v2998_v8  ;;  %v276_v8 = vrot.slane %v5799_v6, %v267_v62 }
0x145a   :  { %v3004_v10 = vsub.f32 %v2990_v54, %v3002_v9  ;;  %v5800_v9 = vsel %vm262_vm2, 1.0, %v7295_v1 }
0x145b   :  { %v3001_v27 = vpop.xlane.xlu0 %3000 }
0x145c   :  { %v3003_v24 = vmul.f32 0.03125, %v3001_v27  ;;  %v3006_v60 = vmul.f32 %v3004_v10, %v3004_v10 }
0x145e   :  { %v3005_v11 = vsub.f32 %v2991_v57, %v3003_v24  ;;  %v3008_v17 = vsel %vm419_vm5, %v3006_v60, 0.0 }
0x145f   :  { %3009 = vadd.xlane.f32.xlu1 %v3008_v17 }
0x1460   :  { %v3007_v20 = vmul.f32 %v3005_v11, %v3005_v11 }
0x1462   :  { %v3011_v34 = vsel %vm419_vm5, %v3007_v20, 0.0 }
0x1463   :  { %3012 = vadd.xlane.f32.xlu0 %v3011_v34 }
0x1470   :  { %3288 = vrot.lane.b32.xlu1 %v8158_v7, %s7298_s21 }
0x1474   :  { %3336 = vrot.lane.b32.xlu1 %v8158_v7, %s7297_s5 }
0x1478   :  { %3388 = vrot.lane.b32.xlu1 %v8158_v7, %s7302_s4 }
0x1479   :  { %3338 = vrot.lane.b32.xlu0 %v8158_v7, %s7300_s30 }
0x147c   :  { %3386 = vrot.lane.b32.xlu1 %v8158_v7, %s7303_s10 }
0x147d   :  { %3438 = vrot.lane.b32.xlu0 %v8158_v7, %s7299_s25 }
0x1480   :  { %3487 = vrot.lane.b32.xlu1 %v8175_v23, %s7298_s21 }
0x1481   :  { %3436 = vrot.lane.b32.xlu0 %v8158_v7, %s7301_s6 }
0x1484   :  { %3535 = vrot.lane.b32.xlu1 %v8175_v23, %s7297_s5 }
0x1485   :  { %3537 = vrot.lane.b32.xlu0 %v8175_v23, %s7300_s30 }
0x1488   :  { %3637 = vrot.lane.b32.xlu1 %v8175_v23, %s7299_s25 }
0x1489   :  { %3587 = vrot.lane.b32.xlu0 %v8175_v23, %s7302_s4 }
0x148c   :  { %3635 = vrot.lane.b32.xlu1 %v8175_v23, %s7301_s6 }
0x148d   :  { %3585 = vrot.lane.b32.xlu0 %v8175_v23, %s7303_s10 }
0x14e8   :  { %v3010_v18 = vpop.xlane.xlu1 %3009 }
0x14e9   :  { %v3014_v21 = vmul.f32 0.03125, %v3010_v18 }
0x14eb   :  { %v3016_v28 = vadd.f32 1e-05, %v3014_v21  ;;  %v5915_v21 = vld [vmem:[#allocation7] ss:$0 sm:$0xff] }
0x14ec   :  { %v3013_v29 = vpop.xlane.xlu0 %3012  ;;  %v3289_v30 = vpop.permute.xlu1 %3288 }
0x14ed   :  { %6993 = vrsqrt.f32 %v3016_v28  ;;  %v3015_v31 = vmul.f32 0.03125, %v3013_v29  ;;  %v3294_v56 = vsel %vm468_vm6, %v3289_v30, 0 }
0x14ef   :  { %v3017_v32 = vadd.f32 1e-05, %v3015_v31 }
0x14f0   :  { %v3339_v33 = vpop.permute.xlu0 %3338  ;;  %v3337_v36 = vpop.permute.xlu1 %3336 }
0x14f1   :  { %6995 = vrsqrt.f32 %v3017_v32  ;;  %v3344_v38 = vsel %vm468_vm6, %v3339_v33, 0 }
0x14f2   :  { %6511 = vmatpush3.bf16.xpose.msra.mxu1 %v3344_v38 }
0x14f3   :  { %6522 = vmatprep.subr.bf16.mxu1 %v7295_v1 }
0x14f4   :  { %v3439_v19 = vpop.permute.xlu0 %3438  ;;  %v3389_v39 = vpop.permute.xlu1 %3388 }
0x14f5   :  { %v3444_v42 = vsel %vm468_vm6, %v3439_v19, 0  ;;  %v3394_v58 = vsel %vm468_vm6, %v3389_v39, 0 }
0x14f8   :  { %v3437_v37 = vpop.permute.xlu0 %3436  ;;  %v3387_v41 = vpop.permute.xlu1 %3386 }
0x14f9   :  { %6513 = vmatmul.mubr.msk.bf16.vlgmr.msra.gmra.mxu1 %vm468_vm6, %v3337_v36 }
0x14fa   :  { %v6994_v43 = vpop.eup %6993  ;;  %6523 = vmatpush3.bf16.xpose.msra.mxu1 %v3444_v42  ;;  %6524 = vmatprep.mubr.msk.bf16.mxu1 %vm7296_vm4, %v7295_v1 }
0x14fb   :  { %v3020_v44 = vmul.f32 %v6994_v43, %v3004_v10  ;;  %6534 = vmatprep.subr.bf16.mxu1 %v7295_v1  ;;  %v277_v10 = vmul.f32 %v5800_v9, %v276_v8 }
0x14fc   :  { %v3488_v45 = vpop.permute.xlu1 %3487  ;;  %v3538_v48 = vpop.permute.xlu0 %3537 }
0x14fd   :  { %v3028_v16 = vmul.f32 %v5908_v46, %v3020_v44  ;;  %v3543_v52 = vsel %vm468_vm6, %v3538_v48, 0  ;;  %v3493_v63 = vsel %vm468_vm6, %v3488_v45, 0  ;;  %vm3693_vm3 = vcmp.eq.f32.partialorder %v277_v10, 0.0 }
0x14fe   :  { %v6996_v15 = vpop.eup %6995  ;;  %v281_v48 = vrot.slane %v5799_v6, %v271_v14 }
0x14ff   :  { %v3021_v40 = vmul.f32 %v6996_v15, %v3005_v11  ;;  %v3036_v54 = vadd.f32 %v5909_v51, %v3028_v16 }
0x1500   :  { %v3536_v50 = vpop.permute.xlu1 %3535  ;;  %v3588_v2 = vpop.permute.xlu0 %3587 }
0x1501   :  { %6525 = vmatmul.mubr.msk.bf16.vlgmr.msra.gmra.mxu1 %vm468_vm6, %v3437_v37  ;;  %v3029_v53 = vmul.f32 %v5908_v46, %v3021_v40  ;;  %v3593_v3 = vsel %vm468_vm6, %v3588_v2, 0 }
0x1502   :  { %6535 = vmatpush3.bf16.xpose.msra.mxu1 %v3543_v52  ;;  %6536 = vmatprep.mubr.msk.bf16.mxu1 %vm7296_vm4, %v7295_v1 }
0x1503   :  { %v3037_v13 = vadd.f32 %v5909_v51, %v3029_v53  ;;  %6546 = vmatprep.subr.bf16.mxu1 %v7295_v1 }
0x1504   :  { %v3638_v25 = vpop.permute.xlu1 %3637  ;;  %v3586_v4 = vpop.permute.xlu0 %3585 }
0x1505   :  { %v3155_v55 = vpack.c.bf16 %v3037_v13, %v3036_v54  ;;  %v3643_v57 = vsel %vm468_vm6, %v3638_v25, 0  ;;  %v282_v54 = vmul.f32 %v5800_v9, %v281_v48 }
0x1507   :  { %6493 = vmatmul.mubr.msk.bf16.vlgmr.msra.gmra.mxu0 %vm419_vm5, %v3155_v55  ;;  %vm3694_vm8 = vcmp.eq.f32.partialorder %v282_v54, 0.0 }
0x1508   :  { %6505 = vmatpush3.bf16.xpose.msra.mxu0 %v3294_v56  ;;  %6506 = vmatprep.mubr.msk.bf16.mxu0 %vm7296_vm4, %v7295_v1  ;;  %v3636_v59 = vpop.permute.xlu1 %3635 }
0x1509   :  { %6537 = vmatmul.mubr.msk.bf16.vlgmr.msra.gmra.mxu1 %vm468_vm6, %v3536_v50  ;;  %6516 = vmatprep.subr.bf16.mxu0 %v7295_v1 }
0x150a   :  { %6547 = vmatpush3.bf16.xpose.msra.mxu1 %v3643_v57  ;;  %6548 = vmatprep.mubr.msk.bf16.mxu1 %vm7296_vm4, %v7295_v1 }
0x150b   :  { %6558 = vmatprep.subr.bf16.mxu1 %v7295_v1 }
0x150f   :  { %6507 = vmatmul.mubr.msk.bf16.vlgmr.msra.gmra.mxu0 %vm468_vm6, %v8158_v7 }
0x1510   :  { %6517 = vmatpush3.bf16.xpose.msra.mxu0 %v3394_v58  ;;  %6518 = vmatprep.mubr.msk.bf16.mxu0 %vm7296_vm4, %v7295_v1 }
0x1511   :  { %6549 = vmatmul.mubr.msk.bf16.vlgmr.msra.gmra.mxu1 %vm468_vm6, %v3636_v59  ;;  %6528 = vmatprep.subr.bf16.mxu0 %v7295_v1 }
0x1512   :  { %6560 = vmatprep.mubr.msk.bf16.mxu1 %vm7296_vm4, %v7295_v1 }
0x1517   :  { %6519 = vmatmul.mubr.msk.bf16.vlgmr.msra.gmra.mxu0 %vm468_vm6, %v3387_v41 }
0x1518   :  { %6529 = vmatpush3.bf16.xpose.msra.mxu0 %v3493_v63  ;;  %6530 = vmatprep.mubr.msk.bf16.mxu0 %vm7296_vm4, %v7295_v1 }
0x1519   :  { %6540 = vmatprep.subr.bf16.mxu0 %v7295_v1 }
0x151f   :  { %6531 = vmatmul.mubr.msk.bf16.vlgmr.msra.gmra.mxu0 %vm468_vm6, %v8175_v23 }
0x1520   :  { %6541 = vmatpush3.bf16.xpose.msra.mxu0 %v3593_v3  ;;  %6542 = vmatprep.mubr.msk.bf16.mxu0 %vm7296_vm4, %v7295_v1 }
0x1521   :  { %6552 = vmatprep.subr.bf16.mxu0 %v7295_v1 }
0x1527   :  { %6543 = vmatmul.mubr.msk.bf16.vlgmr.msra.gmra.mxu0 %vm468_vm6, %v3586_v4 }
0x1528   :  { %6554 = vmatprep.mubr.msk.bf16.mxu0 %vm7296_vm4, %v7295_v1 }
0x15b9   :  { %v3380_v27 = vpop.f32.mrf.mxu1 }
0x15ba   :  { %v3686_v24 = vmul.f32 0.35355338, %v3380_v27 }
0x15bb   :  { %v6514_v60 = vpop.f32.mrf.mxu1 }
0x15bc   :  { %v8252_v11 = vsel %vm3693_vm3, -1e+10, %v3686_v24 }
0x15bd   :  { %v3383_v17 = vpop.f32.mrf.mxu1  ;;  %v3706_v20 = vsel %vm468_vm6, %v8252_v11, -inf }
0x15be   :  { %3707 = vmax.xlane.f32.xlu1 %v3706_v20 }
0x15bf   :  { %v6515_v34 = vpop.f32.mrf.mxu1 }
0x15c1   :  { %v3480_v12 = vpop.f32.mrf.mxu1 }
0x15c2   :  { %v3688_v52 = vmul.f32 0.35355338, %v3480_v12 }
0x15c3   :  { %v6526_v5 = vpop.f32.mrf.mxu1 }
0x15c4   :  { %v3698_v57 = vsel %vm3693_vm3, -1e+10, %v3688_v52 }
0x15c5   :  { %v3483_v26 = vpop.f32.mrf.mxu1  ;;  %v3712_v59 = vsel %vm468_vm6, %v3698_v57, -inf }
0x15c7   :  { %v3211_v62 = vpop.f32.mrf.mxu0  ;;  %v6527_v18 = vpop.f32.mrf.mxu1 }
0x15c8   :  { %v3212_v32 = vadd.f32 %v5915_v21, %v3211_v62 }
0x15c9   :  { %v6494_v28 = vpop.f32.mrf.mxu0  ;;  %v3579_v29 = vpop.f32.mrf.mxu1 }
0x15ca   :  { %v3690_v58 = vmul.f32 0.35355338, %v3579_v29 }
0x15cb   :  { %v3214_v30 = vpop.f32.mrf.mxu0  ;;  %v6538_v31 = vpop.f32.mrf.mxu1 }
0x15cc   :  { %v3215_v33 = vadd.f32 %v5915_v21, %v3214_v30  ;;  %v3700_v63 = vsel %vm3694_vm8, -1e+10, %v3690_v58 }
0x15cd   :  { %v6495_v36 = vpop.f32.mrf.mxu0  ;;  %v3582_v38 = vpop.f32.mrf.mxu1  ;;  %v3718_v35 = vsel %vm468_vm6, %v3700_v63, -inf }
0x15ce   :  { %v8256_v19 = vpack.c.bf16 %v3215_v33, %v3212_v32 }
0x15cf   :  { %v3330_v39 = vpop.f32.mrf.mxu0  ;;  %3795 = vrot.lane.b32.xlu1 %v8158_v7, %s7304_s11  ;;  %v6539_v37 = vpop.f32.mrf.mxu1 }
0x15d0   :  { %v3685_v41 = vmul.f32 0.35355338, %v3330_v39 }
0x15d1   :  { %v6508_v42 = vpop.f32.mrf.mxu0  ;;  %v3679_v43 = vpop.f32.mrf.mxu1 }
0x15d2   :  { %v3695_v44 = vsel %vm3693_vm3, -1e+10, %v3685_v41  ;;  %v3692_v2 = vmul.f32 0.35355338, %v3679_v43 }
0x15d3   :  { %v3333_v45 = vpop.f32.mrf.mxu0  ;;  %3893 = vrot.lane.b32.xlu1 %v8158_v7, %s7305_s9  ;;  %v6550_v46 = vpop.f32.mrf.mxu1  ;;  %v3703_v15 = vsel %vm468_vm6, %v3695_v44, -inf }
0x15d4   :  { %3704 = vmax.xlane.f32.xlu0 %v3703_v15  ;;  %v3702_v6 = vsel %vm3694_vm8, -1e+10, %v3692_v2 }
0x15d5   :  { %v6509_v40 = vpop.f32.mrf.mxu0  ;;  %v3682_v16 = vpop.f32.mrf.mxu1  ;;  %v3724_v10 = vsel %vm468_vm6, %v3702_v6, -inf }
0x15d7   :  { %v3430_v50 = vpop.f32.mrf.mxu0  ;;  %v6551_v51 = vpop.f32.mrf.mxu1 }
0x15d8   :  { %v3687_v53 = vmul.f32 0.35355338, %v3430_v50 }
0x15d9   :  { %v6520_v13 = vpop.f32.mrf.mxu0 }
0x15da   :  { %v8267_v55 = vsel %vm3693_vm3, -1e+10, %v3687_v53 }
0x15db   :  { %v3433_v25 = vpop.f32.mrf.mxu0  ;;  %v3709_v56 = vsel %vm468_vm6, %v8267_v55, -inf }
0x15dc   :  { %3710 = vmax.xlane.f32.xlu0 %v3709_v56 }
0x15dd   :  { %v6521_v61 = vpop.f32.mrf.mxu0 }
0x15df   :  { %v3529_v14 = vpop.f32.mrf.mxu0 }
0x15e0   :  { %3713 = vmax.xlane.f32.xlu0 %v3712_v59  ;;  %v3689_v17 = vmul.f32 0.35355338, %v3529_v14 }
0x15e1   :  { %v6532_v3 = vpop.f32.mrf.mxu0 }
0x15e2   :  { %v3699_v20 = vsel %vm3694_vm8, -1e+10, %v3689_v17 }
0x15e3   :  { %v3532_v4 = vpop.f32.mrf.mxu0  ;;  %v3715_v12 = vsel %vm468_vm6, %v3699_v20, -inf }
0x15e4   :  { %3719 = vmax.xlane.f32.xlu0 %v3718_v35 }
0x15e5   :  { %v6533_v8 = vpop.f32.mrf.mxu0 }
0x15e7   :  { %v3629_v9 = vpop.f32.mrf.mxu0 }
0x15e8   :  { %3725 = vmax.xlane.f32.xlu0 %v3724_v10  ;;  %v3691_v34 = vmul.f32 0.35355338, %v3629_v9 }
0x15e9   :  { %v6544_v27 = vpop.f32.mrf.mxu0 }
0x15ea   :  { %v3701_v5 = vsel %vm3694_vm8, -1e+10, %v3691_v34 }
0x15eb   :  { %v3632_v24 = vpop.f32.mrf.mxu0  ;;  %v3721_v26 = vsel %vm468_vm6, %v3701_v5, -inf }
0x15ed   :  { %v6545_v60 = vpop.f32.mrf.mxu0 }
0x15f7   :  { %3716 = vmax.xlane.f32.xlu1 %v3715_v12 }
0x15fb   :  { %3722 = vmax.xlane.f32.xlu1 %v3721_v26 }
0x160c   :  { %3943 = vrot.lane.b32.xlu1 %v8158_v7, %s7306_s15 }
0x1647   :  { %v3708_v62 = vpop.xlane.xlu1 %3707 }
0x1648   :  { %v3728_v18 = vsub.f32 %v8252_v11, %v3708_v62 }
0x164a   :  { %v3737_v21 = vmul.f32 1.442695, %v3728_v18 }
0x164b   :  { %v3796_v28 = vpop.permute.xlu1 %3795 }
0x164c   :  { %6997 = vpow2.f32 %v3737_v21  ;;  %v3801_v29 = vsel %vm979_vm7, %v3796_v28, 0 }
0x164d   :  { %6553 = vmatpush3.bf16.msra.mxu0 %v3801_v29 }
0x164e   :  { %6564 = vmatprep.subr.bf16.mxu0 %v7295_v1 }
0x164f   :  { %v3894_v54 = vpop.permute.xlu1 %3893 }
0x1650   :  { %v3899_v34 = vsel %vm979_vm7, %v3894_v54, 0 }
0x1659   :  { %v8286_v30 = vpop.eup %6997 }
0x165a   :  { %v3754_v31 = vsel %vm468_vm6, %v8286_v30, 0.0 }
0x165b   :  { %3755 = vadd.xlane.f32.xlu0 %v3754_v31 }
0x165d   :  { %v3705_v32 = vpop.xlane.xlu0 %3704 }
0x165e   :  { %v3727_v33 = vsub.f32 %v3695_v44, %v3705_v32 }
0x1660   :  { %v3735_v36 = vmul.f32 1.442695, %v3727_v33 }
0x1662   :  { %6999 = vpow2.f32 %v3735_v36 }
0x1665   :  { %v3711_v38 = vpop.xlane.xlu0 %3710 }
0x1666   :  { %v3729_v25 = vsub.f32 %v8267_v55, %v3711_v38 }
0x1668   :  { %v3739_v56 = vmul.f32 1.442695, %v3729_v25 }
0x1669   :  { %v3714_v11 = vpop.xlane.xlu0 %3713 }
0x166a   :  { %v3730_v39 = vsub.f32 %v3698_v57, %v3714_v11 }
0x166c   :  { %v3741_v37 = vmul.f32 1.442695, %v3730_v39 }
0x166d   :  { %v3720_v41 = vpop.xlane.xlu0 %3719 }
0x166e   :  { %7001 = vpow2.f32 %v3741_v37  ;;  %v3732_v42 = vsub.f32 %v3700_v63, %v3720_v41 }
0x166f   :  { %v7000_v43 = vpop.eup %6999 }
0x1670   :  { %v3745_v45 = vmul.f32 1.442695, %v3732_v42  ;;  %v3751_v46 = vsel %vm468_vm6, %v7000_v43, 0.0 }
0x1671   :  { %3752 = vadd.xlane.f32.xlu1 %v3751_v46  ;;  %v3726_v15 = vpop.xlane.xlu0 %3725 }
0x1672   :  { %7003 = vpow2.f32 %v3745_v45  ;;  %v3734_v48 = vsub.f32 %v3702_v6, %v3726_v15 }
0x1674   :  { %v3749_v40 = vmul.f32 1.442695, %v3734_v48 }
0x1676   :  { %7005 = vpow2.f32 %v3749_v40 }
0x1677   :  { %7007 = vpow2.f32 %v3739_v56 }
0x167b   :  { %v8291_v44 = vpop.eup %7001 }
0x167c   :  { %v3760_v16 = vsel %vm468_vm6, %v8291_v44, 0.0 }
0x167d   :  { %3761 = vadd.xlane.f32.xlu0 %v3760_v16 }
0x167f   :  { %v8295_v50 = vpop.eup %7003 }
0x1680   :  { %v3766_v51 = vsel %vm468_vm6, %v8295_v50, 0.0  ;;  %v3717_v13 = vpop.xlane.xlu1 %3716 }
0x1681   :  { %3767 = vadd.xlane.f32.xlu0 %v3766_v51  ;;  %v3731_v57 = vsub.f32 %v3699_v20, %v3717_v13 }
0x1682   :  { %4056 = vrot.lane.b32.xlu1 %v8175_v23, %s7307_s16 }
0x1683   :  { %v8301_v52 = vpop.eup %7005  ;;  %v3743_v61 = vmul.f32 1.442695, %v3731_v57 }
0x1684   :  { %v3772_v53 = vsel %vm468_vm6, %v8301_v52, 0.0  ;;  %v3723_v58 = vpop.xlane.xlu1 %3722  ;;  %v7008_v63 = vpop.eup %7007 }
0x1685   :  { %3773 = vadd.xlane.f32.xlu0 %v3772_v53  ;;  %v3733_v14 = vsub.f32 %v3701_v5, %v3723_v58  ;;  %7009 = vpow2.f32 %v3743_v61  ;;  %v3757_v55 = vsel %vm468_vm6, %v7008_v63, 0.0 }
0x1687   :  { %v3747_v59 = vmul.f32 1.442695, %v3733_v14 }
0x1688   :  { %v3944_v35 = vpop.permute.xlu1 %3943 }
0x1689   :  { %7011 = vpow2.f32 %v3747_v59  ;;  %v3949_v62 = vsel %vm979_vm7, %v3944_v35, 0 }
0x1692   :  { %v7010_v2 = vpop.eup %7009 }
0x1693   :  { %v3763_v3 = vsel %vm468_vm6, %v7010_v2, 0.0 }
0x1696   :  { %v8314_v4 = vpop.eup %7011 }
0x169b   :  { %3845 = vrot.lane.b32.xlu0 %v8158_v7, %s7307_s16  ;;  %v3769_v7 = vsel %vm468_vm6, %v8314_v4, 0.0  ;;  %s8701_s16 = sld [smem:[#allocation38_spill]] }
0x169f   :  { %4006 = vrot.lane.b32.xlu0 %v8175_v23, %s7304_s11  ;;  %s8698_s11 = sld [smem:[#allocation36_spill]] }
0x16a3   :  { %4104 = vrot.lane.b32.xlu0 %v8175_v23, %s7305_s9  ;;  %s8699_s9 = sld [smem:[#allocation37_spill]] }
0x16a6   :  { %3758 = vadd.xlane.f32.xlu1 %v3757_v55 }
0x16aa   :  { %3764 = vadd.xlane.f32.xlu1 %v3763_v3 }
0x16ae   :  { %3770 = vadd.xlane.f32.xlu1 %v3769_v7 }
0x16bf   :  { %4154 = vrot.lane.b32.xlu1 %v8175_v23, %s7306_s15  ;;  %s8700_s15 = sld [smem:[#allocation39_spill]] }
0x16e4   :  { %v3756_v6 = vpop.xlane.xlu0 %3755 }
0x16e5   :  { %7013 = vrcp.f32 %v3756_v6 }
0x16f2   :  { %v7014_v9 = vpop.eup %7013 }
0x16f3   :  { %v3784_v60 = vmul.f32 %v7014_v9, %v8286_v30 }
0x16fa   :  { %v3753_v8 = vpop.xlane.xlu1 %3752 }
0x16fb   :  { %7015 = vrcp.f32 %v3753_v8 }
0x16fe   :  { %v4057_v18 = vpop.permute.xlu1 %4056 }
0x1706   :  { %v3762_v10 = vpop.xlane.xlu0 %3761 }
0x1707   :  { %7017 = vrcp.f32 %v3762_v10 }
0x1708   :  { %v7016_v27 = vpop.eup %7015 }
0x1709   :  { %v3783_v24 = vmul.f32 %v7016_v27, %v7000_v43  ;;  %v4062_v43 = vsel %vm979_vm7, %v4057_v18, 0  ;;  %v6904_v27 = vld [vmem:[%s8698_s11] sm:$0xff]  }
0x170a   :  { %v3768_v17 = vpop.xlane.xlu0 %3767 }
0x170b   :  { %v3791_v20 = vpack.c.bf16 %v3784_v60, %v3783_v24 }
0x170d   :  { %6555 = vmatmul.mubr.msk.bf16.vlgmr.msra.gmra.mxu0 %vm468_vm6, %v3791_v20  ;;  %v3844_v26 = vrot.slane %v3791_v20, 4 }
0x170e   :  { %6565 = vmatpush3.bf16.msra.mxu0 %v3899_v34  ;;  %v3774_v12 = vpop.xlane.xlu0 %3773  ;;  %6566 = vmatprep.mubr.msk.bf16.mxu0 %vm7296_vm4, %v7295_v1 }
0x170f   :  { %6576 = vmatprep.subr.bf16.mxu0 %v7295_v1 }
0x1712   :  { %v3846_v23 = vpop.permute.xlu0 %3845 }
0x1713   :  { %v3851_v5 = vsel %vm979_vm7, %v3846_v23, 0 }
0x1714   :  { %6559 = vmatpush3.bf16.msra.mxu1 %v3851_v5  ;;  %v7018_v30 = vpop.eup %7017 }
0x1715   :  { %6570 = vmatprep.subr.bf16.mxu1 %v7295_v1  ;;  %v3786_v33 = vmul.f32 %v7018_v30, %v8291_v44 }
0x1716   :  { %v4007_v36 = vpop.permute.xlu0 %4006 }
0x1717   :  { %6561 = vmatmul.mubr.msk.bf16.vlgmr.msra.gmra.mxu1 %vm468_vm6, %v3844_v26  ;;  %v4012_v37 = vsel %vm979_vm7, %v4007_v36, 0 }
0x1718   :  { %6571 = vmatpush3.bf16.msra.mxu1 %v3949_v62  ;;  %6572 = vmatprep.mubr.msk.bf16.mxu1 %vm7296_vm4, %v7295_v1 }
0x1719   :  { %6582 = vmatprep.subr.bf16.mxu1 %v7295_v1 }
0x171a   :  { %v4105_v48 = vpop.permute.xlu0 %4104 }
0x171b   :  { %v4110_v16 = vsel %vm979_vm7, %v4105_v48, 0 }
0x172f   :  { %v3759_v21 = vpop.xlane.xlu1 %3758 }
0x1730   :  { %7019 = vrcp.f32 %v3759_v21 }
0x1731   :  { %7021 = vrcp.f32 %v3768_v17 }
0x1733   :  { %v3765_v28 = vpop.xlane.xlu1 %3764 }
0x1734   :  { %7023 = vrcp.f32 %v3765_v28 }
0x1737   :  { %v3771_v29 = vpop.xlane.xlu1 %3770 }
0x1738   :  { %7025 = vrcp.f32 %v3771_v29 }
0x1739   :  { %7027 = vrcp.f32 %v3774_v12 }
0x173b   :  { %v4155_v44 = vpop.permute.xlu1 %4154 }
0x173c   :  { %v4160_v54 = vsel %vm979_vm7, %v4155_v44, 0 }
0x173d   :  { %v7020_v31 = vpop.eup %7019 }
0x173e   :  { %v3785_v32 = vmul.f32 %v7020_v31, %v7008_v63  ;;  %v7022_v38 = vpop.eup %7021 }
0x173f   :  { %v3788_v45 = vmul.f32 %v7022_v38, %v8295_v50 }
0x1740   :  { %v3792_v11 = vpack.c.bf16 %v3786_v33, %v3785_v32 }
0x1741   :  { %v7024_v39 = vpop.eup %7023 }
0x1742   :  { %v3787_v41 = vmul.f32 %v7024_v39, %v7010_v2  ;;  %6567 = vmatmul.mubr.msk.bf16.vlgmr.msra.gmra.mxu0 %vm468_vm6, %v3792_v11  ;;  %v3942_v42 = vrot.slane %v3792_v11, 4 }
0x1743   :  { %6577 = vmatpush3.bf16.msra.mxu0 %v4012_v37  ;;  %6578 = vmatprep.mubr.msk.bf16.mxu0 %vm7296_vm4, %v7295_v1 }
0x1744   :  { %6573 = vmatmul.mubr.msk.bf16.vlgmr.msra.gmra.mxu1 %vm468_vm6, %v3942_v42  ;;  %6588 = vmatprep.subr.bf16.mxu0 %v7295_v1  ;;  %v3793_v46 = vpack.c.bf16 %v3788_v45, %v3787_v41 }
0x1745   :  { %6583 = vmatpush3.bf16.msra.mxu1 %v4062_v43  ;;  %6584 = vmatprep.mubr.msk.bf16.mxu1 %vm7296_vm4, %v7295_v1  ;;  %v7026_v15 = vpop.eup %7025 }
0x1746   :  { %6594 = vmatprep.subr.bf16.mxu1 %v7295_v1  ;;  %v7028_v40 = vpop.eup %7027  ;;  %v3789_v51 = vmul.f32 %v7026_v15, %v8314_v4  ;;  %v4055_v50 = vrot.slane %v3793_v46, 4  ;;  %v6903_v4 = vld [vmem:[%s8698_s11 + $0x8] sm:$0xff]  }
0x1747   :  { %v3790_v53 = vmul.f32 %v7028_v40, %v8301_v52 }
0x1749   :  { %v3794_v13 = vpack.c.bf16 %v3790_v53, %v3789_v51  ;;  %v5939_v53 = vld [vmem:[%s8699_s9] ss:$0 sm:$0xff] }
0x174a   :  { %6579 = vmatmul.mubr.msk.bf16.vlgmr.msra.gmra.mxu0 %vm468_vm6, %v3793_v46 }
0x174b   :  { %6589 = vmatpush3.bf16.msra.mxu0 %v4110_v16  ;;  %6590 = vmatprep.mubr.msk.bf16.mxu0 %vm7296_vm4, %v7295_v1  ;;  %v4153_v25 = vrot.slane %v3794_v13, 4 }
0x174c   :  { %6585 = vmatmul.mubr.msk.bf16.vlgmr.msra.gmra.mxu1 %vm468_vm6, %v4055_v50  ;;  %6600 = vmatprep.subr.bf16.mxu0 %v7295_v1  ;;  %v4405_v50 = vsel %vm468_vm6, %v8256_v19, 0 }
0x174d   :  { %6595 = vmatpush3.bf16.msra.mxu1 %v4160_v54  ;;  %6596 = vmatprep.mubr.msk.bf16.mxu1 %vm7296_vm4, %v7295_v1 }
0x174e   :  { %6608 = vmatprep.subr.bf16.mxu1 %v7295_v1 }
0x1752   :  { %6591 = vmatmul.mubr.msk.bf16.vlgmr.msra.gmra.mxu0 %vm468_vm6, %v3794_v13 }
0x1753   :  { %6604 = vmatprep.mubr.msk.bf16.mxu0 %vm7296_vm4, %v7295_v1  ;;  %6601 = vmatpush3.bf16.msra.mxu0 %v6903_v4 }
0x1754   :  { %6597 = vmatmul.mubr.msk.bf16.vlgmr.msra.gmra.mxu1 %vm468_vm6, %v4153_v25  ;;  %6602 = vmatprep.subr.bf16.mxu0 %v7295_v1 }
0x1755   :  { %6612 = vmatprep.mubr.msk.bf16.mxu1 %vm7296_vm4, %v7295_v1 }
0x1757   :  { %6603 = vmatpush3.bf16.msra.mxu0 %v6904_v27 }
0x1758   :  { %6616 = vmatprep.subr.bf16.mxu0 %v7295_v1 }
0x17cd   :  { %v3837_v52 = vpop.f32.mrf.mxu0 }
0x17cf   :  { %v6556_v56 = vpop.f32.mrf.mxu0 }
0x17d1   :  { %v3840_v57 = vpop.f32.mrf.mxu0 }
0x17d3   :  { %v6557_v58 = vpop.f32.mrf.mxu0 }
0x17d7   :  { %v3887_v61 = vpop.f32.mrf.mxu1 }
0x17d9   :  { %v6562_v14 = vpop.f32.mrf.mxu1 }
0x17db   :  { %v3890_v59 = vpop.f32.mrf.mxu1 }
0x17dd   :  { %v6563_v63 = vpop.f32.mrf.mxu1 }
0x1802   :  { %v3935_v55 = vpop.f32.mrf.mxu0 }
0x1804   :  { %v6568_v2 = vpop.f32.mrf.mxu0  ;;  %v3985_v3 = vpop.f32.mrf.mxu1 }
0x1806   :  { %v3938_v7 = vpop.f32.mrf.mxu0  ;;  %v6574_v35 = vpop.f32.mrf.mxu1 }
0x1808   :  { %v6569_v6 = vpop.f32.mrf.mxu0  ;;  %v3988_v8 = vpop.f32.mrf.mxu1 }
0x180a   :  { %v6575_v9 = vpop.f32.mrf.mxu1  ;;  %v4048_v10 = vpop.f32.mrf.mxu0 }
0x180b   :  { %v6906_v9 = vld [vmem:[%s8700_s15] sm:$0xff]  }
0x180c   :  { %v6580_v24 = vpop.f32.mrf.mxu0  ;;  %v4098_v60 = vpop.f32.mrf.mxu1 }
0x180d   :  { %v6849_v17 = vpack.i.bf16 %v4098_v60, %v3887_v61 }
0x180e   :  { %v4051_v20 = vpop.f32.mrf.mxu0  ;;  %v6586_v34 = vpop.f32.mrf.mxu1 }
0x180f   :  { %6850 = vrot.lane.b32.xlu0 %v6849_v17, %s7308_s18 }
0x1810   :  { %v6581_v12 = vpop.f32.mrf.mxu0  ;;  %v4101_v23 = vpop.f32.mrf.mxu1 }
0x1811   :  { %v5943_v23 = vld [vmem:[%s8701_s16] ss:$0 sm:$0xff] }
0x1812   :  { %v6587_v5 = vpop.f32.mrf.mxu1  ;;  %v4146_v26 = vpop.f32.mrf.mxu0 }
0x1813   :  { %v6854_v62 = vpack.i.bf16 %v4146_v26, %v3935_v55 }
0x1814   :  { %v6592_v18 = vpop.f32.mrf.mxu0  ;;  %v4196_v21 = vpop.f32.mrf.mxu1 }
0x1815   :  { %v6859_v28 = vpack.i.bf16 %v4196_v21, %v3985_v3  ;;  %6855 = vrot.lane.b32.xlu1 %v6854_v62, %s7309_s22  ;;  %v5944_v18 = vld [vmem:[#allocation2] ss:$0 sm:$0xff] }
0x1816   :  { %v4149_v29 = vpop.f32.mrf.mxu0  ;;  %v6598_v30 = vpop.f32.mrf.mxu1 }
0x1817   :  { %6860 = vrot.lane.b32.xlu0 %v6859_v28, %s7310_s3 }
0x1818   :  { %v6593_v31 = vpop.f32.mrf.mxu0  ;;  %v4199_v32 = vpop.f32.mrf.mxu1 }
0x181a   :  { %v6599_v33 = vpop.f32.mrf.mxu1 }
0x1881   :  { %v6851_v36 = vpop.permute.xlu0 %6850 }
0x1882   :  { %v6853_v38 = vunpack.i.h.bf16 %v6851_v36  ;;  %v6852_v11 = vunpack.i.l.bf16 %v6851_v36  ;;  %v5945_v36 = vld [vmem:[#allocation5] ss:$0 sm:$0xff] }
0x1884   :  { %v4214_v42 = vsel %vm468_vm6, %v4048_v10, %v6853_v38  ;;  %v4003_v43 = vsel %vm468_vm6, %v3837_v52, %v6852_v11 }
0x1887   :  { %v6856_v39 = vpop.permute.xlu1 %6855 }
0x1888   :  { %v6858_v37 = vunpack.i.h.bf16 %v6856_v39  ;;  %v6857_v41 = vunpack.i.l.bf16 %v6856_v39 }
0x1889   :  { %v6861_v45 = vpop.permute.xlu0 %6860 }
0x188a   :  { %v4004_v46 = vsel %vm1184_vm11, %v4003_v43, %v6857_v41  ;;  %v4215_v15 = vsel %vm1184_vm11, %v4214_v42, %v6858_v37  ;;  %v6863_v48 = vunpack.i.h.bf16 %v6861_v45  ;;  %v6862_v40 = vunpack.i.l.bf16 %v6861_v45 }
0x188c   :  { %v4216_v44 = vsel %vm1186_vm12, %v4215_v15, %v6863_v48  ;;  %v4005_v16 = vsel %vm1186_vm12, %v4004_v46, %v6862_v40  ;;  %v8421_v15 = vrot.slane %v8256_v19, 4 }
0x188d   :  { %v4222_v51 = vpack.c.bf16 %v4216_v44, %v4005_v16 }
0x188f   :  { %6605 = vmatmul.mubr.msk.bf16.vlgmr.msra.gmra.mxu0 %vm419_vm5, %v4222_v51 }
0x1890   :  { %6617 = vmatpush3.bf16.xpose.msra.mxu0 %v4405_v50  ;;  %6618 = vmatprep.mubr.msk.bf16.mxu0 %vm7296_vm4, %v7295_v1 }
0x1891   :  { %6628 = vmatprep.subr.bf16.mxu0 %v7295_v1 }
0x194f   :  { %v4278_v54 = vpop.f32.mrf.mxu0 }
0x1950   :  { %v4279_v13 = vadd.f32 %v5939_v53, %v4278_v54 }
0x1951   :  { %v6606_v25 = vpop.f32.mrf.mxu0 }
0x1952   :  { %v4285_v52 = vadd.f32 %v4279_v13, %v8145_v47 }
0x1953   :  { %v4281_v56 = vpop.f32.mrf.mxu0 }
0x1954   :  { %v4282_v57 = vadd.f32 %v5939_v53, %v4281_v56  ;;  %v4289_v58 = vsel %vm419_vm5, %v4285_v52, 0.0  ;;  %v4605_v53 = vsel %vm468_vm6, %v8421_v15, 0 }
0x1955   :  { %4290 = vadd.xlane.f32.xlu1 %v4289_v58  ;;  %v6607_v61 = vpop.f32.mrf.mxu0 }
0x1956   :  { %v4286_v14 = vadd.f32 %v4282_v57, %v8143_v49  ;;  %v6905_v49 = vld [vmem:[%s8700_s15 + $0x8] sm:$0xff]  }
0x1957   :  { %6609 = vmatpush3.bf16.msra.mxu1 %v6905_v49 }
0x1958   :  { %v4292_v59 = vsel %vm419_vm5, %v4286_v14, 0.0  ;;  %6610 = vmatprep.subr.bf16.mxu1 %v7295_v1 }
0x1959   :  { %4293 = vadd.xlane.f32.xlu0 %v4292_v59 }
0x195b   :  { %6611 = vmatpush3.bf16.msra.mxu1 %v6906_v9 }
0x195c   :  { %6622 = vmatprep.subr.bf16.mxu1 %v7295_v1 }
0x19de   :  { %v4291_v63 = vpop.xlane.xlu1 %4290 }
0x19df   :  { %v4295_v55 = vmul.f32 0.03125, %v4291_v63 }
0x19e1   :  { %v4297_v2 = vsub.f32 %v4285_v52, %v4295_v55 }
0x19e2   :  { %v4294_v3 = vpop.xlane.xlu0 %4293 }
0x19e3   :  { %v4296_v4 = vmul.f32 0.03125, %v4294_v3  ;;  %v4299_v7 = vmul.f32 %v4297_v2, %v4297_v2 }
0x19e5   :  { %v4298_v47 = vsub.f32 %v4286_v14, %v4296_v4  ;;  %v4301_v35 = vsel %vm419_vm5, %v4299_v7, 0.0 }
0x19e6   :  { %4302 = vadd.xlane.f32.xlu0 %v4301_v35 }
0x19e7   :  { %v4300_v6 = vmul.f32 %v4298_v47, %v4298_v47 }
0x19e9   :  { %v4304_v8 = vsel %vm419_vm5, %v4300_v6, 0.0 }
0x19ea   :  { %4305 = vadd.xlane.f32.xlu1 %v4304_v8 }
0x19fb   :  { %4501 = vrot.lane.b32.xlu1 %v8256_v19, %s7303_s10 }
0x19fc   :  { %4451 = vrot.lane.b32.xlu0 %v8256_v19, %s7297_s5 }
0x1a00   :  { %4551 = vrot.lane.b32.xlu0 %v8256_v19, %s7301_s6 }
0x1a6f   :  { %v4303_v10 = vpop.xlane.xlu0 %4302 }
0x1a70   :  { %v4307_v27 = vmul.f32 0.03125, %v4303_v10 }
0x1a72   :  { %v4309_v24 = vadd.f32 1e-05, %v4307_v27 }
0x1a73   :  { %v4306_v60 = vpop.xlane.xlu1 %4305  ;;  %v4452_v30 = vpop.permute.xlu0 %4451 }
0x1a74   :  { %7029 = vrsqrt.f32 %v4309_v24  ;;  %v4308_v17 = vmul.f32 0.03125, %v4306_v60  ;;  %v4457_v32 = vsel %vm468_vm6, %v4452_v30, 0 }
0x1a76   :  { %v4310_v20 = vadd.f32 1e-05, %v4308_v17 }
0x1a77   :  { %v4502_v42 = vpop.permute.xlu1 %4501  ;;  %v4552_v48 = vpop.permute.xlu0 %4551 }
0x1a78   :  { %7031 = vrsqrt.f32 %v4310_v20  ;;  %v4507_v45 = vsel %vm468_vm6, %v4502_v42, 0  ;;  %v4557_v16 = vsel %vm468_vm6, %v4552_v48, 0 }
0x1a81   :  { %v7030_v34 = vpop.eup %7029 }
0x1a82   :  { %v4313_v12 = vmul.f32 %v7030_v34, %v4297_v2 }
0x1a84   :  { %v4321_v26 = vmul.f32 %v5943_v23, %v4313_v12 }
0x1a85   :  { %v7032_v5 = vpop.eup %7031 }
0x1a86   :  { %v4314_v62 = vmul.f32 %v7032_v5, %v4298_v47  ;;  %v8400_v28 = vadd.f32 %v5944_v18, %v4321_v26 }
0x1a88   :  { %v4322_v21 = vmul.f32 %v5943_v23, %v4314_v62 }
0x1a8a   :  { %v8402_v29 = vadd.f32 %v5944_v18, %v4322_v21 }
0x1a8c   :  { %v4336_v31 = vpack.c.bf16 %v8402_v29, %v8400_v28 }
0x1a8e   :  { %6613 = vmatmul.mubr.msk.bf16.vlgmr.msra.gmra.mxu1 %vm419_vm5, %v4336_v31 }
0x1a8f   :  { %6623 = vmatpush3.bf16.xpose.msra.mxu1 %v4457_v32  ;;  %6624 = vmatprep.mubr.msk.bf16.mxu1 %vm7296_vm4, %v7295_v1 }
0x1a90   :  { %6634 = vmatprep.subr.bf16.mxu1 %v7295_v1 }
0x1b4e   :  { %v4392_v33 = vpop.f32.mrf.mxu1 }
0x1b4f   :  { %v4393_v39 = vadd.f32 %v5945_v36, %v4392_v33 }
0x1b50   :  { %v6614_v38 = vpop.f32.mrf.mxu1 }
0x1b52   :  { %v4395_v11 = vpop.f32.mrf.mxu1 }
0x1b53   :  { %v4396_v37 = vadd.f32 %v5945_v36, %v4395_v11 }
0x1b54   :  { %v6615_v41 = vpop.f32.mrf.mxu1 }
0x1b55   :  { %v4399_v43 = vpack.c.bf16 %v4396_v37, %v4393_v39 }
0x1b57   :  { %4549 = vrot.lane.b32.xlu0 %v4399_v43, %s7301_s6  ;;  %4448 = vrot.lane.b32.xlu1 %v4399_v43, %s7297_s5  ;;  %v4599_v46 = vrot.slane %v4399_v43, 4 }
0x1b58   :  { %6619 = vmatmul.mubr.msk.bf16.vlgmr.msra.gmra.mxu0 %vm468_vm6, %v4399_v43 }
0x1b59   :  { %6629 = vmatpush3.bf16.xpose.msra.mxu0 %v4507_v45  ;;  %6630 = vmatprep.mubr.msk.bf16.mxu0 %vm7296_vm4, %v7295_v1 }
0x1b5a   :  { %6640 = vmatprep.subr.bf16.mxu0 %v7295_v1 }
0x1b5b   :  { %4499 = vrot.lane.b32.xlu1 %v4399_v43, %s7303_s10  ;;  %4647 = vrot.lane.b32.xlu0 %v4599_v46, %s7297_s5 }
0x1b5f   :  { %4649 = vrot.lane.b32.xlu1 %v8421_v15, %s7297_s5  ;;  %4749 = vrot.lane.b32.xlu0 %v8421_v15, %s7301_s6  ;;  %s8702_s5 = sld [smem:[#allocation41_spill]] }
0x1b63   :  { %4699 = vrot.lane.b32.xlu1 %v8421_v15, %s7303_s10  ;;  %4747 = vrot.lane.b32.xlu0 %v4599_v46, %s7301_s6  ;;  %s8706_s6 = sld [smem:[#allocation43_spill]] }
0x1b67   :  { %4697 = vrot.lane.b32.xlu1 %v4599_v46, %s7303_s10  ;;  %4905 = vrot.lane.b32.xlu0 %v8256_v19, %s7298_s21  ;;  %s8708_s10 = sld [smem:[#allocation47_spill]] }
0x1b6b   :  { %4955 = vrot.lane.b32.xlu1 %v8256_v19, %s7300_s30 }
0x1bc9   :  { %v4550_v40 = vpop.permute.xlu0 %4549  ;;  %v4449_v44 = vpop.permute.xlu1 %4448 }
0x1bca   :  { %6625 = vmatmul.mubr.msk.bf16.vlgmr.msra.gmra.mxu1 %vm468_vm6, %v4449_v44 }
0x1bcb   :  { %6635 = vmatpush3.bf16.xpose.msra.mxu1 %v4557_v16  ;;  %6636 = vmatprep.mubr.msk.bf16.mxu1 %vm7296_vm4, %v7295_v1 }
0x1bcc   :  { %6646 = vmatprep.subr.bf16.mxu1 %v7295_v1 }
0x1bcd   :  { %v4500_v51 = vpop.permute.xlu1 %4499  ;;  %v4648_v50 = vpop.permute.xlu0 %4647 }
0x1bce   :  { %6631 = vmatmul.mubr.msk.bf16.vlgmr.msra.gmra.mxu0 %vm468_vm6, %v4500_v51 }
0x1bcf   :  { %6641 = vmatpush3.bf16.xpose.msra.mxu0 %v4605_v53  ;;  %6642 = vmatprep.mubr.msk.bf16.mxu0 %vm7296_vm4, %v7295_v1 }
0x1bd0   :  { %6652 = vmatprep.subr.bf16.mxu0 %v7295_v1 }
0x1bd1   :  { %v4650_v54 = vpop.permute.xlu1 %4649  ;;  %v4750_v13 = vpop.permute.xlu0 %4749 }
0x1bd2   :  { %v4655_v25 = vsel %vm468_vm6, %v4650_v54, 0  ;;  %6637 = vmatmul.mubr.msk.bf16.vlgmr.msra.gmra.mxu1 %vm468_vm6, %v4550_v40  ;;  %v4755_v61 = vsel %vm468_vm6, %v4750_v13, 0 }
0x1bd3   :  { %6647 = vmatpush3.bf16.xpose.msra.mxu1 %v4655_v25  ;;  %6648 = vmatprep.mubr.msk.bf16.mxu1 %vm7296_vm4, %v7295_v1 }
0x1bd4   :  { %6658 = vmatprep.subr.bf16.mxu1 %v7295_v1 }
0x1bd5   :  { %v4700_v52 = vpop.permute.xlu1 %4699  ;;  %v4748_v56 = vpop.permute.xlu0 %4747 }
0x1bd6   :  { %v4705_v57 = vsel %vm468_vm6, %v4700_v52, 0  ;;  %6643 = vmatmul.mubr.msk.bf16.vlgmr.msra.gmra.mxu0 %vm468_vm6, %v4599_v46 }
0x1bd7   :  { %6653 = vmatpush3.bf16.xpose.msra.mxu0 %v4705_v57  ;;  %6654 = vmatprep.mubr.msk.bf16.mxu0 %vm7296_vm4, %v7295_v1 }
0x1bd8   :  { %6664 = vmatprep.subr.bf16.mxu0 %v7295_v1 }
0x1bd9   :  { %v4698_v58 = vpop.permute.xlu1 %4697  ;;  %v4906_v14 = vpop.permute.xlu0 %4905 }
0x1bda   :  { %6649 = vmatmul.mubr.msk.bf16.vlgmr.msra.gmra.mxu1 %vm468_vm6, %v4648_v50  ;;  %v4911_v59 = vsel %vm979_vm7, %v4906_v14, 0 }
0x1bdb   :  { %6659 = vmatpush3.bf16.xpose.msra.mxu1 %v4755_v61  ;;  %6660 = vmatprep.mubr.msk.bf16.mxu1 %vm7296_vm4, %v7295_v1 }
0x1bdc   :  { %6670 = vmatprep.subr.bf16.mxu1 %v7295_v1 }
0x1bdd   :  { %v4956_v63 = vpop.permute.xlu1 %4955 }
0x1bde   :  { %6655 = vmatmul.mubr.msk.bf16.vlgmr.msra.gmra.mxu0 %vm468_vm6, %v4698_v58  ;;  %v4961_v55 = vsel %vm979_vm7, %v4956_v63, 0 }
0x1bdf   :  { %6665 = vmatpush3.bf16.msra.mxu0 %v4911_v59  ;;  %6666 = vmatprep.mubr.msk.bf16.mxu0 %vm7296_vm4, %v7295_v1 }
0x1be0   :  { %6676 = vmatprep.subr.bf16.mxu0 %v7295_v1 }
0x1be2   :  { %6661 = vmatmul.mubr.msk.bf16.vlgmr.msra.gmra.mxu1 %vm468_vm6, %v4748_v56 }
0x1be3   :  { %6671 = vmatpush3.bf16.msra.mxu1 %v4961_v55  ;;  %6672 = vmatprep.mubr.msk.bf16.mxu1 %vm7296_vm4, %v7295_v1 }
0x1be4   :  { %6682 = vmatprep.subr.bf16.mxu1 %v7295_v1 }
0x1c18   :  { %v4441_v2 = vpop.f32.mrf.mxu0 }
0x1c19   :  { %v4797_v3 = vmul.f32 0.35355338, %v4441_v2 }
0x1c1a   :  { %v6620_v4 = vpop.f32.mrf.mxu0 }
0x1c1b   :  { %v8473_v7 = vsel %vm872_vm9, -1e+10, %v4797_v3 }
0x1c1c   :  { %v4444_v47 = vpop.f32.mrf.mxu0  ;;  %v4813_v35 = vsel %vm468_vm6, %v8473_v7, -inf }
0x1c1d   :  { %4814 = vmax.xlane.f32.xlu1 %v4813_v35 }
0x1c1e   :  { %v6621_v6 = vpop.f32.mrf.mxu0 }
0x1c8a   :  { %v4493_v8 = vpop.f32.mrf.mxu1 }
0x1c8b   :  { %v4798_v49 = vmul.f32 0.35355338, %v4493_v8 }
0x1c8c   :  { %v6626_v9 = vpop.f32.mrf.mxu1 }
0x1c8d   :  { %v8479_v10 = vsel %vm872_vm9, -1e+10, %v4798_v49 }
0x1c8e   :  { %v4496_v27 = vpop.f32.mrf.mxu1  ;;  %v4543_v24 = vpop.f32.mrf.mxu0  ;;  %v4816_v60 = vsel %vm468_vm6, %v8479_v10, -inf }
0x1c8f   :  { %v4799_v17 = vmul.f32 0.35355338, %v4543_v24  ;;  %4817 = vmax.xlane.f32.xlu0 %v4816_v60 }
0x1c90   :  { %v6627_v20 = vpop.f32.mrf.mxu1  ;;  %v6632_v34 = vpop.f32.mrf.mxu0 }
0x1c91   :  { %v4807_v12 = vsel %vm872_vm9, -1e+10, %v4799_v17 }
0x1c92   :  { %v4546_v23 = vpop.f32.mrf.mxu0  ;;  %v4593_v5 = vpop.f32.mrf.mxu1  ;;  %v4819_v26 = vsel %vm468_vm6, %v4807_v12, -inf }
0x1c93   :  { %v4800_v62 = vmul.f32 0.35355338, %v4593_v5  ;;  %4820 = vmax.xlane.f32.xlu0 %v4819_v26 }
0x1c94   :  { %v6633_v18 = vpop.f32.mrf.mxu0  ;;  %v6638_v21 = vpop.f32.mrf.mxu1 }
0x1c95   :  { %v8488_v30 = vsel %vm872_vm9, -1e+10, %v4800_v62 }
0x1c96   :  { %v4596_v31 = vpop.f32.mrf.mxu1  ;;  %v4641_v32 = vpop.f32.mrf.mxu0  ;;  %v4822_v33 = vsel %vm468_vm6, %v8488_v30, -inf }
0x1c97   :  { %v4801_v36 = vmul.f32 0.35355338, %v4641_v32  ;;  %4823 = vmax.xlane.f32.xlu1 %v4822_v33 }
0x1c98   :  { %v6639_v38 = vpop.f32.mrf.mxu1  ;;  %v6644_v11 = vpop.f32.mrf.mxu0 }
0x1c99   :  { %v4809_v39 = vsel %vm873_vm10, -1e+10, %v4801_v36 }
0x1c9a   :  { %v4644_v37 = vpop.f32.mrf.mxu0  ;;  %v4691_v41 = vpop.f32.mrf.mxu1  ;;  %v4825_v42 = vsel %vm468_vm6, %v4809_v39, -inf }
0x1c9b   :  { %v4802_v43 = vmul.f32 0.35355338, %v4691_v41  ;;  %4826 = vmax.xlane.f32.xlu0 %v4825_v42 }
0x1c9c   :  { %v6645_v0 = vpop.f32.mrf.mxu0  ;;  %v6650_v45 = vpop.f32.mrf.mxu1 }
0x1c9d   :  { %v4810_v46 = vsel %vm873_vm10, -1e+10, %v4802_v43 }
0x1c9e   :  { %v4694_v48 = vpop.f32.mrf.mxu1  ;;  %v4741_v40 = vpop.f32.mrf.mxu0  ;;  %v4828_v44 = vsel %vm468_vm6, %v4810_v46, -inf }
0x1c9f   :  { %v4803_v16 = vmul.f32 0.35355338, %v4741_v40  ;;  %4829 = vmax.xlane.f32.xlu1 %v4828_v44 }
0x1ca0   :  { %v6651_v51 = vpop.f32.mrf.mxu1  ;;  %v6656_v50 = vpop.f32.mrf.mxu0 }
0x1ca1   :  { %v4811_v53 = vsel %vm873_vm10, -1e+10, %v4803_v16 }
0x1ca2   :  { %v4744_v54 = vpop.f32.mrf.mxu0  ;;  %v4791_v13 = vpop.f32.mrf.mxu1  ;;  %v4831_v25 = vsel %vm468_vm6, %v4811_v53, -inf }
0x1ca3   :  { %v4804_v52 = vmul.f32 0.35355338, %v4791_v13  ;;  %4832 = vmax.xlane.f32.xlu0 %v4831_v25 }
0x1ca4   :  { %v6657_v56 = vpop.f32.mrf.mxu0  ;;  %v6662_v57 = vpop.f32.mrf.mxu1 }
0x1ca5   :  { %v4812_v58 = vsel %vm873_vm10, -1e+10, %v4804_v52 }
0x1ca6   :  { %v4794_v61 = vpop.f32.mrf.mxu1  ;;  %v4834_v14 = vsel %vm468_vm6, %v4812_v58, -inf  ;;  %v4815_v63 = vpop.xlane.xlu1 %4814 }
0x1ca7   :  { %4835 = vmax.xlane.f32.xlu1 %v4834_v14  ;;  %v4837_v55 = vsub.f32 %v8473_v7, %v4815_v63 }
0x1ca8   :  { %v6663_v59 = vpop.f32.mrf.mxu1 }
0x1ca9   :  { %v4845_v2 = vmul.f32 1.442695, %v4837_v55 }
0x1cab   :  { %7033 = vpow2.f32 %v4845_v2 }
0x1cb8   :  { %5003 = vrot.lane.b32.xlu1 %v8256_v19, %s7302_s4  ;;  %v7034_v3 = vpop.eup %7033 }
0x1cb9   :  { %5053 = vrot.lane.b32.xlu0 %v8256_v19, %s7299_s25  ;;  %v4861_v22 = vsel %vm468_vm6, %v7034_v3, 0.0 }
0x1cd8   :  { %4862 = vadd.xlane.f32.xlu0 %v4861_v22 }
0x1d18   :  { %v4818_v4 = vpop.xlane.xlu0 %4817 }
0x1d19   :  { %v4838_v47 = vsub.f32 %v8479_v10, %v4818_v4 }
0x1d1b   :  { %v4847_v35 = vmul.f32 1.442695, %v4838_v47 }
0x1d1c   :  { %v4821_v6 = vpop.xlane.xlu0 %4820 }
0x1d1d   :  { %7035 = vpow2.f32 %v4847_v35  ;;  %v4839_v8 = vsub.f32 %v4807_v12, %v4821_v6 }
0x1d1f   :  { %v4849_v49 = vmul.f32 1.442695, %v4839_v8 }
0x1d20   :  { %v4824_v34 = vpop.xlane.xlu1 %4823 }
0x1d21   :  { %7037 = vpow2.f32 %v4849_v49  ;;  %v4840_v12 = vsub.f32 %v8488_v30, %v4824_v34 }
0x1d23   :  { %v4851_v5 = vmul.f32 1.442695, %v4840_v12 }
0x1d24   :  { %v4827_v9 = vpop.xlane.xlu0 %4826 }
0x1d25   :  { %v4841_v19 = vsub.f32 %v4809_v39, %v4827_v9 }
0x1d27   :  { %v4853_v27 = vmul.f32 1.442695, %v4841_v19 }
0x1d28   :  { %v4830_v23 = vpop.xlane.xlu1 %4829 }
0x1d29   :  { %7039 = vpow2.f32 %v4853_v27  ;;  %v4842_v26 = vsub.f32 %v4810_v46, %v4830_v23 }
0x1d2a   :  { %v7036_v7 = vpop.eup %7035  ;;  %7041 = vpow2.f32 %v4851_v5 }
0x1d2b   :  { %v4864_v24 = vsel %vm468_vm6, %v7036_v7, 0.0  ;;  %v4855_v18 = vmul.f32 1.442695, %v4842_v26 }
0x1d2c   :  { %4865 = vadd.xlane.f32.xlu1 %v4864_v24  ;;  %v4833_v31 = vpop.xlane.xlu0 %4832 }
0x1d2d   :  { %7043 = vpow2.f32 %v4855_v18  ;;  %v4843_v32 = vsub.f32 %v4811_v53, %v4833_v31 }
0x1d2e   :  { %v7038_v60 = vpop.eup %7037 }
0x1d2f   :  { %v4867_v17 = vsel %vm468_vm6, %v7038_v60, 0.0  ;;  %v4857_v36 = vmul.f32 1.442695, %v4843_v32 }
0x1d30   :  { %4868 = vadd.xlane.f32.xlu0 %v4867_v17  ;;  %v4836_v62 = vpop.xlane.xlu1 %4835  ;;  %v5054_v11 = vpop.permute.xlu0 %5053 }
0x1d31   :  { %v4844_v21 = vsub.f32 %v4812_v58, %v4836_v62 }
0x1d33   :  { %v4859_v33 = vmul.f32 1.442695, %v4844_v21 }
0x1d34   :  { %v5004_v40 = vpop.permute.xlu1 %5003 }
0x1d35   :  { %7045 = vpow2.f32 %v4859_v33  ;;  %v5009_v25 = vsel %vm979_vm7, %v5004_v40, 0 }
0x1d36   :  { %v8513_v20 = vpop.eup %7039  ;;  %7047 = vpow2.f32 %v4857_v36 }
0x1d37   :  { %v4873_v10 = vsel %vm468_vm6, %v8513_v20, 0.0  ;;  %v7042_v38 = vpop.eup %7041 }
0x1d38   :  { %4874 = vadd.xlane.f32.xlu0 %v4873_v10  ;;  %v4870_v30 = vsel %vm468_vm6, %v7042_v38, 0.0 }
0x1d3a   :  { %v7044_v39 = vpop.eup %7043 }
0x1d3b   :  { %v4876_v41 = vsel %vm468_vm6, %v7044_v39, 0.0 }
0x1d3d   :  { %5116 = vrot.lane.b32.xlu1 %v8421_v15, %s7298_s21  ;;  %s8703_s21 = sld [smem:[#allocation44_spill]] }
0x1d42   :  { %v8524_v42 = vpop.eup %7045 }
0x1d43   :  { %v4882_v43 = vsel %vm468_vm6, %v8524_v42, 0.0  ;;  %v8528_v0 = vpop.eup %7047 }
0x1d44   :  { %v4879_v45 = vsel %vm468_vm6, %v8528_v0, 0.0 }
0x1d4e   :  { %5166 = vrot.lane.b32.xlu0 %v8421_v15, %s7300_s30  ;;  %s8705_s30 = sld [smem:[#allocation42_spill]] }
0x1d61   :  { %v4863_v37 = vpop.xlane.xlu0 %4862  ;;  %4871 = vadd.xlane.f32.xlu1 %v4870_v30 }
0x1d62   :  { %7049 = vrcp.f32 %v4863_v37 }
0x1d65   :  { %4877 = vadd.xlane.f32.xlu1 %v4876_v41 }
0x1d69   :  { %4883 = vadd.xlane.f32.xlu1 %v4882_v43 }
0x1d6d   :  { %4880 = vadd.xlane.f32.xlu0 %v4879_v45 }
0x1d6f   :  { %v7050_v46 = vpop.eup %7049 }
0x1d70   :  { %v4886_v48 = vmul.f32 %v7050_v46, %v7034_v3 }
0x1d72   :  { %5327 = vst.msk [vmem:[#allocation14] sm:$0xff] %vm468_vm6, %v4886_v48 }
0x1d7a   :  { %5214 = vrot.lane.b32.xlu1 %v8421_v15, %s7302_s4  ;;  %s8707_s4 = sld [smem:[#allocation46_spill]] }
0x1d83   :  { %5264 = vrot.lane.b32.xlu0 %v8421_v15, %s7299_s25  ;;  %v5059_v15 = vsel %vm979_vm7, %v5054_v11, 0  ;;  %s8704_s25 = sld [smem:[#allocation45_spill]] }
0x1db5   :  { %v4866_v44 = vpop.xlane.xlu1 %4865 }
0x1db6   :  { %7051 = vrcp.f32 %v4866_v44 }
0x1db9   :  { %v4869_v16 = vpop.xlane.xlu0 %4868  ;;  %v5117_v61 = vpop.permute.xlu1 %5116 }
0x1dba   :  { %7053 = vrcp.f32 %v4869_v16  ;;  %v5122_v35 = vsel %vm979_vm7, %v5117_v61, 0 }
0x1dc1   :  { %v4875_v51 = vpop.xlane.xlu0 %4874 }
0x1dc2   :  { %7055 = vrcp.f32 %v4875_v51 }
0x1dc3   :  { %v7052_v50 = vpop.eup %7051 }
0x1dc4   :  { %v4888_v53 = vmul.f32 %v7052_v50, %v7036_v7 }
0x1dc5   :  { %v5167_v63 = vpop.permute.xlu0 %5166 }
0x1dc6   :  { %v4901_v54 = vpack.c.bf16 %v4888_v53, %v4886_v48  ;;  %5328 = vst.msk [vmem:[#allocation14 + $0x8] sm:$0xff] %vm468_vm6, %v4888_v53  ;;  %v5172_v49 = vsel %vm979_vm7, %v5167_v63, 0  ;;  %v6908_v48 = vld [vmem:[%s8702_s5] sm:$0xff]  }
0x1dc7   :  { %v7054_v13 = vpop.eup %7053 }
0x1dc8   :  { %v4890_v52 = vmul.f32 %v7054_v13, %v7038_v60  ;;  %6667 = vmatmul.mubr.msk.bf16.vlgmr.msra.gmra.mxu0 %vm468_vm6, %v4901_v54  ;;  %v4954_v56 = vrot.slane %v4901_v54, 4 }
0x1dc9   :  { %6677 = vmatpush3.bf16.msra.mxu0 %v5009_v25  ;;  %6678 = vmatprep.mubr.msk.bf16.mxu0 %vm7296_vm4, %v7295_v1 }
0x1dca   :  { %5329 = vst.msk [vmem:[#allocation14 + $0x10] sm:$0xff] %vm468_vm6, %v4890_v52  ;;  %6673 = vmatmul.mubr.msk.bf16.vlgmr.msra.gmra.mxu1 %vm468_vm6, %v4954_v56  ;;  %6688 = vmatprep.subr.bf16.mxu0 %v7295_v1 }
0x1dcb   :  { %6683 = vmatpush3.bf16.msra.mxu1 %v5059_v15  ;;  %6684 = vmatprep.mubr.msk.bf16.mxu1 %vm7296_vm4, %v7295_v1 }
0x1dcc   :  { %6694 = vmatprep.subr.bf16.mxu1 %v7295_v1 }
0x1dcf   :  { %v7056_v57 = vpop.eup %7055 }
0x1dd0   :  { %v4894_v58 = vmul.f32 %v7056_v57, %v8513_v20 }
0x1dd2   :  { %5331 = vst.msk [vmem:[#allocation14 + $0x20] sm:$0xff] %vm468_vm6, %v4894_v58 }
0x1dea   :  { %v4872_v14 = vpop.xlane.xlu1 %4871 }
0x1deb   :  { %7057 = vrcp.f32 %v4872_v14 }
0x1dee   :  { %v4878_v59 = vpop.xlane.xlu1 %4877 }
0x1def   :  { %7059 = vrcp.f32 %v4878_v59 }
0x1df2   :  { %v4884_v55 = vpop.xlane.xlu1 %4883 }
0x1df3   :  { %7061 = vrcp.f32 %v4884_v55 }
0x1df6   :  { %v4881_v2 = vpop.xlane.xlu0 %4880  ;;  %v5215_v7 = vpop.permute.xlu1 %5214 }
0x1df7   :  { %7063 = vrcp.f32 %v4881_v2  ;;  %v5220_v20 = vsel %vm979_vm7, %v5215_v7, 0 }
0x1df8   :  { %v7058_v3 = vpop.eup %7057 }
0x1df9   :  { %v4892_v22 = vmul.f32 %v7058_v3, %v7042_v38 }
0x1dfa   :  { %v5265_v60 = vpop.permute.xlu0 %5264 }
0x1dfb   :  { %v4902_v4 = vpack.c.bf16 %v4892_v22, %v4890_v52  ;;  %5330 = vst.msk [vmem:[#allocation14 + $0x18] sm:$0xff] %vm468_vm6, %v4892_v22  ;;  %v5270_v34 = vsel %vm979_vm7, %v5265_v60, 0 }
0x1dfc   :  { %v7060_v47 = vpop.eup %7059 }
0x1dfd   :  { %v4896_v6 = vmul.f32 %v7060_v47, %v7044_v39  ;;  %6679 = vmatmul.mubr.msk.bf16.vlgmr.msra.gmra.mxu0 %vm468_vm6, %v4902_v4  ;;  %v5052_v8 = vrot.slane %v4902_v4, 4 }
0x1dfe   :  { %6689 = vmatpush3.bf16.msra.mxu0 %v5122_v35  ;;  %6690 = vmatprep.mubr.msk.bf16.mxu0 %vm7296_vm4, %v7295_v1 }
0x1dff   :  { %5332 = vst.msk [vmem:[#allocation14 + $0x28] sm:$0xff] %vm468_vm6, %v4896_v6  ;;  %6685 = vmatmul.mubr.msk.bf16.vlgmr.msra.gmra.mxu1 %vm468_vm6, %v5052_v8  ;;  %6700 = vmatprep.subr.bf16.mxu0 %v7295_v1  ;;  %v4903_v19 = vpack.c.bf16 %v4896_v6, %v4894_v58 }
0x1e00   :  { %v7062_v9 = vpop.eup %7061  ;;  %6695 = vmatpush3.bf16.msra.mxu1 %v5172_v49  ;;  %6696 = vmatprep.mubr.msk.bf16.mxu1 %vm7296_vm4, %v7295_v1 }
0x1e01   :  { %v4900_v27 = vmul.f32 %v7062_v9, %v8524_v42  ;;  %6706 = vmatprep.subr.bf16.mxu1 %v7295_v1  ;;  %v5165_v10 = vrot.slane %v4903_v19, 4  ;;  %v6907_v42 = vld [vmem:[%s8702_s5 + $0x8] sm:$0xff]  }
0x1e03   :  { %5334 = vst.msk [vmem:[#allocation14 + $0x38] sm:$0xff] %vm468_vm6, %v4900_v27 }
0x1e04   :  { %v7064_v24 = vpop.eup %7063 }
0x1e05   :  { %v4898_v17 = vmul.f32 %v7064_v24, %v8528_v0  ;;  %6691 = vmatmul.mubr.msk.bf16.vlgmr.msra.gmra.mxu0 %vm468_vm6, %v4903_v19  ;;  %v5965_v24 = vld [vmem:[#allocation8] ss:$0 sm:$0xff] }
0x1e06   :  { %6701 = vmatpush3.bf16.msra.mxu0 %v5220_v20  ;;  %6702 = vmatprep.mubr.msk.bf16.mxu0 %vm7296_vm4, %v7295_v1 }
0x1e07   :  { %5333 = vst.msk [vmem:[#allocation14 + $0x30] sm:$0xff] %vm468_vm6, %v4898_v17  ;;  %6697 = vmatmul.mubr.msk.bf16.vlgmr.msra.gmra.mxu1 %vm468_vm6, %v5165_v10  ;;  %6712 = vmatprep.subr.bf16.mxu0 %v7295_v1  ;;  %v4904_v12 = vpack.c.bf16 %v4900_v27, %v4898_v17 }
0x1e08   :  { %6707 = vmatpush3.bf16.msra.mxu1 %v5270_v34  ;;  %6708 = vmatprep.mubr.msk.bf16.mxu1 %vm7296_vm4, %v7295_v1 }
0x1e09   :  { %6720 = vmatprep.subr.bf16.mxu1 %v7295_v1  ;;  %v5263_v23 = vrot.slane %v4904_v12, 4 }
0x1e0d   :  { %6703 = vmatmul.mubr.msk.bf16.vlgmr.msra.gmra.mxu0 %vm468_vm6, %v4904_v12 }
0x1e0e   :  { %6716 = vmatprep.mubr.msk.bf16.mxu0 %vm7296_vm4, %v7295_v1  ;;  %6713 = vmatpush3.bf16.msra.mxu0 %v6907_v42 }
0x1e0f   :  { %6709 = vmatmul.mubr.msk.bf16.vlgmr.msra.gmra.mxu1 %vm468_vm6, %v5263_v23  ;;  %6714 = vmatprep.subr.bf16.mxu0 %v7295_v1 }
0x1e10   :  { %6724 = vmatprep.mubr.msk.bf16.mxu1 %vm7296_vm4, %v7295_v1 }
0x1e12   :  { %6715 = vmatpush3.bf16.msra.mxu0 %v6908_v48 }
0x1e13   :  { %6728 = vmatprep.subr.bf16.mxu0 %v7295_v1 }
0x1e88   :  { %v4947_v5 = vpop.f32.mrf.mxu0 }
0x1e8a   :  { %v6668_v26 = vpop.f32.mrf.mxu0  ;;  %v4997_v62 = vpop.f32.mrf.mxu1 }
0x1e8c   :  { %v4950_v18 = vpop.f32.mrf.mxu0  ;;  %v6674_v21 = vpop.f32.mrf.mxu1 }
0x1e8e   :  { %v6669_v31 = vpop.f32.mrf.mxu0  ;;  %v5000_v32 = vpop.f32.mrf.mxu1 }
0x1e90   :  { %v6675_v33 = vpop.f32.mrf.mxu1 }
0x1ebd   :  { %v5045_v36 = vpop.f32.mrf.mxu0 }
0x1ebf   :  { %v6680_v38 = vpop.f32.mrf.mxu0  ;;  %v5095_v11 = vpop.f32.mrf.mxu1 }
0x1ec1   :  { %v5048_v30 = vpop.f32.mrf.mxu0  ;;  %v6686_v39 = vpop.f32.mrf.mxu1 }
0x1ec2   :  { %v6910_v39 = vld [vmem:[%s8703_s21] sm:$0xff]  }
0x1ec3   :  { %v6681_v37 = vpop.f32.mrf.mxu0  ;;  %v5098_v41 = vpop.f32.mrf.mxu1 }
0x1ec4   :  { %v6911_v37 = vld [vmem:[%s8704_s25 + $0x18] sm:$0xff]  }
0x1ec5   :  { %v6687_v43 = vpop.f32.mrf.mxu1  ;;  %v5158_v0 = vpop.f32.mrf.mxu0 }
0x1ec7   :  { %v6692_v45 = vpop.f32.mrf.mxu0  ;;  %v5208_v46 = vpop.f32.mrf.mxu1 }
0x1ec8   :  { %v6864_v40 = vpack.i.bf16 %v5208_v46, %v4997_v62 }
0x1ec9   :  { %v5161_v44 = vpop.f32.mrf.mxu0  ;;  %v6698_v16 = vpop.f32.mrf.mxu1 }
0x1eca   :  { %6865 = vrot.lane.b32.xlu1 %v6864_v40, %s7308_s18  ;;  %v5969_v44 = vld [vmem:[%s8705_s30] ss:$0 sm:$0xff] }
0x1ecb   :  { %v6693_v51 = vpop.f32.mrf.mxu0  ;;  %v5211_v50 = vpop.f32.mrf.mxu1 }
0x1ecd   :  { %v6699_v53 = vpop.f32.mrf.mxu1  ;;  %v5256_v54 = vpop.f32.mrf.mxu0 }
0x1ece   :  { %v6869_v13 = vpack.i.bf16 %v5256_v54, %v5045_v36  ;;  %v5970_v53 = vld [vmem:[%s8706_s6] ss:$0 sm:$0xff] }
0x1ecf   :  { %v6704_v25 = vpop.f32.mrf.mxu0  ;;  %v5306_v52 = vpop.f32.mrf.mxu1 }
0x1ed0   :  { %v6874_v56 = vpack.i.bf16 %v5306_v52, %v5095_v11  ;;  %6870 = vrot.lane.b32.xlu0 %v6869_v13, %s7309_s22 }
0x1ed1   :  { %v5259_v15 = vpop.f32.mrf.mxu0  ;;  %v6710_v57 = vpop.f32.mrf.mxu1 }
0x1ed2   :  { %6875 = vrot.lane.b32.xlu1 %v6874_v56, %s7310_s3  ;;  %v6912_v56 = vld [vmem:[%s8704_s25 + $0x10] sm:$0xff]   ;;  %v6913_v15 = vld [vmem:[%s8704_s25 + $0x8] sm:$0xff]   ;;  %v6914_v57 = vld [vmem:[%s8704_s25] sm:$0xff]  }
0x1ed3   :  { %v6705_v58 = vpop.f32.mrf.mxu0  ;;  %v5309_v61 = vpop.f32.mrf.mxu1 }
0x1ed4   :  { %v5971_v58 = vld [vmem:[#allocation10] ss:$0 sm:$0xff] }
0x1ed5   :  { %v6711_v14 = vpop.f32.mrf.mxu1 }
0x1f3c   :  { %v6866_v59 = vpop.permute.xlu1 %6865 }
0x1f3d   :  { %v6868_v63 = vunpack.i.h.bf16 %v6866_v59  ;;  %v6867_v55 = vunpack.i.l.bf16 %v6866_v59 }
0x1f3f   :  { %v5324_v4 = vsel %vm468_vm6, %v5158_v0, %v6868_v63  ;;  %v5113_v47 = vsel %vm468_vm6, %v4947_v5, %v6867_v55 }
0x1f42   :  { %v6871_v2 = vpop.permute.xlu0 %6870 }
0x1f43   :  { %v6873_v3 = vunpack.i.h.bf16 %v6871_v2  ;;  %v6872_v22 = vunpack.i.l.bf16 %v6871_v2 }
0x1f44   :  { %v6876_v35 = vpop.permute.xlu1 %6875 }
0x1f45   :  { %v5114_v6 = vsel %vm1184_vm11, %v5113_v47, %v6872_v22  ;;  %v5325_v8 = vsel %vm1184_vm11, %v5324_v4, %v6873_v3  ;;  %v6878_v49 = vunpack.i.h.bf16 %v6876_v35  ;;  %v6877_v9 = vunpack.i.l.bf16 %v6876_v35  ;;  %v5975_v47 = vld [vmem:[#allocation11] ss:$0 sm:$0xff] }
0x1f47   :  { %v5326_v19 = vsel %vm1186_vm12, %v5325_v8, %v6878_v49  ;;  %v5115_v27 = vsel %vm1186_vm12, %v5114_v6, %v6877_v9 }
0x1f48   :  { %v5340_v7 = vpack.c.bf16 %v5326_v19, %v5115_v27 }
0x1f4a   :  { %6717 = vmatmul.mubr.msk.bf16.vlgmr.msra.gmra.mxu0 %vm419_vm5, %v5340_v7 }
0x1f4b   :  { %6736 = vmatprep.mubr.msk.bf16.mxu0 %vm7296_vm4, %v7295_v1  ;;  %6729 = vmatpush3.bf16.msra.mxu0 %v6911_v37 }
0x1f4c   :  { %6730 = vmatprep.subr.bf16.mxu0 %v7295_v1 }
0x1f4f   :  { %6731 = vmatpush3.bf16.msra.mxu0 %v6912_v56 }
0x1f50   :  { %6732 = vmatprep.subr.bf16.mxu0 %v7295_v1 }
0x1f53   :  { %6733 = vmatpush3.bf16.msra.mxu0 %v6913_v15 }
0x1f54   :  { %6734 = vmatprep.subr.bf16.mxu0 %v7295_v1 }
0x1f57   :  { %6735 = vmatpush3.bf16.msra.mxu0 %v6914_v57 }
0x200a   :  { %v5396_v60 = vpop.f32.mrf.mxu0 }
0x200b   :  { %v5397_v17 = vadd.f32 %v5965_v24, %v5396_v60 }
0x200c   :  { %v6718_v20 = vpop.f32.mrf.mxu0 }
0x200d   :  { %v5403_v10 = vadd.f32 %v5397_v17, %v8400_v28 }
0x200e   :  { %v5399_v34 = vpop.f32.mrf.mxu0 }
0x200f   :  { %v5400_v12 = vadd.f32 %v5965_v24, %v5399_v34  ;;  %v5407_v23 = vsel %vm419_vm5, %v5403_v10, 0.0 }
0x2010   :  { %5408 = vadd.xlane.f32.xlu0 %v5407_v23  ;;  %v6719_v5 = vpop.f32.mrf.mxu0 }
0x2011   :  { %v5404_v26 = vadd.f32 %v5400_v12, %v8402_v29  ;;  %v6909_v29 = vld [vmem:[%s8703_s21 + $0x8] sm:$0xff]  }
0x2012   :  { %6721 = vmatpush3.bf16.msra.mxu1 %v6909_v29 }
0x2013   :  { %v5410_v62 = vsel %vm419_vm5, %v5404_v26, 0.0  ;;  %6722 = vmatprep.subr.bf16.mxu1 %v7295_v1 }
0x2014   :  { %5411 = vadd.xlane.f32.xlu1 %v5410_v62 }
0x2016   :  { %6723 = vmatpush3.bf16.msra.mxu1 %v6910_v39  ;;  %v5981_v39 = vld [vmem:[%s8707_s4] ss:$0 sm:$0xff] }
0x2017   :  { %6740 = vmatprep.subr.bf16.mxu1 %v7295_v1 }
0x2099   :  { %v5409_v18 = vpop.xlane.xlu0 %5408 }
0x209a   :  { %v5413_v21 = vmul.f32 0.03125, %v5409_v18 }
0x209c   :  { %v5415_v31 = vsub.f32 %v5403_v10, %v5413_v21  ;;  %v6915_v21 = vld [vmem:[%s7522_s29 + $0x8] sm:$0xff]  }
0x209d   :  { %v5412_v32 = vpop.xlane.xlu1 %5411 }
0x209e   :  { %v5414_v33 = vmul.f32 0.03125, %v5412_v32  ;;  %v5417_v28 = vmul.f32 %v5415_v31, %v5415_v31 }
0x20a0   :  { %v5416_v36 = vsub.f32 %v5404_v26, %v5414_v33  ;;  %v5419_v38 = vsel %vm419_vm5, %v5417_v28, 0.0 }
0x20a1   :  { %5420 = vadd.xlane.f32.xlu0 %v5419_v38 }
0x20a2   :  { %v5418_v11 = vmul.f32 %v5416_v36, %v5416_v36 }
0x20a4   :  { %v5422_v30 = vsel %vm419_vm5, %v5418_v11, 0.0 }
0x20a5   :  { %5423 = vadd.xlane.f32.xlu0 %v5422_v30 }
0x212a   :  { %v5421_v41 = vpop.xlane.xlu0 %5420 }
0x212b   :  { %v5425_v42 = vmul.f32 0.03125, %v5421_v41 }
0x212d   :  { %v5427_v43 = vadd.f32 1e-05, %v5425_v42 }
0x212e   :  { %v5424_v0 = vpop.xlane.xlu0 %5423 }
0x212f   :  { %7065 = vrsqrt.f32 %v5427_v43  ;;  %v5426_v45 = vmul.f32 0.03125, %v5424_v0  ;;  %v5982_v43 = vld [vmem:[%s8708_s10] ss:$0 sm:$0xff] }
0x2131   :  { %v5428_v46 = vadd.f32 1e-05, %v5426_v45 }
0x2133   :  { %7067 = vrsqrt.f32 %v5428_v46 }
0x213c   :  { %v7066_v48 = vpop.eup %7065 }
0x213d   :  { %v5431_v40 = vmul.f32 %v7066_v48, %v5415_v31  ;;  %v6916_v31 = vld [vmem:[%s7522_s29] sm:$0xff]   ;;  %s7311_s29 = smov [#allocation14]  }
0x213e   :  { %s5736_s22 = sshll.u32 %s7311_s29, 4  ;;  %s5737_s22 = int_to_ptr.vmem [resolvable:$true] %s5736_s22 }
0x213f   :  { %v5439_v51 = vmul.f32 %v5969_v44, %v5431_v40  ;;  %s7193_s3 = scalar_lea.vmem %s5737_s22, 1024  ;;  %p7198_p3 = scmp.lt.s32.totalorder %s5737_s22, %s5737_s22 }
0x2140   :  { %v7068_v16 = vpop.eup %7067  ;;  %p7194_p2 = scmp.ne.s32.totalorder %s5737_s22, %s7193_s3  ;;  %p7199_p4 = scmp.lt.s32.totalorder %s7193_s3, %s7193_s3 }
0x2141   :  { %v5432_v50 = vmul.f32 %v7068_v16, %v5416_v36  ;;  %v5447_v13 = vadd.f32 %v5970_v53, %v5439_v51 }
0x2142   :  { %p7200_p5 = por %p7199_p4, %p7198_p3 }
0x2143   :  { %v5440_v54 = vmul.f32 %v5969_v44, %v5432_v50 }
0x2144   :  { %p7201_p6 = pnand %p7200_p5, %p7194_p2 }
0x2145   :  { %v5448_v25 = vadd.f32 %v5970_v53, %v5440_v54 }
0x2147   :  { %v5454_v52 = vpack.c.bf16 %v5448_v25, %v5447_v13 }
0x2149   :  { %6725 = vmatmul.mubr.msk.bf16.vlgmr.msra.gmra.mxu1 %vm419_vm5, %v5454_v52 }
0x214a   :  { %6744 = vmatprep.mubr.msk.bf16.mxu1 %vm7296_vm4, %v7295_v1  ;;  %6741 = vmatpush3.bf16.msra.mxu1 %v6915_v21 }
0x214b   :  { %6742 = vmatprep.subr.bf16.mxu1 %v7295_v1 }
0x214e   :  { %6743 = vmatpush3.bf16.msra.mxu1 %v6916_v31 }
0x2209   :  { %v5510_v61 = vpop.f32.mrf.mxu1 }
0x220a   :  { %v5511_v59 = vadd.f32 %v5971_v58, %v5510_v61 }
0x220b   :  { %v6726_v14 = vpop.f32.mrf.mxu1 }
0x220c   :  { %v5517_v3 = vmax.f32 %v5511_v59, 0.0 }
0x220d   :  { %v5513_v63 = vpop.f32.mrf.mxu1 }
0x220e   :  { %v5514_v55 = vadd.f32 %v5971_v58, %v5513_v63 }
0x220f   :  { %v6727_v2 = vpop.f32.mrf.mxu1 }
0x2210   :  { %v5518_v22 = vmax.f32 %v5514_v55, 0.0 }
0x2212   :  { %v5528_v4 = vpack.c.bf16 %v5518_v22, %v5517_v3 }
0x2214   :  { %6737 = vmatmul.mubr.msk.bf16.vlgmr.msra.gmra.mxu0 %vm1624_vm13, %v5528_v4 }
0x22d4   :  { %v5596_v35 = vpop.f32.mrf.mxu0 }
0x22d5   :  { %v5597_v6 = vadd.f32 %v5975_v47, %v5596_v35 }
0x22d6   :  { %v6738_v8 = vpop.f32.mrf.mxu0 }
0x22d7   :  { %v5603_v49 = vadd.f32 %v5597_v6, %v5447_v13 }
0x22d8   :  { %v5599_v9 = vpop.f32.mrf.mxu0 }
0x22d9   :  { %v5600_v19 = vadd.f32 %v5975_v47, %v5599_v9  ;;  %v5607_v27 = vsel %vm419_vm5, %v5603_v49, 0.0 }
0x22da   :  { %5608 = vadd.xlane.f32.xlu1 %v5607_v27  ;;  %v6739_v7 = vpop.f32.mrf.mxu0 }
0x22db   :  { %v5604_v24 = vadd.f32 %v5600_v19, %v5448_v25 }
0x22dd   :  { %v5610_v60 = vsel %vm419_vm5, %v5604_v24, 0.0 }
0x22de   :  { %5611 = vadd.xlane.f32.xlu0 %v5610_v60 }
0x2363   :  { %v5609_v17 = vpop.xlane.xlu1 %5608 }
0x2364   :  { %v5613_v20 = vmul.f32 0.03125, %v5609_v17 }
0x2366   :  { %v5615_v10 = vsub.f32 %v5603_v49, %v5613_v20 }
0x2367   :  { %v5612_v34 = vpop.xlane.xlu0 %5611 }
0x2368   :  { %v5614_v12 = vmul.f32 0.03125, %v5612_v34  ;;  %v5617_v23 = vmul.f32 %v5615_v10, %v5615_v10 }
0x236a   :  { %v5616_v5 = vsub.f32 %v5604_v24, %v5614_v12  ;;  %v5619_v26 = vsel %vm419_vm5, %v5617_v23, 0.0 }
0x236b   :  { %5620 = vadd.xlane.f32.xlu1 %v5619_v26 }
0x236c   :  { %v5618_v62 = vmul.f32 %v5616_v5, %v5616_v5 }
0x236e   :  { %v5622_v18 = vsel %vm419_vm5, %v5618_v62, 0.0 }
0x236f   :  { %5623 = vadd.xlane.f32.xlu0 %v5622_v18 }
0x23f4   :  { %v5621_v32 = vpop.xlane.xlu1 %5620 }
0x23f5   :  { %v5625_v33 = vmul.f32 0.03125, %v5621_v32 }
0x23f7   :  { %v5627_v28 = vadd.f32 1e-05, %v5625_v33 }
0x23f8   :  { %v5624_v36 = vpop.xlane.xlu0 %5623 }
0x23f9   :  { %7069 = vrsqrt.f32 %v5627_v28  ;;  %v5626_v38 = vmul.f32 0.03125, %v5624_v36 }
0x23fb   :  { %v5628_v11 = vadd.f32 1e-05, %v5626_v38 }
0x23fd   :  { %7071 = vrsqrt.f32 %v5628_v11 }
0x2406   :  { %v7070_v30 = vpop.eup %7069 }
0x2407   :  { %v5631_v29 = vmul.f32 %v7070_v30, %v5615_v10 }
0x2409   :  { %v5639_v41 = vmul.f32 %v5981_v39, %v5631_v29 }
0x240a   :  { %v7072_v37 = vpop.eup %7071 }
0x240b   :  { %v5632_v42 = vmul.f32 %v7072_v37, %v5616_v5  ;;  %v5647_v1 = vadd.f32 %v5982_v43, %v5639_v41 }
0x240d   :  { %v5640_v0 = vmul.f32 %v5981_v39, %v5632_v42 }
0x240f   :  { %v5648_v45 = vadd.f32 %v5982_v43, %v5640_v0 }
0x2411   :  { %v5654_v46 = vpack.c.bf16 %v5648_v45, %v5647_v1 }
0x2413   :  { %6745 = vmatmul.mubr.msk.bf16.vlgmr.msra.gmra.mxu1 %vm419_vm5, %v5654_v46 }
0x2414   :  { %7204 = shalt.err (!%p7201_p6)
}
0x2415   :  { %s7312_s26 = smov 128   ;;  %v5983_v48 = vld [vmem:[%s7527_s12] ss:$0 sm:$0xff]  ;;  %s7313_s28 = smov [#allocation13]  }
0x2416   :  { %5742 = dma.vmem_to_hbm [thread:$0]  %s5737_s22, 1024, %s7537_s27, [#allocation15], %s7312_s26, %s7312_s26, %s7308_s18  }
0x2417   :  { %s5724_s1 = sshll.u32 %s7313_s28, 4  ;;  %s5725_s1 = int_to_ptr.vmem [resolvable:$true] %s5724_s1 }
0x2418   :  { %s7213_s2 = scalar_lea.vmem %s5725_s1, 256  ;;  %p7218_p8 = scmp.lt.s32.totalorder %s5725_s1, %s5725_s1 }
0x2419   :  { %p7214_p7 = scmp.ne.s32.totalorder %s5725_s1, %s7213_s2  ;;  %p7219_p9 = scmp.lt.s32.totalorder %s7213_s2, %s7213_s2 }
0x241b   :  { %p7220_p10 = por %p7219_p9, %p7218_p8 }
0x241d   :  { %p7221_p11 = pnand %p7220_p10, %p7214_p7 }
0x24d3   :  { %v5710_v40 = vpop.f32.mrf.mxu1 }
0x24d4   :  { %v5711_v44 = vadd.f32 %v5983_v48, %v5710_v40 }
0x24d5   :  { %v6746_v16 = vpop.f32.mrf.mxu1 }
0x24d6   :  { %5717 = vst.msk [vmem:[#allocation13] sm:$0xff] %vm3060_vm15, %v5711_v44 }
0x24d7   :  { %v5713_v51 = vpop.f32.mrf.mxu1 }
0x24d8   :  { %v5714_v50 = vadd.f32 %v5983_v48, %v5713_v51 }
0x24d9   :  { %v6747_v53 = vpop.f32.mrf.mxu1 }
0x24da   :  { %5718 = vst.msk [vmem:[#allocation13 + $0x8] sm:$0xff] %vm3060_vm15, %v5714_v50 }
0x24db   :  { %7224 = shalt.err (!%p7221_p11)
}
0x24dc   :  { %5730 = dma.vmem_to_hbm [thread:$0]  %s5725_s1, 256, %s7532_s17, [#allocation4], %s7312_s26, %s7312_s26, %s7308_s18  }
0x24dd   :  { %7241 = dma.done.wait [#allocation4], 256  }
0x24de   :  { %7242 = vsyncadd [#allocation4], 4294967040 }
0x24df   :  { %7243 = dma.done.wait [#allocation15], 1024  }
0x24e0   :  { %7244 = vsyncadd [#allocation15], 4294966272 }
0x24e1   :  { %5749 = vsyncpa [#allocation3], 1 }
0x24e2   :  { %5750 = vsyncpa [#allocation6], 1 }
0x24e3   :  { %5751 = vsyncpa [#allocation9], 1 }
0x24e4   :  { %5752 = vsyncpa [#allocation12], 1 }
0x24e5   :  { %5753 = vsyncpa [#allocation4], 1 }
0x24e6   :  { %5754 = vsyncpa [#allocation15], 1 }

</bundles_post_ra>
